<compile_context>
chip_gen: v6e
topology: v6e:2x2x1
jax: 0.10.0
libtpu: 0.0.40
codegen_flags: <defaults>
</compile_context>

<pallas_src>
import math
import functools

import jax
import jax.numpy as jnp
from jax import lax
from jax.experimental import pallas as pl
from jax.experimental.pallas import tpu as pltpu

_VMEM_LIMIT = 64 * 1024 * 1024


def _tile(m, candidates=(256, 128, 64, 32, 16, 8)):
    """Largest MXU/VPU-friendly tile that divides m (falls back to m itself)."""
    for t in candidates:
        if t <= m and m % t == 0:
            return t
    return m


# --------------- fused QKV projection, head-major output --------------------
def _qkv_kernel(x_ref, w_ref, b_ref, q_ref, k_ref, v_ref, *, n_heads, head_dim):
    x = x_ref[0]                                           # (tt, dim)
    y = (jnp.dot(x, w_ref[...], preferred_element_type=jnp.float32)
         + b_ref[...])                                      # (tt, 3*dim)
    dim = n_heads * head_dim
    outs = (q_ref, k_ref, v_ref)
    for qi in range(3):                                     # static unroll
        for h in range(n_heads):
            lo = qi * dim + h * head_dim
            outs[qi][0, h] = y[:, lo:lo + head_dim].astype(outs[qi].dtype)


def qkv_projection(x, wqkv, bqkv, n_heads):
    """x: (B, T, dim) -> (q, k, v) each (B, n_heads, T, d), head-major."""
    B, T, dim = x.shape
    d = dim // n_heads
    tt = _tile(T)
    out_sd = jax.ShapeDtypeStruct((B, n_heads, T, d), jnp.float32)
    head_spec = pl.BlockSpec((1, n_heads, tt, d), lambda b, t: (b, 0, t, 0))
    return pl.pallas_call(
        functools.partial(_qkv_kernel, n_heads=n_heads, head_dim=d),
        out_shape=(out_sd, out_sd, out_sd),
        grid=(B, T // tt),
        in_specs=[pl.BlockSpec((1, tt, dim), lambda b, t: (b, t, 0)),
                  pl.BlockSpec((dim, 3 * dim), lambda b, t: (0, 0)),
                  pl.BlockSpec((1, 3 * dim), lambda b, t: (0, 0))],
        out_specs=(head_spec, head_spec, head_spec),
        compiler_params=pltpu.CompilerParams(
            dimension_semantics=("parallel", "parallel"),
            vmem_limit_bytes=_VMEM_LIMIT),
    )(x, wqkv, bqkv.reshape(1, 3 * dim))


# ----------------- dilated (segmented causal) attention ---------------------
def _segment_causal_attention(q, k, v, scale, kv_tile):
    """Causal softmax(q k^T * scale) v over one (S, d) segment.

    KV axis is processed in chunks with an online softmax so the (S, S) score
    matrix is never fully materialized (flash-style).  With a single chunk this
    is numerically identical to the plain max-subtracted softmax.
    """
    S, d = q.shape
    n_chunks = S // kv_tile
    rows = lax.broadcasted_iota(jnp.int32, (S, kv_tile), 0)
    cols = lax.broadcasted_iota(jnp.int32, (S, kv_tile), 1)
    m = jnp.full((S, 1), -jnp.inf, jnp.float32)
    l = jnp.zeros((S, 1), jnp.float32)
    acc = jnp.zeros((S, d), jnp.float32)
    for c in range(n_chunks):                               # static unroll
        kc = k[c * kv_tile:(c + 1) * kv_tile]
        vc = v[c * kv_tile:(c + 1) * kv_tile]
        s = lax.dot_general(q, kc, (((1,), (1,)), ((), ())),
                            preferred_element_type=jnp.float32) * scale
        s = jnp.where((cols + c * kv_tile) <= rows, s, -1e30)
        m_new = jnp.maximum(m, jnp.max(s, axis=-1, keepdims=True))
        alpha = jnp.exp(m - m_new)
        p = jnp.exp(s - m_new)
        l = alpha * l + jnp.sum(p, axis=-1, keepdims=True)
        acc = alpha * acc + jnp.dot(p, vc, preferred_element_type=jnp.float32)
        m = m_new
    return acc / l                                          # exact divide


def _dilated_attn_kernel(q_ref, k_ref, v_ref, o_ref, *, scale, out_scale, kv_tile):
    # blocks: (1, 1, 1, 1, S, d) — one (batch, head, segment).
    q = q_ref[0, 0, 0, 0]
    k = k_ref[0, 0, 0, 0]
    v = v_ref[0, 0, 0, 0]
    res = _segment_causal_attention(q, k, v, scale, kv_tile)
    o_ref[0, 0, 0, 0] = (res * out_scale).astype(o_ref.dtype)


def _dilated_attn_acc_kernel(q_ref, k_ref, v_ref, acc_ref, o_ref, *,
                             scale, out_scale, kv_tile):
    q = q_ref[0, 0, 0, 0]
    k = k_ref[0, 0, 0, 0]
    v = v_ref[0, 0, 0, 0]
    res = _segment_causal_attention(q, k, v, scale, kv_tile)
    o_ref[0, 0, 0, 0] = (acc_ref[0, 0, 0, 0] + res * out_scale).astype(o_ref.dtype)


def _kv_tile(S):
    return S if (S <= 512 or S % 512 != 0) else 512


def _dilated_attn_rate_first(q6, k6, v6, r, out_scale):
    """First rate with r == 1: every output block is written, no accumulator."""
    B, n, Lr, _, S, d = q6.shape
    blk = (1, 1, 1, 1, S, d)
    imap = lambda b, h, j: (b, h, j, h % r, 0, 0)
    return pl.pallas_call(
        functools.partial(_dilated_attn_kernel, scale=1.0 / math.sqrt(d),
                          out_scale=out_scale, kv_tile=_kv_tile(S)),
        out_shape=jax.ShapeDtypeStruct(q6.shape, jnp.float32),
        grid=(B, n, Lr),
        in_specs=[pl.BlockSpec(blk, imap)] * 3,
        out_specs=pl.BlockSpec(blk, imap),
        compiler_params=pltpu.CompilerParams(
            dimension_semantics=("parallel", "parallel", "parallel")),
    )(q6, k6, v6)


def _dilated_attn_rate_acc(q6, k6, v6, acc6, r, out_scale):
    """Later rates: accumulate into the aliased output; unwritten dilation
    offsets of other heads keep the accumulator's values."""
    B, n, Lr, _, S, d = q6.shape
    blk = (1, 1, 1, 1, S, d)
    imap = lambda b, h, j: (b, h, j, h % r, 0, 0)
    return pl.pallas_call(
        functools.partial(_dilated_attn_acc_kernel, scale=1.0 / math.sqrt(d),
                          out_scale=out_scale, kv_tile=_kv_tile(S)),
        out_shape=jax.ShapeDtypeStruct(acc6.shape, jnp.float32),
        grid=(B, n, Lr),
        in_specs=[pl.BlockSpec(blk, imap)] * 4,
        out_specs=pl.BlockSpec(blk, imap),
        input_output_aliases={3: 0},    # accumulate in place (verify no copy in xprof)
        compiler_params=pltpu.CompilerParams(
            dimension_semantics=("parallel", "parallel", "parallel")),
    )(q6, k6, v6, acc6)


def dilated_attention(q, k, v, segment_lengths, dilated_rates):
    """q, k, v: (B, n_heads, T, d). Matches DilatedAttention.forward (÷R folded in)."""
    B, n, T, d = q.shape
    R = len(dilated_rates)
    out = None
    for S, r in zip(segment_lengths, dilated_rates):
        assert T % S == 0 and (T // S) % r == 0, "T must be divisible by S*r"
        Lr = (T // S) // r
        shp = (B, n, Lr, r, S, d)                           # free reshape of (B,n,T,d)
        qs, ks, vs = q.reshape(shp), k.reshape(shp), v.reshape(shp)
        if out is None and r == 1:
            out = _dilated_attn_rate_first(qs, ks, vs, r, 1.0 / R)
        else:
            if out is None:
                out = jnp.zeros(shp, jnp.float32)           # only if first rate has r > 1
            out = _dilated_attn_rate_acc(qs, ks, vs, out.reshape(shp), r, 1.0 / R)
        out = out.reshape(B, n, T, d)
    if out is None:
        out = jnp.zeros((B, n, T, d), jnp.float32)
    return out


# ----------- output projection + residual + LayerNorm (fused) ---------------
def _oproj_ln_kernel(a_ref, w_ref, b_ref, res_ref, g_ref, be_ref, o_ref, *, n_heads):
    a = a_ref[0]                                            # (n, tt, d)
    # in-VMEM head merge -> (tt, n*d); single full-K matmul on the MXU
    a_cat = jnp.concatenate([a[h] for h in range(n_heads)], axis=-1)
    y = (jnp.dot(a_cat, w_ref[...], preferred_element_type=jnp.float32)
         + b_ref[...])
    s = res_ref[0].astype(jnp.float32) + y
    mu = jnp.mean(s, axis=-1, keepdims=True)
    var = jnp.mean(jnp.square(s - mu), axis=-1, keepdims=True)
    o_ref[0] = ((s - mu) * lax.rsqrt(var + 1e-5) * g_ref[...]
                + be_ref[...]).astype(o_ref.dtype)


def out_proj_residual_layernorm(attn, wo, bo, x_res, gamma, beta):
    """attn: (B, n, T, d) head-major attention output; x_res: (B, T, dim)."""
    B, n, T, d = attn.shape
    dim = n * d
    tt = _tile(T)
    return pl.pallas_call(
        functools.partial(_oproj_ln_kernel, n_heads=n),
        out_shape=jax.ShapeDtypeStruct((B, T, dim), jnp.float32),
        grid=(B, T // tt),
        in_specs=[pl.BlockSpec((1, n, tt, d), lambda b, t: (b, 0, t, 0)),
                  pl.BlockSpec((dim, dim), lambda b, t: (0, 0)),
                  pl.BlockSpec((1, dim), lambda b, t: (0, 0)),
                  pl.BlockSpec((1, tt, dim), lambda b, t: (b, t, 0)),
                  pl.BlockSpec((1, dim), lambda b, t: (0, 0)),
                  pl.BlockSpec((1, dim), lambda b, t: (0, 0))],
        out_specs=pl.BlockSpec((1, tt, dim), lambda b, t: (b, t, 0)),
        compiler_params=pltpu.CompilerParams(
            dimension_semantics=("parallel", "parallel"),
            vmem_limit_bytes=_VMEM_LIMIT),
    )(attn, wo, bo.reshape(1, dim), x_res, gamma.reshape(1, dim), beta.reshape(1, dim))


# ------------- MLP (H-tiled) + residual + LayerNorm (fused) -----------------
def _mlp_ln_kernel(x_ref, w1_ref, b1_ref, w2_ref, b2_ref, g_ref, be_ref, o_ref,
                   acc_ref):
    j = pl.program_id(1)

    @pl.when(j == 0)
    def _():
        acc_ref[...] = jnp.zeros_like(acc_ref)

    x = x_ref[...]
    h = jnp.dot(x, w1_ref[...], preferred_element_type=jnp.float32) + b1_ref[...]
    h = 0.5 * h * (1.0 + lax.erf(h * 0.7071067811865476))      # exact GELU
    acc_ref[...] += jnp.dot(h, w2_ref[...], preferred_element_type=jnp.float32)

    @pl.when(j == pl.num_programs(1) - 1)
    def _():
        s = x.astype(jnp.float32) + acc_ref[...] + b2_ref[...]
        mu = jnp.mean(s, axis=-1, keepdims=True)
        var = jnp.mean(jnp.square(s - mu), axis=-1, keepdims=True)
        o_ref[...] = ((s - mu) * lax.rsqrt(var + 1e-5) * g_ref[...]
                      + be_ref[...]).astype(o_ref.dtype)


def mlp_residual_layernorm(x2d, w1, b1, w2, b2, gamma, beta):
    M, D = x2d.shape
    H = w1.shape[1]
    tm = _tile(M)
    th = _tile(H, candidates=(512, 256, 128))      # hidden-dim chunk (VMEM-bounded)
    return pl.pallas_call(
        _mlp_ln_kernel,
        out_shape=jax.ShapeDtypeStruct((M, D), jnp.float32),
        grid=(M // tm, H // th),
        in_specs=[pl.BlockSpec((tm, D), lambda i, j: (i, 0)),
                  pl.BlockSpec((D, th), lambda i, j: (0, j)),
                  pl.BlockSpec((1, th), lambda i, j: (0, j)),
                  pl.BlockSpec((th, D), lambda i, j: (j, 0)),
                  pl.BlockSpec((1, D), lambda i, j: (0, 0)),
                  pl.BlockSpec((1, D), lambda i, j: (0, 0)),
                  pl.BlockSpec((1, D), lambda i, j: (0, 0))],
        out_specs=pl.BlockSpec((tm, D), lambda i, j: (i, 0)),
        scratch_shapes=[pltpu.VMEM((tm, D), jnp.float32)],
        compiler_params=pltpu.CompilerParams(
            dimension_semantics=("parallel", "arbitrary"),
            vmem_limit_bytes=_VMEM_LIMIT),
    )(x2d, w1, b1.reshape(1, H), w2, b2.reshape(1, D),
      gamma.reshape(1, D), beta.reshape(1, D))


# -------------------------------- full layer ---------------------------------
def longnet_layer(x, params, *, n_heads, segment_lengths, dilated_rates):
    B, T, dim = x.shape
    # fused QKV projection, head-major outputs (no XLA head-split transpose)
    q, k, v = qkv_projection(x, params["wqkv"], params["bqkv"], n_heads)
    attn = dilated_attention(q, k, v, segment_lengths, dilated_rates)   # (B, n, T, d)
    # output projection + residual + LayerNorm1
    x1 = out_proj_residual_layernorm(attn, params["wo"], params["bo"], x,
                                     params["g1"], params["be1"])       # (B, T, dim)
    # MLP + residual + LayerNorm2
    out = mlp_residual_layernorm(x1.reshape(B * T, dim),
                                 params["w1"], params["b1"],
                                 params["w2"], params["b2"],
                                 params["g2"], params["be2"])
    return out.reshape(B, T, dim)


# ------------------------------ parameter init --------------------------------
def init_params(key, dim):
    def lin_init(k, fan_in, fan_out):
        kw, kb = jax.random.split(k)
        bound = 1.0 / math.sqrt(fan_in)
        w = jax.random.uniform(kw, (fan_in, fan_out), jnp.float32, -bound, bound)
        b = jax.random.uniform(kb, (fan_out,), jnp.float32, -bound, bound)
        return w, b

    keys = jax.random.split(key, 6)
    wq, bq = lin_init(keys[0], dim, dim)
    wk, bk = lin_init(keys[1], dim, dim)
    wv, bv = lin_init(keys[2], dim, dim)
    p = {}
    p["wqkv"] = jnp.concatenate([wq, wk, wv], axis=1)   # (dim, 3*dim), [Q | K | V]
    p["bqkv"] = jnp.concatenate([bq, bk, bv], axis=0)
    p["wo"], p["bo"] = lin_init(keys[3], dim, dim)
    p["w1"], p["b1"] = lin_init(keys[4], dim, 4 * dim)
    p["w2"], p["b2"] = lin_init(keys[5], 4 * dim, dim)
    p["g1"] = jnp.ones((dim,), jnp.float32)
    p["be1"] = jnp.zeros((dim,), jnp.float32)
    p["g2"] = jnp.ones((dim,), jnp.float32)
    p["be2"] = jnp.zeros((dim,), jnp.float32)
    return p


# ------------------------- pure-JAX reference (check) ------------------------
def longnet_layer_ref(x, params, n_heads, segment_lengths, dilated_rates):
    B, T, dim = x.shape
    d = dim // n_heads
    qkv = x @ params["wqkv"] + params["bqkv"]
    q, k, v = jnp.split(qkv, 3, axis=-1)
    heads = lambda t: t.reshape(B, T, n_heads, d).transpose(0, 2, 1, 3)
    q, k, v = heads(q), heads(k), heads(v)
    out = jnp.zeros_like(q)
    for S, r in zip(segment_lengths, dilated_rates):
        L = T // S
        qs = q.reshape(B, n_heads, L, S, d)
        ks = k.reshape(B, n_heads, L, S, d)
        vs = v.reshape(B, n_heads, L, S, d)
        outs = out.reshape(B, n_heads, L, S, d)
        for h in range(n_heads):
            off = h % r
            s = jnp.einsum('blqd,blkd->blqk', qs[:, h, off::r],
                           ks[:, h, off::r]) / math.sqrt(d)
            mask = jnp.tril(jnp.ones((S, S), bool))
            p = jax.nn.softmax(jnp.where(mask, s, -jnp.inf), axis=-1)
            xh = jnp.einsum('blqk,blkd->blqd', p, vs[:, h, off::r])
            outs = outs.at[:, h, off::r].add(xh)
        out = outs.reshape(B, n_heads, T, d)
    out = out / len(dilated_rates)
    attn_out = out.transpose(0, 2, 1, 3).reshape(B, T, dim)

    def ln(s, g, b):
        mu = s.mean(-1, keepdims=True)
        var = ((s - mu) ** 2).mean(-1, keepdims=True)
        return (s - mu) / jnp.sqrt(var + 1e-5) * g + b

    x1 = ln(x + attn_out @ params["wo"] + params["bo"], params["g1"], params["be1"])
    h = x1 @ params["w1"] + params["b1"]
    h = 0.5 * h * (1.0 + jax.scipy.special.erf(h * 0.7071067811865476))
    return ln(x1 + h @ params["w2"] + params["b2"], params["g2"], params["be2"])


if __name__ == "__main__":
    jax.config.update("jax_default_matmul_precision", "highest")

    B, T, dim, n_heads = 2, 16, 32, 2
    segment_lengths = [4, 8]
    dilated_rates = [1, 2]

    key = jax.random.PRNGKey(0)
    pkey, xkey = jax.random.split(key)
    params = init_params(pkey, dim)
    x = jax.random.normal(xkey, (B, T, dim), jnp.float32)

    fn = jax.jit(functools.partial(longnet_layer,
                                   n_heads=n_heads,
                                   segment_lengths=segment_lengths,
                                   dilated_rates=dilated_rates))
    y = fn(x, params)
    jax.block_until_ready(y)
    assert y.shape == (B, T, dim) and y.dtype == jnp.float32

    y_ref = longnet_layer_ref(x, params, n_heads, segment_lengths, dilated_rates)
    assert jnp.allclose(y, y_ref, rtol=1e-3, atol=1e-3), \
        float(jnp.max(jnp.abs(y - y_ref)))
    print("KERNEL_OK")
</pallas_src>

<mosaic_0001>
module attributes {stable_mosaic.version = 11 : i64} {
  func.func @_qkv_kernel(%arg0: i32, %arg1: i32, %arg2: memref<1x16x32xf32, #tpu.memory_space<vmem>>, %arg3: memref<32x96xf32, #tpu.memory_space<vmem>>, %arg4: memref<1x96xf32, #tpu.memory_space<vmem>>, %arg5: memref<1x2x16x16xf32, #tpu.memory_space<vmem>>, %arg6: memref<1x2x16x16xf32, #tpu.memory_space<vmem>>, %arg7: memref<1x2x16x16xf32, #tpu.memory_space<vmem>>) attributes {dimension_semantics = [#tpu.dimension_semantics<parallel>, #tpu.dimension_semantics<parallel>], iteration_bounds = array<i64: 2, 1>, scalar_prefetch = 0 : i64, scratch_operands = 0 : i64, tpu.core_type = #tpu.core_type<tc>, window_params = [{transform_indices = @transform_0, window_bounds = array<i64: 1, 16, 32>}, {pipeline_mode = #tpu.pipeline_mode<synchronous>, transform_indices = @transform_1, window_bounds = array<i64: 32, 96>}, {pipeline_mode = #tpu.pipeline_mode<synchronous>, transform_indices = @transform_2, window_bounds = array<i64: 1, 96>}, {transform_indices = @transform_3, window_bounds = array<i64: 1, 2, 16, 16>}, {transform_indices = @transform_4, window_bounds = array<i64: 1, 2, 16, 16>}, {transform_indices = @transform_5, window_bounds = array<i64: 1, 2, 16, 16>}]} {
    %c0 = arith.constant 0 : index
    %c0_0 = arith.constant 0 : index
    %c0_1 = arith.constant 0 : index
    %0 = vector.load %arg2[%c0, %c0_0, %c0_1] : memref<1x16x32xf32, #tpu.memory_space<vmem>>, vector<1x16x32xf32>
    %1 = vector.shape_cast %0 : vector<1x16x32xf32> to vector<16x32xf32>
    %c0_2 = arith.constant 0 : index
    %c0_3 = arith.constant 0 : index
    %2 = vector.load %arg3[%c0_2, %c0_3] : memref<32x96xf32, #tpu.memory_space<vmem>>, vector<32x96xf32>
    %cst = arith.constant dense<0.000000e+00> : vector<16x96xf32>
    %3 = tpu.matmul %1, %2, %cst {dimension_numbers = #tpu.dot_dimension_numbers<[1], [0], [0], [1], [0, 0, 1, 1], [], []>, precision = #tpu.contract_precision<fp32>} : vector<16x32xf32>, vector<32x96xf32>, vector<16x96xf32> -> vector<16x96xf32>
    %c0_4 = arith.constant 0 : index
    %c0_5 = arith.constant 0 : index
    %4 = vector.load %arg4[%c0_4, %c0_5] : memref<1x96xf32, #tpu.memory_space<vmem>>, vector<1x96xf32>
    %5 = vector.broadcast %4 : vector<1x96xf32> to vector<16x96xf32>
    %6 = arith.addf %3, %5 : vector<16x96xf32>
    %7 = vector.extract_strided_slice %6 {offsets = [0, 0], sizes = [16, 16], strides = [1, 1]} : vector<16x96xf32> to vector<16x16xf32>
    %c0_6 = arith.constant 0 : index
    %c0_7 = arith.constant 0 : index
    %c0_8 = arith.constant 0 : index
    %c0_9 = arith.constant 0 : index
    %8 = vector.load %arg5[%c0_6, %c0_7, %c0_8, %c0_9] : memref<1x2x16x16xf32, #tpu.memory_space<vmem>>, vector<1x1x16x16xf32>
    %9 = vector.shape_cast %8 : vector<1x1x16x16xf32> to vector<16x16xf32>
    %10 = vector.shape_cast %7 : vector<16x16xf32> to vector<1x1x16x16xf32>
    tpu.vector_store %arg5[%c0_6, %c0_7, %c0_8, %c0_9], %10 {strides = array<i32>} : memref<1x2x16x16xf32, #tpu.memory_space<vmem>>, vector<1x1x16x16xf32>,
    %11 = vector.extract_strided_slice %6 {offsets = [0, 16], sizes = [16, 16], strides = [1, 1]} : vector<16x96xf32> to vector<16x16xf32>
    %c0_10 = arith.constant 0 : index
    %c1 = arith.constant 1 : index
    %c0_11 = arith.constant 0 : index
    %c0_12 = arith.constant 0 : index
    %12 = vector.load %arg5[%c0_10, %c1, %c0_11, %c0_12] : memref<1x2x16x16xf32, #tpu.memory_space<vmem>>, vector<1x1x16x16xf32>
    %13 = vector.shape_cast %12 : vector<1x1x16x16xf32> to vector<16x16xf32>
    %14 = vector.shape_cast %11 : vector<16x16xf32> to vector<1x1x16x16xf32>
    tpu.vector_store %arg5[%c0_10, %c1, %c0_11, %c0_12], %14 {strides = array<i32>} : memref<1x2x16x16xf32, #tpu.memory_space<vmem>>, vector<1x1x16x16xf32>,
    %15 = vector.extract_strided_slice %6 {offsets = [0, 32], sizes = [16, 16], strides = [1, 1]} : vector<16x96xf32> to vector<16x16xf32>
    %c0_13 = arith.constant 0 : index
    %c0_14 = arith.constant 0 : index
    %c0_15 = arith.constant 0 : index
    %c0_16 = arith.constant 0 : index
    %16 = vector.load %arg6[%c0_13, %c0_14, %c0_15, %c0_16] : memref<1x2x16x16xf32, #tpu.memory_space<vmem>>, vector<1x1x16x16xf32>
    %17 = vector.shape_cast %16 : vector<1x1x16x16xf32> to vector<16x16xf32>
    %18 = vector.shape_cast %15 : vector<16x16xf32> to vector<1x1x16x16xf32>
    tpu.vector_store %arg6[%c0_13, %c0_14, %c0_15, %c0_16], %18 {strides = array<i32>} : memref<1x2x16x16xf32, #tpu.memory_space<vmem>>, vector<1x1x16x16xf32>,
    %19 = vector.extract_strided_slice %6 {offsets = [0, 48], sizes = [16, 16], strides = [1, 1]} : vector<16x96xf32> to vector<16x16xf32>
    %c0_17 = arith.constant 0 : index
    %c1_18 = arith.constant 1 : index
    %c0_19 = arith.constant 0 : index
    %c0_20 = arith.constant 0 : index
    %20 = vector.load %arg6[%c0_17, %c1_18, %c0_19, %c0_20] : memref<1x2x16x16xf32, #tpu.memory_space<vmem>>, vector<1x1x16x16xf32>
    %21 = vector.shape_cast %20 : vector<1x1x16x16xf32> to vector<16x16xf32>
    %22 = vector.shape_cast %19 : vector<16x16xf32> to vector<1x1x16x16xf32>
    tpu.vector_store %arg6[%c0_17, %c1_18, %c0_19, %c0_20], %22 {strides = array<i32>} : memref<1x2x16x16xf32, #tpu.memory_space<vmem>>, vector<1x1x16x16xf32>,
    %23 = vector.extract_strided_slice %6 {offsets = [0, 64], sizes = [16, 16], strides = [1, 1]} : vector<16x96xf32> to vector<16x16xf32>
    %c0_21 = arith.constant 0 : index
    %c0_22 = arith.constant 0 : index
    %c0_23 = arith.constant 0 : index
    %c0_24 = arith.constant 0 : index
    %24 = vector.load %arg7[%c0_21, %c0_22, %c0_23, %c0_24] : memref<1x2x16x16xf32, #tpu.memory_space<vmem>>, vector<1x1x16x16xf32>
    %25 = vector.shape_cast %24 : vector<1x1x16x16xf32> to vector<16x16xf32>
    %26 = vector.shape_cast %23 : vector<16x16xf32> to vector<1x1x16x16xf32>
    tpu.vector_store %arg7[%c0_21, %c0_22, %c0_23, %c0_24], %26 {strides = array<i32>} : memref<1x2x16x16xf32, #tpu.memory_space<vmem>>, vector<1x1x16x16xf32>,
    %27 = vector.extract_strided_slice %6 {offsets = [0, 80], sizes = [16, 16], strides = [1, 1]} : vector<16x96xf32> to vector<16x16xf32>
    %c0_25 = arith.constant 0 : index
    %c1_26 = arith.constant 1 : index
    %c0_27 = arith.constant 0 : index
    %c0_28 = arith.constant 0 : index
    %28 = vector.load %arg7[%c0_25, %c1_26, %c0_27, %c0_28] : memref<1x2x16x16xf32, #tpu.memory_space<vmem>>, vector<1x1x16x16xf32>
    %29 = vector.shape_cast %28 : vector<1x1x16x16xf32> to vector<16x16xf32>
    %30 = vector.shape_cast %27 : vector<16x16xf32> to vector<1x1x16x16xf32>
    tpu.vector_store %arg7[%c0_25, %c1_26, %c0_27, %c0_28], %30 {strides = array<i32>} : memref<1x2x16x16xf32, #tpu.memory_space<vmem>>, vector<1x1x16x16xf32>,
    return
  }
  func.func @transform_0(%arg0: i32, %arg1: i32) -> (i32, i32, i32) {
    %c0_i32 = arith.constant 0 : i32
    %c0_i32_0 = arith.constant 0 : i32
    return %arg0, %arg1, %c0_i32 : i32, i32, i32
  }
  func.func @transform_1(%arg0: i32, %arg1: i32) -> (i32, i32) {
    %c0_i32 = arith.constant 0 : i32
    %c0_i32_0 = arith.constant 0 : i32
    %c0_i32_1 = arith.constant 0 : i32
    return %c0_i32, %c0_i32_0 : i32, i32
  }
  func.func @transform_2(%arg0: i32, %arg1: i32) -> (i32, i32) {
    %c0_i32 = arith.constant 0 : i32
    %c0_i32_0 = arith.constant 0 : i32
    %c0_i32_1 = arith.constant 0 : i32
    return %c0_i32, %c0_i32_0 : i32, i32
  }
  func.func @transform_3(%arg0: i32, %arg1: i32) -> (i32, i32, i32, i32) {
    %c0_i32 = arith.constant 0 : i32
    %c0_i32_0 = arith.constant 0 : i32
    %c0_i32_1 = arith.constant 0 : i32
    return %arg0, %c0_i32, %arg1, %c0_i32_0 : i32, i32, i32, i32
  }
  func.func @transform_4(%arg0: i32, %arg1: i32) -> (i32, i32, i32, i32) {
    %c0_i32 = arith.constant 0 : i32
    %c0_i32_0 = arith.constant 0 : i32
    %c0_i32_1 = arith.constant 0 : i32
    return %arg0, %c0_i32, %arg1, %c0_i32_0 : i32, i32, i32, i32
  }
  func.func @transform_5(%arg0: i32, %arg1: i32) -> (i32, i32, i32, i32) {
    %c0_i32 = arith.constant 0 : i32
    %c0_i32_0 = arith.constant 0 : i32
    %c0_i32_1 = arith.constant 0 : i32
    return %arg0, %c0_i32, %arg1, %c0_i32_0 : i32, i32, i32, i32
  }
}

module attributes {stable_mosaic.version = 11 : i64} {
  func.func @_dilated_attn_acc_kernel(%arg0: i32, %arg1: i32, %arg2: i32, %arg3: memref<1x1x1x1x8x16xf32, #tpu.memory_space<vmem>>, %arg4: memref<1x1x1x1x8x16xf32, #tpu.memory_space<vmem>>, %arg5: memref<1x1x1x1x8x16xf32, #tpu.memory_space<vmem>>, %arg6: memref<1x1x1x1x8x16xf32, #tpu.memory_space<vmem>>, %arg7: memref<1x1x1x1x8x16xf32, #tpu.memory_space<vmem>>) attributes {dimension_semantics = [#tpu.dimension_semantics<parallel>, #tpu.dimension_semantics<parallel>, #tpu.dimension_semantics<parallel>], iteration_bounds = array<i64: 2, 2, 1>, scalar_prefetch = 0 : i64, scratch_operands = 0 : i64, tpu.core_type = #tpu.core_type<tc>, window_params = [{transform_indices = @transform_0, window_bounds = array<i64: 1, 1, 1, 1, 8, 16>}, {transform_indices = @transform_1, window_bounds = array<i64: 1, 1, 1, 1, 8, 16>}, {transform_indices = @transform_2, window_bounds = array<i64: 1, 1, 1, 1, 8, 16>}, {transform_indices = @transform_3, window_bounds = array<i64: 1, 1, 1, 1, 8, 16>}, {transform_indices = @transform_4, window_bounds = array<i64: 1, 1, 1, 1, 8, 16>}]} {
    %c0 = arith.constant 0 : index
    %c0_0 = arith.constant 0 : index
    %c0_1 = arith.constant 0 : index
    %c0_2 = arith.constant 0 : index
    %c0_3 = arith.constant 0 : index
    %c0_4 = arith.constant 0 : index
    %0 = vector.load %arg3[%c0, %c0_0, %c0_1, %c0_2, %c0_3, %c0_4] : memref<1x1x1x1x8x16xf32, #tpu.memory_space<vmem>>, vector<1x1x1x1x8x16xf32>
    %1 = vector.shape_cast %0 : vector<1x1x1x1x8x16xf32> to vector<8x16xf32>
    %c0_5 = arith.constant 0 : index
    %c0_6 = arith.constant 0 : index
    %c0_7 = arith.constant 0 : index
    %c0_8 = arith.constant 0 : index
    %c0_9 = arith.constant 0 : index
    %c0_10 = arith.constant 0 : index
    %2 = vector.load %arg4[%c0_5, %c0_6, %c0_7, %c0_8, %c0_9, %c0_10] : memref<1x1x1x1x8x16xf32, #tpu.memory_space<vmem>>, vector<1x1x1x1x8x16xf32>
    %3 = vector.shape_cast %2 : vector<1x1x1x1x8x16xf32> to vector<8x16xf32>
    %c0_11 = arith.constant 0 : index
    %c0_12 = arith.constant 0 : index
    %c0_13 = arith.constant 0 : index
    %c0_14 = arith.constant 0 : index
    %c0_15 = arith.constant 0 : index
    %c0_16 = arith.constant 0 : index
    %4 = vector.load %arg5[%c0_11, %c0_12, %c0_13, %c0_14, %c0_15, %c0_16] : memref<1x1x1x1x8x16xf32, #tpu.memory_space<vmem>>, vector<1x1x1x1x8x16xf32>
    %5 = vector.shape_cast %4 : vector<1x1x1x1x8x16xf32> to vector<8x16xf32>
    %6 = tpu.iota {dimensions = array<i32: 0>} : vector<8x8xi32>
    %7 = tpu.iota {dimensions = array<i32: 1>} : vector<8x8xi32>
    %cst = arith.constant 0xFF800000 : f32
    %8 = vector.broadcast %cst : f32 to vector<8x1xf32>
    %cst_17 = arith.constant 0.000000e+00 : f32
    %9 = vector.broadcast %cst_17 : f32 to vector<8x1xf32>
    %cst_18 = arith.constant 0.000000e+00 : f32
    %10 = vector.broadcast %cst_18 : f32 to vector<8x16xf32>
    %cst_19 = arith.constant dense<0.000000e+00> : vector<8x8xf32>
    %11 = tpu.matmul %1, %3, %cst_19 {dimension_numbers = #tpu.dot_dimension_numbers<[1], [1], [0], [0], [0, 0, 1, 0], [], []>, precision = #tpu.contract_precision<fp32>} : vector<8x16xf32>, vector<8x16xf32>, vector<8x8xf32> -> vector<8x8xf32>
    %cst_20 = arith.constant 2.500000e-01 : f32
    %12 = vector.broadcast %cst_20 : f32 to vector<8x8xf32>
    %13 = arith.mulf %11, %12 : vector<8x8xf32>
    %c0_i32 = arith.constant 0 : i32
    %14 = vector.broadcast %c0_i32 : i32 to vector<8x8xi32>
    %15 = arith.addi %7, %14 : vector<8x8xi32>
    %16 = arith.cmpi sle, %15, %6 : vector<8x8xi32>
    %cst_21 = arith.constant -1.000000e+30 : f32
    %17 = vector.broadcast %cst_21 : f32 to vector<8x8xf32>
    %18 = arith.select %16, %13, %17 : vector<8x8xi1>, vector<8x8xf32>
    %cst_22 = arith.constant dense<0xFF800000> : vector<8xf32>
    %19 = vector.multi_reduction <maximumf>, %18, %cst_22 [1] : vector<8x8xf32> to vector<8xf32>
    %20 = vector.shape_cast %19 : vector<8xf32> to vector<8x1xf32>
    %21 = arith.maximumf %8, %20 : vector<8x1xf32>
    %22 = arith.subf %8, %21 : vector<8x1xf32>
    %23 = math.exp %22 : vector<8x1xf32>
    %24 = vector.broadcast %21 : vector<8x1xf32> to vector<8x8xf32>
    %25 = arith.subf %18, %24 : vector<8x8xf32>
    %26 = math.exp %25 : vector<8x8xf32>
    %27 = arith.mulf %23, %9 : vector<8x1xf32>
    %cst_23 = arith.constant dense<0.000000e+00> : vector<8xf32>
    %28 = vector.multi_reduction <add>, %26, %cst_23 [1] : vector<8x8xf32> to vector<8xf32>
    %29 = vector.shape_cast %28 : vector<8xf32> to vector<8x1xf32>
    %30 = arith.addf %27, %29 : vector<8x1xf32>
    %31 = vector.broadcast %23 : vector<8x1xf32> to vector<8x16xf32>
    %32 = arith.mulf %31, %10 : vector<8x16xf32>
    %cst_24 = arith.constant dense<0.000000e+00> : vector<8x16xf32>
    %33 = tpu.matmul %26, %5, %cst_24 {dimension_numbers = #tpu.dot_dimension_numbers<[1], [0], [0], [1], [0, 0, 1, 1], [], []>, precision = #tpu.contract_precision<fp32>} : vector<8x8xf32>, vector<8x16xf32>, vector<8x16xf32> -> vector<8x16xf32>
    %34 = arith.addf %32, %33 : vector<8x16xf32>
    %35 = vector.broadcast %30 : vector<8x1xf32> to vector<8x16xf32>
    %36 = arith.divf %34, %35 : vector<8x16xf32>
    %c0_25 = arith.constant 0 : index
    %c0_26 = arith.constant 0 : index
    %c0_27 = arith.constant 0 : index
    %c0_28 = arith.constant 0 : index
    %c0_29 = arith.constant 0 : index
    %c0_30 = arith.constant 0 : index
    %37 = vector.load %arg6[%c0_25, %c0_26, %c0_27, %c0_28, %c0_29, %c0_30] : memref<1x1x1x1x8x16xf32, #tpu.memory_space<vmem>>, vector<1x1x1x1x8x16xf32>
    %38 = vector.shape_cast %37 : vector<1x1x1x1x8x16xf32> to vector<8x16xf32>
    %cst_31 = arith.constant 5.000000e-01 : f32
    %39 = vector.broadcast %cst_31 : f32 to vector<8x16xf32>
    %40 = arith.mulf %36, %39 : vector<8x16xf32>
    %41 = arith.addf %38, %40 : vector<8x16xf32>
    %c0_32 = arith.constant 0 : index
    %c0_33 = arith.constant 0 : index
    %c0_34 = arith.constant 0 : index
    %c0_35 = arith.constant 0 : index
    %c0_36 = arith.constant 0 : index
    %c0_37 = arith.constant 0 : index
    %42 = vector.load %arg7[%c0_32, %c0_33, %c0_34, %c0_35, %c0_36, %c0_37] : memref<1x1x1x1x8x16xf32, #tpu.memory_space<vmem>>, vector<1x1x1x1x8x16xf32>
    %43 = vector.shape_cast %42 : vector<1x1x1x1x8x16xf32> to vector<8x16xf32>
    %44 = vector.shape_cast %41 : vector<8x16xf32> to vector<1x1x1x1x8x16xf32>
    tpu.vector_store %arg7[%c0_32, %c0_33, %c0_34, %c0_35, %c0_36, %c0_37], %44 {strides = array<i32>} : memref<1x1x1x1x8x16xf32, #tpu.memory_space<vmem>>, vector<1x1x1x1x8x16xf32>,
    return
  }
  func.func @transform_0(%arg0: i32, %arg1: i32, %arg2: i32) -> (i32, i32, i32, i32, i32, i32) {
    %c2_i32 = arith.constant 2 : i32
    %c0_i32 = arith.constant 0 : i32
    %0 = arith.cmpi eq, %c2_i32, %c0_i32 : i32
    %c1_i32 = arith.constant 1 : i32
    %1 = arith.select %0, %c1_i32, %c2_i32 : i32
    %2 = arith.remsi %arg1, %1 : i32
    %c0_i32_0 = arith.constant 0 : i32
    %3 = arith.cmpi ne, %2, %c0_i32_0 : i32
    %c0_i32_1 = arith.constant 0 : i32
    %4 = arith.cmpi slt, %2, %c0_i32_1 : i32
    %c0_i32_2 = arith.constant 0 : i32
    %5 = arith.cmpi slt, %1, %c0_i32_2 : i32
    %6 = arith.xori %4, %5 : i1
    %7 = arith.andi %6, %3 : i1
    %8 = arith.addi %2, %1 : i32
    %9 = arith.select %7, %8, %2 : i32
    %c0_i32_3 = arith.constant 0 : i32
    %c0_i32_4 = arith.constant 0 : i32
    %c0_i32_5 = arith.constant 0 : i32
    return %arg0, %arg1, %arg2, %9, %c0_i32_3, %c0_i32_4 : i32, i32, i32, i32, i32, i32
  }
  func.func @transform_1(%arg0: i32, %arg1: i32, %arg2: i32) -> (i32, i32, i32, i32, i32, i32) {
    %c2_i32 = arith.constant 2 : i32
    %c0_i32 = arith.constant 0 : i32
    %0 = arith.cmpi eq, %c2_i32, %c0_i32 : i32
    %c1_i32 = arith.constant 1 : i32
    %1 = arith.select %0, %c1_i32, %c2_i32 : i32
    %2 = arith.remsi %arg1, %1 : i32
    %c0_i32_0 = arith.constant 0 : i32
    %3 = arith.cmpi ne, %2, %c0_i32_0 : i32
    %c0_i32_1 = arith.constant 0 : i32
    %4 = arith.cmpi slt, %2, %c0_i32_1 : i32
    %c0_i32_2 = arith.constant 0 : i32
    %5 = arith.cmpi slt, %1, %c0_i32_2 : i32
    %6 = arith.xori %4, %5 : i1
    %7 = arith.andi %6, %3 : i1
    %8 = arith.addi %2, %1 : i32
    %9 = arith.select %7, %8, %2 : i32
    %c0_i32_3 = arith.constant 0 : i32
    %c0_i32_4 = arith.constant 0 : i32
    %c0_i32_5 = arith.constant 0 : i32
    return %arg0, %arg1, %arg2, %9, %c0_i32_3, %c0_i32_4 : i32, i32, i32, i32, i32, i32
  }
  func.func @transform_2(%arg0: i32, %arg1: i32, %arg2: i32) -> (i32, i32, i32, i32, i32, i32) {
    %c2_i32 = arith.constant 2 : i32
    %c0_i32 = arith.constant 0 : i32
    %0 = arith.cmpi eq, %c2_i32, %c0_i32 : i32
    %c1_i32 = arith.constant 1 : i32
    %1 = arith.select %0, %c1_i32, %c2_i32 : i32
    %2 = arith.remsi %arg1, %1 : i32
    %c0_i32_0 = arith.constant 0 : i32
    %3 = arith.cmpi ne, %2, %c0_i32_0 : i32
    %c0_i32_1 = arith.constant 0 : i32
    %4 = arith.cmpi slt, %2, %c0_i32_1 : i32
    %c0_i32_2 = arith.constant 0 : i32
    %5 = arith.cmpi slt, %1, %c0_i32_2 : i32
    %6 = arith.xori %4, %5 : i1
    %7 = arith.andi %6, %3 : i1
    %8 = arith.addi %2, %1 : i32
    %9 = arith.select %7, %8, %2 : i32
    %c0_i32_3 = arith.constant 0 : i32
    %c0_i32_4 = arith.constant 0 : i32
    %c0_i32_5 = arith.constant 0 : i32
    return %arg0, %arg1, %arg2, %9, %c0_i32_3, %c0_i32_4 : i32, i32, i32, i32, i32, i32
  }
  func.func @transform_3(%arg0: i32, %arg1: i32, %arg2: i32) -> (i32, i32, i32, i32, i32, i32) {
    %c2_i32 = arith.constant 2 : i32
    %c0_i32 = arith.constant 0 : i32
    %0 = arith.cmpi eq, %c2_i32, %c0_i32 : i32
    %c1_i32 = arith.constant 1 : i32
    %1 = arith.select %0, %c1_i32, %c2_i32 : i32
    %2 = arith.remsi %arg1, %1 : i32
    %c0_i32_0 = arith.constant 0 : i32
    %3 = arith.cmpi ne, %2, %c0_i32_0 : i32
    %c0_i32_1 = arith.constant 0 : i32
    %4 = arith.cmpi slt, %2, %c0_i32_1 : i32
    %c0_i32_2 = arith.constant 0 : i32
    %5 = arith.cmpi slt, %1, %c0_i32_2 : i32
    %6 = arith.xori %4, %5 : i1
    %7 = arith.andi %6, %3 : i1
    %8 = arith.addi %2, %1 : i32
    %9 = arith.select %7, %8, %2 : i32
    %c0_i32_3 = arith.constant 0 : i32
    %c0_i32_4 = arith.constant 0 : i32
    %c0_i32_5 = arith.constant 0 : i32
    return %arg0, %arg1, %arg2, %9, %c0_i32_3, %c0_i32_4 : i32, i32, i32, i32, i32, i32
  }
  func.func @transform_4(%arg0: i32, %arg1: i32, %arg2: i32) -> (i32, i32, i32, i32, i32, i32) {
    %c2_i32 = arith.constant 2 : i32
    %c0_i32 = arith.constant 0 : i32
    %0 = arith.cmpi eq, %c2_i32, %c0_i32 : i32
    %c1_i32 = arith.constant 1 : i32
    %1 = arith.select %0, %c1_i32, %c2_i32 : i32
    %2 = arith.remsi %arg1, %1 : i32
    %c0_i32_0 = arith.constant 0 : i32
    %3 = arith.cmpi ne, %2, %c0_i32_0 : i32
    %c0_i32_1 = arith.constant 0 : i32
    %4 = arith.cmpi slt, %2, %c0_i32_1 : i32
    %c0_i32_2 = arith.constant 0 : i32
    %5 = arith.cmpi slt, %1, %c0_i32_2 : i32
    %6 = arith.xori %4, %5 : i1
    %7 = arith.andi %6, %3 : i1
    %8 = arith.addi %2, %1 : i32
    %9 = arith.select %7, %8, %2 : i32
    %c0_i32_3 = arith.constant 0 : i32
    %c0_i32_4 = arith.constant 0 : i32
    %c0_i32_5 = arith.constant 0 : i32
    return %arg0, %arg1, %arg2, %9, %c0_i32_3, %c0_i32_4 : i32, i32, i32, i32, i32, i32
  }
}

module attributes {stable_mosaic.version = 11 : i64} {
  func.func @_oproj_ln_kernel(%arg0: i32, %arg1: i32, %arg2: memref<1x2x16x16xf32, #tpu.memory_space<vmem>>, %arg3: memref<32x32xf32, #tpu.memory_space<vmem>>, %arg4: memref<1x32xf32, #tpu.memory_space<vmem>>, %arg5: memref<1x16x32xf32, #tpu.memory_space<vmem>>, %arg6: memref<1x32xf32, #tpu.memory_space<vmem>>, %arg7: memref<1x32xf32, #tpu.memory_space<vmem>>, %arg8: memref<1x16x32xf32, #tpu.memory_space<vmem>>) attributes {dimension_semantics = [#tpu.dimension_semantics<parallel>, #tpu.dimension_semantics<parallel>], iteration_bounds = array<i64: 2, 1>, scalar_prefetch = 0 : i64, scratch_operands = 0 : i64, tpu.core_type = #tpu.core_type<tc>, window_params = [{transform_indices = @transform_0, window_bounds = array<i64: 1, 2, 16, 16>}, {pipeline_mode = #tpu.pipeline_mode<synchronous>, transform_indices = @transform_1, window_bounds = array<i64: 32, 32>}, {pipeline_mode = #tpu.pipeline_mode<synchronous>, transform_indices = @transform_2, window_bounds = array<i64: 1, 32>}, {transform_indices = @transform_3, window_bounds = array<i64: 1, 16, 32>}, {pipeline_mode = #tpu.pipeline_mode<synchronous>, transform_indices = @transform_4, window_bounds = array<i64: 1, 32>}, {pipeline_mode = #tpu.pipeline_mode<synchronous>, transform_indices = @transform_5, window_bounds = array<i64: 1, 32>}, {transform_indices = @transform_6, window_bounds = array<i64: 1, 16, 32>}]} {
    %c0 = arith.constant 0 : index
    %c0_0 = arith.constant 0 : index
    %c0_1 = arith.constant 0 : index
    %c0_2 = arith.constant 0 : index
    %0 = vector.load %arg2[%c0, %c0_0, %c0_1, %c0_2] : memref<1x2x16x16xf32, #tpu.memory_space<vmem>>, vector<1x2x16x16xf32>
    %1 = vector.shape_cast %0 : vector<1x2x16x16xf32> to vector<2x16x16xf32>
    %2 = vector.extract_strided_slice %1 {offsets = [0, 0, 0], sizes = [1, 16, 16], strides = [1, 1, 1]} : vector<2x16x16xf32> to vector<1x16x16xf32>
    %3 = vector.shape_cast %2 : vector<1x16x16xf32> to vector<16x16xf32>
    %4 = vector.extract_strided_slice %1 {offsets = [1, 0, 0], sizes = [1, 16, 16], strides = [1, 1, 1]} : vector<2x16x16xf32> to vector<1x16x16xf32>
    %5 = vector.shape_cast %4 : vector<1x16x16xf32> to vector<16x16xf32>
    %6 = tpu.concatenate %3, %5 in 1 : vector<16x16xf32>, vector<16x16xf32> -> vector<16x32xf32>
    %c0_3 = arith.constant 0 : index
    %c0_4 = arith.constant 0 : index
    %7 = vector.load %arg3[%c0_3, %c0_4] : memref<32x32xf32, #tpu.memory_space<vmem>>, vector<32x32xf32>
    %cst = arith.constant dense<0.000000e+00> : vector<16x32xf32>
    %8 = tpu.matmul %6, %7, %cst {dimension_numbers = #tpu.dot_dimension_numbers<[1], [0], [0], [1], [0, 0, 1, 1], [], []>, precision = #tpu.contract_precision<fp32>} : vector<16x32xf32>, vector<32x32xf32>, vector<16x32xf32> -> vector<16x32xf32>
    %c0_5 = arith.constant 0 : index
    %c0_6 = arith.constant 0 : index
    %9 = vector.load %arg4[%c0_5, %c0_6] : memref<1x32xf32, #tpu.memory_space<vmem>>, vector<1x32xf32>
    %10 = vector.broadcast %9 : vector<1x32xf32> to vector<16x32xf32>
    %11 = arith.addf %8, %10 : vector<16x32xf32>
    %c0_7 = arith.constant 0 : index
    %c0_8 = arith.constant 0 : index
    %c0_9 = arith.constant 0 : index
    %12 = vector.load %arg5[%c0_7, %c0_8, %c0_9] : memref<1x16x32xf32, #tpu.memory_space<vmem>>, vector<1x16x32xf32>
    %13 = vector.shape_cast %12 : vector<1x16x32xf32> to vector<16x32xf32>
    %14 = arith.addf %13, %11 : vector<16x32xf32>
    %cst_10 = arith.constant dense<0.000000e+00> : vector<16xf32>
    %15 = vector.multi_reduction <add>, %14, %cst_10 [1] : vector<16x32xf32> to vector<16xf32>
    %16 = vector.shape_cast %15 : vector<16xf32> to vector<16x1xf32>
    %cst_11 = arith.constant 3.200000e+01 : f32
    %17 = vector.broadcast %cst_11 : f32 to vector<16x1xf32>
    %18 = arith.divf %16, %17 : vector<16x1xf32>
    %19 = vector.broadcast %18 : vector<16x1xf32> to vector<16x32xf32>
    %20 = arith.subf %14, %19 : vector<16x32xf32>
    %21 = arith.mulf %20, %20 : vector<16x32xf32>
    %cst_12 = arith.constant dense<0.000000e+00> : vector<16xf32>
    %22 = vector.multi_reduction <add>, %21, %cst_12 [1] : vector<16x32xf32> to vector<16xf32>
    %23 = vector.shape_cast %22 : vector<16xf32> to vector<16x1xf32>
    %cst_13 = arith.constant 3.200000e+01 : f32
    %24 = vector.broadcast %cst_13 : f32 to vector<16x1xf32>
    %25 = arith.divf %23, %24 : vector<16x1xf32>
    %26 = vector.broadcast %18 : vector<16x1xf32> to vector<16x32xf32>
    %27 = arith.subf %14, %26 : vector<16x32xf32>
    %cst_14 = arith.constant 9.99999974E-6 : f32
    %28 = vector.broadcast %cst_14 : f32 to vector<16x1xf32>
    %29 = arith.addf %25, %28 : vector<16x1xf32>
    %30 = math.rsqrt %29 : vector<16x1xf32>
    %31 = vector.broadcast %30 : vector<16x1xf32> to vector<16x32xf32>
    %32 = arith.mulf %27, %31 : vector<16x32xf32>
    %c0_15 = arith.constant 0 : index
    %c0_16 = arith.constant 0 : index
    %33 = vector.load %arg6[%c0_15, %c0_16] : memref<1x32xf32, #tpu.memory_space<vmem>>, vector<1x32xf32>
    %34 = vector.broadcast %33 : vector<1x32xf32> to vector<16x32xf32>
    %35 = arith.mulf %32, %34 : vector<16x32xf32>
    %c0_17 = arith.constant 0 : index
    %c0_18 = arith.constant 0 : index
    %36 = vector.load %arg7[%c0_17, %c0_18] : memref<1x32xf32, #tpu.memory_space<vmem>>, vector<1x32xf32>
    %37 = vector.broadcast %36 : vector<1x32xf32> to vector<16x32xf32>
    %38 = arith.addf %35, %37 : vector<16x32xf32>
    %c0_19 = arith.constant 0 : index
    %c0_20 = arith.constant 0 : index
    %c0_21 = arith.constant 0 : index
    %39 = vector.load %arg8[%c0_19, %c0_20, %c0_21] : memref<1x16x32xf32, #tpu.memory_space<vmem>>, vector<1x16x32xf32>
    %40 = vector.shape_cast %39 : vector<1x16x32xf32> to vector<16x32xf32>
    %41 = vector.shape_cast %38 : vector<16x32xf32> to vector<1x16x32xf32>
    tpu.vector_store %arg8[%c0_19, %c0_20, %c0_21], %41 {strides = array<i32>} : memref<1x16x32xf32, #tpu.memory_space<vmem>>, vector<1x16x32xf32>,
    return
  }
  func.func @transform_0(%arg0: i32, %arg1: i32) -> (i32, i32, i32, i32) {
    %c0_i32 = arith.constant 0 : i32
    %c0_i32_0 = arith.constant 0 : i32
    %c0_i32_1 = arith.constant 0 : i32
    return %arg0, %c0_i32, %arg1, %c0_i32_0 : i32, i32, i32, i32
  }
  func.func @transform_1(%arg0: i32, %arg1: i32) -> (i32, i32) {
    %c0_i32 = arith.constant 0 : i32
    %c0_i32_0 = arith.constant 0 : i32
    %c0_i32_1 = arith.constant 0 : i32
    return %c0_i32, %c0_i32_0 : i32, i32
  }
  func.func @transform_2(%arg0: i32, %arg1: i32) -> (i32, i32) {
    %c0_i32 = arith.constant 0 : i32
    %c0_i32_0 = arith.constant 0 : i32
    %c0_i32_1 = arith.constant 0 : i32
    return %c0_i32, %c0_i32_0 : i32, i32
  }
  func.func @transform_3(%arg0: i32, %arg1: i32) -> (i32, i32, i32) {
    %c0_i32 = arith.constant 0 : i32
    %c0_i32_0 = arith.constant 0 : i32
    return %arg0, %arg1, %c0_i32 : i32, i32, i32
  }
  func.func @transform_4(%arg0: i32, %arg1: i32) -> (i32, i32) {
    %c0_i32 = arith.constant 0 : i32
    %c0_i32_0 = arith.constant 0 : i32
    %c0_i32_1 = arith.constant 0 : i32
    return %c0_i32, %c0_i32_0 : i32, i32
  }
  func.func @transform_5(%arg0: i32, %arg1: i32) -> (i32, i32) {
    %c0_i32 = arith.constant 0 : i32
    %c0_i32_0 = arith.constant 0 : i32
    %c0_i32_1 = arith.constant 0 : i32
    return %c0_i32, %c0_i32_0 : i32, i32
  }
  func.func @transform_6(%arg0: i32, %arg1: i32) -> (i32, i32, i32) {
    %c0_i32 = arith.constant 0 : i32
    %c0_i32_0 = arith.constant 0 : i32
    return %arg0, %arg1, %c0_i32 : i32, i32, i32
  }
}

module attributes {stable_mosaic.version = 11 : i64} {
  func.func @_dilated_attn_kernel(%arg0: i32, %arg1: i32, %arg2: i32, %arg3: memref<1x1x1x1x4x16xf32, #tpu.memory_space<vmem>>, %arg4: memref<1x1x1x1x4x16xf32, #tpu.memory_space<vmem>>, %arg5: memref<1x1x1x1x4x16xf32, #tpu.memory_space<vmem>>, %arg6: memref<1x1x1x1x4x16xf32, #tpu.memory_space<vmem>>) attributes {dimension_semantics = [#tpu.dimension_semantics<parallel>, #tpu.dimension_semantics<parallel>, #tpu.dimension_semantics<parallel>], iteration_bounds = array<i64: 2, 2, 4>, scalar_prefetch = 0 : i64, scratch_operands = 0 : i64, tpu.core_type = #tpu.core_type<tc>, window_params = [{transform_indices = @transform_0, window_bounds = array<i64: 1, 1, 1, 1, 4, 16>}, {transform_indices = @transform_1, window_bounds = array<i64: 1, 1, 1, 1, 4, 16>}, {transform_indices = @transform_2, window_bounds = array<i64: 1, 1, 1, 1, 4, 16>}, {transform_indices = @transform_3, window_bounds = array<i64: 1, 1, 1, 1, 4, 16>}]} {
    %c0 = arith.constant 0 : index
    %c0_0 = arith.constant 0 : index
    %c0_1 = arith.constant 0 : index
    %c0_2 = arith.constant 0 : index
    %c0_3 = arith.constant 0 : index
    %c0_4 = arith.constant 0 : index
    %0 = vector.load %arg3[%c0, %c0_0, %c0_1, %c0_2, %c0_3, %c0_4] : memref<1x1x1x1x4x16xf32, #tpu.memory_space<vmem>>, vector<1x1x1x1x4x16xf32>
    %1 = vector.shape_cast %0 : vector<1x1x1x1x4x16xf32> to vector<4x16xf32>
    %c0_5 = arith.constant 0 : index
    %c0_6 = arith.constant 0 : index
    %c0_7 = arith.constant 0 : index
    %c0_8 = arith.constant 0 : index
    %c0_9 = arith.constant 0 : index
    %c0_10 = arith.constant 0 : index
    %2 = vector.load %arg4[%c0_5, %c0_6, %c0_7, %c0_8, %c0_9, %c0_10] : memref<1x1x1x1x4x16xf32, #tpu.memory_space<vmem>>, vector<1x1x1x1x4x16xf32>
    %3 = vector.shape_cast %2 : vector<1x1x1x1x4x16xf32> to vector<4x16xf32>
    %c0_11 = arith.constant 0 : index
    %c0_12 = arith.constant 0 : index
    %c0_13 = arith.constant 0 : index
    %c0_14 = arith.constant 0 : index
    %c0_15 = arith.constant 0 : index
    %c0_16 = arith.constant 0 : index
    %4 = vector.load %arg5[%c0_11, %c0_12, %c0_13, %c0_14, %c0_15, %c0_16] : memref<1x1x1x1x4x16xf32, #tpu.memory_space<vmem>>, vector<1x1x1x1x4x16xf32>
    %5 = vector.shape_cast %4 : vector<1x1x1x1x4x16xf32> to vector<4x16xf32>
    %6 = tpu.iota {dimensions = array<i32: 0>} : vector<4x4xi32>
    %7 = tpu.iota {dimensions = array<i32: 1>} : vector<4x4xi32>
    %cst = arith.constant 0xFF800000 : f32
    %8 = vector.broadcast %cst : f32 to vector<4x1xf32>
    %cst_17 = arith.constant 0.000000e+00 : f32
    %9 = vector.broadcast %cst_17 : f32 to vector<4x1xf32>
    %cst_18 = arith.constant 0.000000e+00 : f32
    %10 = vector.broadcast %cst_18 : f32 to vector<4x16xf32>
    %cst_19 = arith.constant dense<0.000000e+00> : vector<4x4xf32>
    %11 = tpu.matmul %1, %3, %cst_19 {dimension_numbers = #tpu.dot_dimension_numbers<[1], [1], [0], [0], [0, 0, 1, 0], [], []>, precision = #tpu.contract_precision<fp32>} : vector<4x16xf32>, vector<4x16xf32>, vector<4x4xf32> -> vector<4x4xf32>
    %cst_20 = arith.constant 2.500000e-01 : f32
    %12 = vector.broadcast %cst_20 : f32 to vector<4x4xf32>
    %13 = arith.mulf %11, %12 : vector<4x4xf32>
    %c0_i32 = arith.constant 0 : i32
    %14 = vector.broadcast %c0_i32 : i32 to vector<4x4xi32>
    %15 = arith.addi %7, %14 : vector<4x4xi32>
    %16 = arith.cmpi sle, %15, %6 : vector<4x4xi32>
    %cst_21 = arith.constant -1.000000e+30 : f32
    %17 = vector.broadcast %cst_21 : f32 to vector<4x4xf32>
    %18 = arith.select %16, %13, %17 : vector<4x4xi1>, vector<4x4xf32>
    %cst_22 = arith.constant dense<0xFF800000> : vector<4xf32>
    %19 = vector.multi_reduction <maximumf>, %18, %cst_22 [1] : vector<4x4xf32> to vector<4xf32>
    %20 = vector.shape_cast %19 : vector<4xf32> to vector<4x1xf32>
    %21 = arith.maximumf %8, %20 : vector<4x1xf32>
    %22 = arith.subf %8, %21 : vector<4x1xf32>
    %23 = math.exp %22 : vector<4x1xf32>
    %24 = vector.broadcast %21 : vector<4x1xf32> to vector<4x4xf32>
    %25 = arith.subf %18, %24 : vector<4x4xf32>
    %26 = math.exp %25 : vector<4x4xf32>
    %27 = arith.mulf %23, %9 : vector<4x1xf32>
    %cst_23 = arith.constant dense<0.000000e+00> : vector<4xf32>
    %28 = vector.multi_reduction <add>, %26, %cst_23 [1] : vector<4x4xf32> to vector<4xf32>
    %29 = vector.shape_cast %28 : vector<4xf32> to vector<4x1xf32>
    %30 = arith.addf %27, %29 : vector<4x1xf32>
    %31 = vector.broadcast %23 : vector<4x1xf32> to vector<4x16xf32>
    %32 = arith.mulf %31, %10 : vector<4x16xf32>
    %cst_24 = arith.constant dense<0.000000e+00> : vector<4x16xf32>
    %33 = tpu.matmul %26, %5, %cst_24 {dimension_numbers = #tpu.dot_dimension_numbers<[1], [0], [0], [1], [0, 0, 1, 1], [], []>, precision = #tpu.contract_precision<fp32>} : vector<4x4xf32>, vector<4x16xf32>, vector<4x16xf32> -> vector<4x16xf32>
    %34 = arith.addf %32, %33 : vector<4x16xf32>
    %35 = vector.broadcast %30 : vector<4x1xf32> to vector<4x16xf32>
    %36 = arith.divf %34, %35 : vector<4x16xf32>
    %cst_25 = arith.constant 5.000000e-01 : f32
    %37 = vector.broadcast %cst_25 : f32 to vector<4x16xf32>
    %38 = arith.mulf %36, %37 : vector<4x16xf32>
    %c0_26 = arith.constant 0 : index
    %c0_27 = arith.constant 0 : index
    %c0_28 = arith.constant 0 : index
    %c0_29 = arith.constant 0 : index
    %c0_30 = arith.constant 0 : index
    %c0_31 = arith.constant 0 : index
    %39 = vector.load %arg6[%c0_26, %c0_27, %c0_28, %c0_29, %c0_30, %c0_31] : memref<1x1x1x1x4x16xf32, #tpu.memory_space<vmem>>, vector<1x1x1x1x4x16xf32>
    %40 = vector.shape_cast %39 : vector<1x1x1x1x4x16xf32> to vector<4x16xf32>
    %41 = vector.shape_cast %38 : vector<4x16xf32> to vector<1x1x1x1x4x16xf32>
    tpu.vector_store %arg6[%c0_26, %c0_27, %c0_28, %c0_29, %c0_30, %c0_31], %41 {strides = array<i32>} : memref<1x1x1x1x4x16xf32, #tpu.memory_space<vmem>>, vector<1x1x1x1x4x16xf32>,
    return
  }
  func.func @transform_0(%arg0: i32, %arg1: i32, %arg2: i32) -> (i32, i32, i32, i32, i32, i32) {
    %c1_i32 = arith.constant 1 : i32
    %c0_i32 = arith.constant 0 : i32
    %0 = arith.cmpi eq, %c1_i32, %c0_i32 : i32
    %c1_i32_0 = arith.constant 1 : i32
    %1 = arith.select %0, %c1_i32_0, %c1_i32 : i32
    %2 = arith.remsi %arg1, %1 : i32
    %c0_i32_1 = arith.constant 0 : i32
    %3 = arith.cmpi ne, %2, %c0_i32_1 : i32
    %c0_i32_2 = arith.constant 0 : i32
    %4 = arith.cmpi slt, %2, %c0_i32_2 : i32
    %c0_i32_3 = arith.constant 0 : i32
    %5 = arith.cmpi slt, %1, %c0_i32_3 : i32
    %6 = arith.xori %4, %5 : i1
    %7 = arith.andi %6, %3 : i1
    %8 = arith.addi %2, %1 : i32
    %9 = arith.select %7, %8, %2 : i32
    %c0_i32_4 = arith.constant 0 : i32
    %c0_i32_5 = arith.constant 0 : i32
    %c0_i32_6 = arith.constant 0 : i32
    return %arg0, %arg1, %arg2, %9, %c0_i32_4, %c0_i32_5 : i32, i32, i32, i32, i32, i32
  }
  func.func @transform_1(%arg0: i32, %arg1: i32, %arg2: i32) -> (i32, i32, i32, i32, i32, i32) {
    %c1_i32 = arith.constant 1 : i32
    %c0_i32 = arith.constant 0 : i32
    %0 = arith.cmpi eq, %c1_i32, %c0_i32 : i32
    %c1_i32_0 = arith.constant 1 : i32
    %1 = arith.select %0, %c1_i32_0, %c1_i32 : i32
    %2 = arith.remsi %arg1, %1 : i32
    %c0_i32_1 = arith.constant 0 : i32
    %3 = arith.cmpi ne, %2, %c0_i32_1 : i32
    %c0_i32_2 = arith.constant 0 : i32
    %4 = arith.cmpi slt, %2, %c0_i32_2 : i32
    %c0_i32_3 = arith.constant 0 : i32
    %5 = arith.cmpi slt, %1, %c0_i32_3 : i32
    %6 = arith.xori %4, %5 : i1
    %7 = arith.andi %6, %3 : i1
    %8 = arith.addi %2, %1 : i32
    %9 = arith.select %7, %8, %2 : i32
    %c0_i32_4 = arith.constant 0 : i32
    %c0_i32_5 = arith.constant 0 : i32
    %c0_i32_6 = arith.constant 0 : i32
    return %arg0, %arg1, %arg2, %9, %c0_i32_4, %c0_i32_5 : i32, i32, i32, i32, i32, i32
  }
  func.func @transform_2(%arg0: i32, %arg1: i32, %arg2: i32) -> (i32, i32, i32, i32, i32, i32) {
    %c1_i32 = arith.constant 1 : i32
    %c0_i32 = arith.constant 0 : i32
    %0 = arith.cmpi eq, %c1_i32, %c0_i32 : i32
    %c1_i32_0 = arith.constant 1 : i32
    %1 = arith.select %0, %c1_i32_0, %c1_i32 : i32
    %2 = arith.remsi %arg1, %1 : i32
    %c0_i32_1 = arith.constant 0 : i32
    %3 = arith.cmpi ne, %2, %c0_i32_1 : i32
    %c0_i32_2 = arith.constant 0 : i32
    %4 = arith.cmpi slt, %2, %c0_i32_2 : i32
    %c0_i32_3 = arith.constant 0 : i32
    %5 = arith.cmpi slt, %1, %c0_i32_3 : i32
    %6 = arith.xori %4, %5 : i1
    %7 = arith.andi %6, %3 : i1
    %8 = arith.addi %2, %1 : i32
    %9 = arith.select %7, %8, %2 : i32
    %c0_i32_4 = arith.constant 0 : i32
    %c0_i32_5 = arith.constant 0 : i32
    %c0_i32_6 = arith.constant 0 : i32
    return %arg0, %arg1, %arg2, %9, %c0_i32_4, %c0_i32_5 : i32, i32, i32, i32, i32, i32
  }
  func.func @transform_3(%arg0: i32, %arg1: i32, %arg2: i32) -> (i32, i32, i32, i32, i32, i32) {
    %c1_i32 = arith.constant 1 : i32
    %c0_i32 = arith.constant 0 : i32
    %0 = arith.cmpi eq, %c1_i32, %c0_i32 : i32
    %c1_i32_0 = arith.constant 1 : i32
    %1 = arith.select %0, %c1_i32_0, %c1_i32 : i32
    %2 = arith.remsi %arg1, %1 : i32
    %c0_i32_1 = arith.constant 0 : i32
    %3 = arith.cmpi ne, %2, %c0_i32_1 : i32
    %c0_i32_2 = arith.constant 0 : i32
    %4 = arith.cmpi slt, %2, %c0_i32_2 : i32
    %c0_i32_3 = arith.constant 0 : i32
    %5 = arith.cmpi slt, %1, %c0_i32_3 : i32
    %6 = arith.xori %4, %5 : i1
    %7 = arith.andi %6, %3 : i1
    %8 = arith.addi %2, %1 : i32
    %9 = arith.select %7, %8, %2 : i32
    %c0_i32_4 = arith.constant 0 : i32
    %c0_i32_5 = arith.constant 0 : i32
    %c0_i32_6 = arith.constant 0 : i32
    return %arg0, %arg1, %arg2, %9, %c0_i32_4, %c0_i32_5 : i32, i32, i32, i32, i32, i32
  }
}

module attributes {stable_mosaic.version = 11 : i64} {
  func.func @_mlp_ln_kernel(%arg0: i32, %arg1: i32, %arg2: memref<32x32xf32, #tpu.memory_space<vmem>>, %arg3: memref<32x128xf32, #tpu.memory_space<vmem>>, %arg4: memref<1x128xf32, #tpu.memory_space<vmem>>, %arg5: memref<128x32xf32, #tpu.memory_space<vmem>>, %arg6: memref<1x32xf32, #tpu.memory_space<vmem>>, %arg7: memref<1x32xf32, #tpu.memory_space<vmem>>, %arg8: memref<1x32xf32, #tpu.memory_space<vmem>>, %arg9: memref<32x32xf32, #tpu.memory_space<vmem>>, %arg10: memref<32x32xf32, #tpu.memory_space<vmem>>) attributes {dimension_semantics = [#tpu.dimension_semantics<parallel>, #tpu.dimension_semantics<arbitrary>], iteration_bounds = array<i64: 1, 1>, scalar_prefetch = 0 : i64, scratch_operands = 1 : i64, tpu.core_type = #tpu.core_type<tc>, window_params = [{transform_indices = @transform_0, window_bounds = array<i64: 32, 32>}, {transform_indices = @transform_1, window_bounds = array<i64: 32, 128>}, {transform_indices = @transform_2, window_bounds = array<i64: 1, 128>}, {transform_indices = @transform_3, window_bounds = array<i64: 128, 32>}, {pipeline_mode = #tpu.pipeline_mode<synchronous>, transform_indices = @transform_4, window_bounds = array<i64: 1, 32>}, {pipeline_mode = #tpu.pipeline_mode<synchronous>, transform_indices = @transform_5, window_bounds = array<i64: 1, 32>}, {pipeline_mode = #tpu.pipeline_mode<synchronous>, transform_indices = @transform_6, window_bounds = array<i64: 1, 32>}, {transform_indices = @transform_7, window_bounds = array<i64: 32, 32>}]} {
    %c0_i32 = arith.constant 0 : i32
    %0 = arith.cmpi eq, %arg1, %c0_i32 : i32
    %1 = arith.extui %0 : i1 to i32
    %c0_i32_0 = arith.constant 0 : i32
    %2 = arith.cmpi ne, %1, %c0_i32_0 : i32
    scf.if %2 {
      %cst_18 = arith.constant 0.000000e+00 : f32
      %25 = vector.broadcast %cst_18 : f32 to vector<32x32xf32>
      %c0_19 = arith.constant 0 : index
      %c0_20 = arith.constant 0 : index
      %26 = vector.load %arg10[%c0_19, %c0_20] : memref<32x32xf32, #tpu.memory_space<vmem>>, vector<32x32xf32>
      tpu.vector_store %arg10[%c0_19, %c0_20], %25 {strides = array<i32>} : memref<32x32xf32, #tpu.memory_space<vmem>>, vector<32x32xf32>,
    } else {
    }
    %c0 = arith.constant 0 : index
    %c0_1 = arith.constant 0 : index
    %3 = vector.load %arg2[%c0, %c0_1] : memref<32x32xf32, #tpu.memory_space<vmem>>, vector<32x32xf32>
    %c0_2 = arith.constant 0 : index
    %c0_3 = arith.constant 0 : index
    %4 = vector.load %arg3[%c0_2, %c0_3] : memref<32x128xf32, #tpu.memory_space<vmem>>, vector<32x128xf32>
    %cst = arith.constant dense<0.000000e+00> : vector<32x128xf32>
    %5 = tpu.matmul %3, %4, %cst {dimension_numbers = #tpu.dot_dimension_numbers<[1], [0], [0], [1], [0, 0, 1, 1], [], []>, precision = #tpu.contract_precision<fp32>} : vector<32x32xf32>, vector<32x128xf32>, vector<32x128xf32> -> vector<32x128xf32>
    %c0_4 = arith.constant 0 : index
    %c0_5 = arith.constant 0 : index
    %6 = vector.load %arg4[%c0_4, %c0_5] : memref<1x128xf32, #tpu.memory_space<vmem>>, vector<1x128xf32>
    %7 = vector.broadcast %6 : vector<1x128xf32> to vector<32x128xf32>
    %8 = arith.addf %5, %7 : vector<32x128xf32>
    %cst_6 = arith.constant 5.000000e-01 : f32
    %9 = vector.broadcast %cst_6 : f32 to vector<32x128xf32>
    %10 = arith.mulf %9, %8 : vector<32x128xf32>
    %cst_7 = arith.constant 0.707106769 : f32
    %11 = vector.broadcast %cst_7 : f32 to vector<32x128xf32>
    %12 = arith.mulf %8, %11 : vector<32x128xf32>
    %13 = math.erf %12 : vector<32x128xf32>
    %cst_8 = arith.constant 1.000000e+00 : f32
    %14 = vector.broadcast %cst_8 : f32 to vector<32x128xf32>
    %15 = arith.addf %14, %13 : vector<32x128xf32>
    %16 = arith.mulf %10, %15 : vector<32x128xf32>
    %c0_9 = arith.constant 0 : index
    %c0_10 = arith.constant 0 : index
    %17 = vector.load %arg10[%c0_9, %c0_10] : memref<32x32xf32, #tpu.memory_space<vmem>>, vector<32x32xf32>
    %c0_11 = arith.constant 0 : index
    %c0_12 = arith.constant 0 : index
    %18 = vector.load %arg5[%c0_11, %c0_12] : memref<128x32xf32, #tpu.memory_space<vmem>>, vector<128x32xf32>
    %cst_13 = arith.constant dense<0.000000e+00> : vector<32x32xf32>
    %19 = tpu.matmul %16, %18, %cst_13 {dimension_numbers = #tpu.dot_dimension_numbers<[1], [0], [0], [1], [0, 0, 1, 1], [], []>, precision = #tpu.contract_precision<fp32>} : vector<32x128xf32>, vector<128x32xf32>, vector<32x32xf32> -> vector<32x32xf32>
    %20 = arith.addf %17, %19 : vector<32x32xf32>
    %c0_14 = arith.constant 0 : index
    %c0_15 = arith.constant 0 : index
    %21 = vector.load %arg10[%c0_14, %c0_15] : memref<32x32xf32, #tpu.memory_space<vmem>>, vector<32x32xf32>
    tpu.vector_store %arg10[%c0_14, %c0_15], %20 {strides = array<i32>} : memref<32x32xf32, #tpu.memory_space<vmem>>, vector<32x32xf32>,
    %c0_i32_16 = arith.constant 0 : i32
    %22 = arith.cmpi eq, %arg1, %c0_i32_16 : i32
    %23 = arith.extui %22 : i1 to i32
    %c0_i32_17 = arith.constant 0 : i32
    %24 = arith.cmpi ne, %23, %c0_i32_17 : i32
    scf.if %24 {
      %c0_18 = arith.constant 0 : index
      %c0_19 = arith.constant 0 : index
      %25 = vector.load %arg10[%c0_18, %c0_19] : memref<32x32xf32, #tpu.memory_space<vmem>>, vector<32x32xf32>
      %26 = arith.addf %3, %25 : vector<32x32xf32>
      %c0_20 = arith.constant 0 : index
      %c0_21 = arith.constant 0 : index
      %27 = vector.load %arg6[%c0_20, %c0_21] : memref<1x32xf32, #tpu.memory_space<vmem>>, vector<1x32xf32>
      %28 = vector.broadcast %27 : vector<1x32xf32> to vector<32x32xf32>
      %29 = arith.addf %26, %28 : vector<32x32xf32>
      %cst_22 = arith.constant dense<0.000000e+00> : vector<32xf32>
      %30 = vector.multi_reduction <add>, %29, %cst_22 [1] : vector<32x32xf32> to vector<32xf32>
      %31 = vector.shape_cast %30 : vector<32xf32> to vector<32x1xf32>
      %cst_23 = arith.constant 3.200000e+01 : f32
      %32 = vector.broadcast %cst_23 : f32 to vector<32x1xf32>
      %33 = arith.divf %31, %32 : vector<32x1xf32>
      %34 = vector.broadcast %33 : vector<32x1xf32> to vector<32x32xf32>
      %35 = arith.subf %29, %34 : vector<32x32xf32>
      %36 = arith.mulf %35, %35 : vector<32x32xf32>
      %cst_24 = arith.constant dense<0.000000e+00> : vector<32xf32>
      %37 = vector.multi_reduction <add>, %36, %cst_24 [1] : vector<32x32xf32> to vector<32xf32>
      %38 = vector.shape_cast %37 : vector<32xf32> to vector<32x1xf32>
      %cst_25 = arith.constant 3.200000e+01 : f32
      %39 = vector.broadcast %cst_25 : f32 to vector<32x1xf32>
      %40 = arith.divf %38, %39 : vector<32x1xf32>
      %41 = vector.broadcast %33 : vector<32x1xf32> to vector<32x32xf32>
      %42 = arith.subf %29, %41 : vector<32x32xf32>
      %cst_26 = arith.constant 9.99999974E-6 : f32
      %43 = vector.broadcast %cst_26 : f32 to vector<32x1xf32>
      %44 = arith.addf %40, %43 : vector<32x1xf32>
      %45 = math.rsqrt %44 : vector<32x1xf32>
      %46 = vector.broadcast %45 : vector<32x1xf32> to vector<32x32xf32>
      %47 = arith.mulf %42, %46 : vector<32x32xf32>
      %c0_27 = arith.constant 0 : index
      %c0_28 = arith.constant 0 : index
      %48 = vector.load %arg7[%c0_27, %c0_28] : memref<1x32xf32, #tpu.memory_space<vmem>>, vector<1x32xf32>
      %49 = vector.broadcast %48 : vector<1x32xf32> to vector<32x32xf32>
      %50 = arith.mulf %47, %49 : vector<32x32xf32>
      %c0_29 = arith.constant 0 : index
      %c0_30 = arith.constant 0 : index
      %51 = vector.load %arg8[%c0_29, %c0_30] : memref<1x32xf32, #tpu.memory_space<vmem>>, vector<1x32xf32>
      %52 = vector.broadcast %51 : vector<1x32xf32> to vector<32x32xf32>
      %53 = arith.addf %50, %52 : vector<32x32xf32>
      %c0_31 = arith.constant 0 : index
      %c0_32 = arith.constant 0 : index
      %54 = vector.load %arg9[%c0_31, %c0_32] : memref<32x32xf32, #tpu.memory_space<vmem>>, vector<32x32xf32>
      tpu.vector_store %arg9[%c0_31, %c0_32], %53 {strides = array<i32>} : memref<32x32xf32, #tpu.memory_space<vmem>>, vector<32x32xf32>,
    } else {
    }
    return
  }
  func.func @transform_0(%arg0: i32, %arg1: i32) -> (i32, i32) {
    %c0_i32 = arith.constant 0 : i32
    %c0_i32_0 = arith.constant 0 : i32
    return %arg0, %c0_i32 : i32, i32
  }
  func.func @transform_1(%arg0: i32, %arg1: i32) -> (i32, i32) {
    %c0_i32 = arith.constant 0 : i32
    %c0_i32_0 = arith.constant 0 : i32
    return %c0_i32, %arg1 : i32, i32
  }
  func.func @transform_2(%arg0: i32, %arg1: i32) -> (i32, i32) {
    %c0_i32 = arith.constant 0 : i32
    %c0_i32_0 = arith.constant 0 : i32
    return %c0_i32, %arg1 : i32, i32
  }
  func.func @transform_3(%arg0: i32, %arg1: i32) -> (i32, i32) {
    %c0_i32 = arith.constant 0 : i32
    %c0_i32_0 = arith.constant 0 : i32
    return %arg1, %c0_i32 : i32, i32
  }
  func.func @transform_4(%arg0: i32, %arg1: i32) -> (i32, i32) {
    %c0_i32 = arith.constant 0 : i32
    %c0_i32_0 = arith.constant 0 : i32
    %c0_i32_1 = arith.constant 0 : i32
    return %c0_i32, %c0_i32_0 : i32, i32
  }
  func.func @transform_5(%arg0: i32, %arg1: i32) -> (i32, i32) {
    %c0_i32 = arith.constant 0 : i32
    %c0_i32_0 = arith.constant 0 : i32
    %c0_i32_1 = arith.constant 0 : i32
    return %c0_i32, %c0_i32_0 : i32, i32
  }
  func.func @transform_6(%arg0: i32, %arg1: i32) -> (i32, i32) {
    %c0_i32 = arith.constant 0 : i32
    %c0_i32_0 = arith.constant 0 : i32
    %c0_i32_1 = arith.constant 0 : i32
    return %c0_i32, %c0_i32_0 : i32, i32
  }
  func.func @transform_7(%arg0: i32, %arg1: i32) -> (i32, i32) {
    %c0_i32 = arith.constant 0 : i32
    %c0_i32_0 = arith.constant 0 : i32
    return %arg0, %c0_i32 : i32, i32
  }
}

</mosaic_0001>

<bundles_post_ra>
// kernel: longnet_layer.7
= control target key start
LH: loop header
LB: loop body
LE: loop exit
PB: predicated region body
PF: predicated region fallthrough
CT: control target
= control target key end

     0   :  { %s2317_s15 = smov 0   ;;  %s2319_s16 = smov 0   ;;  %s2437_s0 = inlined_call_operand.vmem [shape: f32[2,2,1,2,8,16], index: 0, kind: input, shape index: {}]   ;;  %s2438_s1 = inlined_call_operand.vmem [shape: f32[2,2,1,2,8,16], index: 1, kind: input, shape index: {}]   ;;  %s2439_s2 = inlined_call_operand.vmem [shape: f32[2,2,1,2,8,16], index: 2, kind: input, shape index: {}]   ;;  %s2440_s3 = inlined_call_operand.vmem [shape: f32[2,2,1,2,8,16], index: 3, kind: input, shape index: {}, may-alias: {3,4}]   ;;  %s2441_s4 = inlined_call_operand.vmem [shape: f32[2,2,1,2,8,16], index: 4, kind: output, shape index: {}, may-alias: {3,4}]  }
   0x1   :  { %s2321_s17 = smov 0   ;;  %s2323_s18 = smov 0  }
   0x2   :  { %s2325_s19 = smov 0  }
   0x3 LB: > { %s29_s20 = sadd.s32 1, %s2280_s17  ;;  %s33_s21 = sadd.s32 1, %s2284_s18  ;;  %s2288_s19 = sphi %s2325_s19, %s14_s19   ;;  %s2284_s18 = sphi %s2323_s18, %s2445_s18   ;;  %s2280_s17 = sphi %s2321_s17, %s2444_s17   ;;  %s2276_s16 = sphi %s2319_s16, %s2443_s16   ;;  %s2272_s15 = sphi %s2317_s15, %s2442_s15  }
   0x4   : > { %p31_p0 = scmp.ge.s32.totalorder %s29_s20, 2  ;;  %p2085_p1 = scmp.ge.s32.totalorder %s2288_s19, 1 }
   0x5   : > { %p501_p2 = scmp.lt.s32.totalorder %s2288_s19, 5 }
   0x6   : > { %s2447_s20 = smov (%p31_p0, %s29_s20), 0  ;;  %s2449_s21 = smov (!%p31_p0, %s33_s21), %s2284_s18 }
   0x7   : > { %p502_p3 = pnand %p2085_p1, %p501_p2  ;;  %p35_p4 = scmp.ge.s32.totalorder %s2449_s21, 2 }
   0x8   : > { %p657_p5 = scmp.lt.s32.totalorder (!%p502_p3), %s2272_s15, 0  ;;  %s658_s22 = ssub.s32 (!%p502_p3), 0, %s2272_s15 }
   0x9   : > { %s2451_s21 = smov (%p35_p4, %s2449_s21), 0  ;;  %505 = sbr.rel (%p502_p3) target bundleno = 628 (0x274), region = 36 }
   0xa   : > { %s2086_s23 = smin.u32 (!%p502_p3), %s2272_s15, %s658_s22  ;;  %p669_p6 = scmp.lt.s32.totalorder (!%p502_p3), %s2276_s16, 1 }
   0xb   : > { %s660_s24 = sand.u32 (!%p502_p3), 1, %s2086_s23   ;;  %p671_p7 = scmp.lt.s32.totalorder (!%p502_p3), %s2272_s15, 1 }
   0xc   : > { %s661_s25 = ssub.s32 (!%p502_p3), 0, %s660_s24 }
   0xe   : > { %v2290_v0 = vmov 0.0   ;;  %vm2291_vm0 = vmmov 0   ;;  %s2453_s25 = smov (!%p657_p5, %s661_s25), %s660_s24  ;;  %s2455_s16 = smov (!%p669_p6, %s2276_s16), 1  ;;  %vm864_vm1 = vcmask 130048   ;;  %v860_v21 = vlaneseq }
   0xf   : > { %2142 = vmatprep.subr.mxu0 %v2290_v0  ;;  %2144 = vmatprep.mubr.msk.f32.mxu0 %vm2291_vm0, %v2290_v0  ;;  %p2088_p8 = scmp.lt.s32.totalorder %s2453_s25, 0  ;;  %s667_s26 = sadd.s32 2, %s2453_s25  ;;  %vm1320_vm3 = vcmask 64512  }
  0x10   : > { %2147 = vmatprep.subr.mxu1 %v2290_v0  ;;  %2149 = vmatprep.mubr.msk.f32.mxu1 %vm2291_vm0, %v2290_v0  ;;  %s2457_s15 = smov (!%p671_p7, %s2272_s15), 1  ;;  %s2090_s28 = sshll.u32 %s2455_s16, 2  ;;  %v861_v28 = vshrl.u32 %v860_v21, 7  ;;  %v863_v29 = vand.u32 127, %v860_v21 }
  0x11   : > { %s2459_s26 = smov (!%p2088_p8, %s667_s26), %s2453_s25  ;;  %s2089_s27 = sshll.u32 %s2457_s15, 1 }
  0x12   : > { %p675_p9 = scmp.lt.s32.totalorder %s2459_s26, 1  ;;  %vm1318_vm2 = vcmp.le.s32.totalorder %v863_v29, %v861_v28 }
  0x14   : > { %s2461_s26 = smov (!%p675_p9, %s2459_s26), 1 }
  0x15   : > { %s680_s29 = sadd.s32 %s2089_s27, %s2461_s26 }
  0x16   : > { %s682_s30 = sadd.s32 %s2090_s28, %s680_s29 }
  0x17   : > { %s2364_s5 = sshll.u32 %s682_s30, 3 }
  0x18   : > { %s724_s8 = scalar_lea.vmem %s2438_s1, %s2364_s5  ;;  %s684_s11 = scalar_lea.vmem %s2437_s0, %s2364_s5 }
  0x19   : > { %v858_v1 = vld [vmem:[%s724_s8] sm:$0xff]  ;;  %s764_s14 = scalar_lea.vmem %s2439_s2, %s2364_s5  ;;  %s804_s22 = scalar_lea.vmem %s2440_s3, %s2364_s5 }
  0x1a   : > { %v857_v2 = vld [vmem:[%s684_s11] sm:$0xff]  ;;  %v869_v3 = vsel %vm864_vm1, %v858_v1, 0  ;;  %s844_s25 = scalar_lea.vmem %s2441_s4, %s2364_s5 }
  0x1b   : > { %v866_v4 = vsel %vm864_vm1, %v857_v2, 0  ;;  %v902_v5 = vand.u32 4294901760, %v869_v3  ;;  %v859_v38 = vld [vmem:[%s764_s14] sm:$0xff] }
  0x1c   : > { %v937_v6 = vand.u32 4294901760, %v866_v4  ;;  %v1369_v39 = vand.u32 4294901760, %v859_v38 }
  0x1d   : > { %2143 = vmatpush3.xpose.msra.mxu0 %v902_v5  ;;  %v979_v8 = vsub.f32 %v869_v3, %v902_v5 }
  0x1e   : > { %v938_v7 = vsub.f32 %v866_v4, %v937_v6  ;;  %2152 = vmatprep.subr.mxu0 %v2290_v0  ;;  %v1446_v40 = vsub.f32 %v859_v38, %v1369_v39 }
  0x1f   : > { %v980_v10 = vand.u32 4294901760, %v979_v8 }
  0x20   : > { %v939_v9 = vand.u32 4294901760, %v938_v7  ;;  %v1447_v41 = vand.u32 4294901760, %v1446_v40 }
  0x21   : > { %v981_v12 = vsub.f32 %v979_v8, %v980_v10 }
  0x22   : > { %v940_v11 = vsub.f32 %v938_v7, %v939_v9  ;;  %v1448_v42 = vsub.f32 %v1446_v40, %v1447_v41 }
  0x23   : > { %v982_v14 = vand.u32 4294901760, %v981_v12 }
  0x24   : > { %v941_v13 = vand.u32 4294901760, %v940_v11  ;;  %v1449_v43 = vand.u32 4294901760, %v1448_v42 }
  0x25   : > { %2148 = vmatpush3.xpose.msra.mxu1 %v982_v14 }
  0x26   : > { %2145 = vmatmul.mubr.f32.vlgmr.msra.gmra.mxu0 %v941_v13  ;;  %2157 = vmatprep.subr.mxu1 %v2290_v0 }
  0x27   : > { %2153 = vmatpush3.xpose.msra.mxu0 %v979_v8  ;;  %2154 = vmatprep.mubr.msk.f32.mxu0 %vm2291_vm0, %v2290_v0 }
  0x28   : > { %2162 = vmatprep.subr.mxu0 %v2290_v0  ;;  %2150 = vmatmul.mubr.f32.vlgmr.msra.gmra.mxu1 %v937_v6 }
  0x29   : > { %2158 = vmatpush3.xpose.msra.mxu1 %v902_v5  ;;  %2159 = vmatprep.mubr.msk.f32.mxu1 %vm2291_vm0, %v2290_v0 }
  0x2a   : > { %2155 = vmatmul.mubr.f32.vlgmr.msra.gmra.mxu0 %v938_v7  ;;  %2167 = vmatprep.subr.mxu1 %v2290_v0 }
  0x2b   : > { %2163 = vmatpush3.xpose.msra.mxu0 %v980_v10  ;;  %2164 = vmatprep.mubr.msk.f32.mxu0 %vm2291_vm0, %v2290_v0 }
  0x2c   : > { %2160 = vmatmul.mubr.f32.vlgmr.msra.gmra.mxu1 %v939_v9  ;;  %2172 = vmatprep.subr.mxu0 %v2290_v0 }
  0x2d   : > { %2168 = vmatpush3.xpose.msra.mxu1 %v902_v5  ;;  %2169 = vmatprep.mubr.msk.f32.mxu1 %vm2291_vm0, %v2290_v0 }
  0x2e   : > { %2165 = vmatmul.mubr.f32.vlgmr.msra.gmra.mxu0 %v937_v6  ;;  %2177 = vmatprep.subr.mxu1 %v2290_v0 }
  0x2f   : > { %2174 = vmatprep.mubr.msk.f32.mxu0 %vm2291_vm0, %v2290_v0  ;;  %2173 = vmatpush3.msra.mxu0 %v1369_v39 }
  0x30   : > { %2170 = vmatmul.mubr.f32.vlgmr.msra.gmra.mxu1 %v937_v6  ;;  %2182 = vmatprep.subr.mxu0 %v2290_v0 }
  0x31   : > { %2179 = vmatprep.mubr.msk.f32.mxu1 %vm2291_vm0, %v2290_v0  ;;  %2178 = vmatpush3.msra.mxu1 %v1449_v43 }
  0x32   : > { %2187 = vmatprep.subr.mxu1 %v2290_v0 }
  0xe6   : > { %v943_v15 = vpop.f32.mrf.mxu0 }
  0xe8   : > { %v2146_v16 = vpop.f32.mrf.mxu0  ;;  %v1019_v17 = vpop.f32.mrf.mxu1 }
  0xe9   : > { %v1020_v18 = vadd.f32 %v1019_v17, %v943_v15  ;;  %v1787_v17 = vld [vmem:[%s804_s22] sm:$0xff] }
  0xea   : > { %v1093_v19 = vpop.f32.mrf.mxu0  ;;  %v2151_v20 = vpop.f32.mrf.mxu1 }
  0xeb   : > { %v1094_v22 = vadd.f32 %v1093_v19, %v1020_v18 }
  0xec   : > { %v2156_v23 = vpop.f32.mrf.mxu0  ;;  %v1167_v24 = vpop.f32.mrf.mxu1 }
  0xed   : > { %v1168_v25 = vadd.f32 %v1167_v24, %v1094_v22 }
  0xee   : > { %v1241_v26 = vpop.f32.mrf.mxu0  ;;  %v2161_v27 = vpop.f32.mrf.mxu1 }
  0xef   : > { %v1242_v30 = vadd.f32 %v1241_v26, %v1168_v25 }
  0xf0   : > { %v2166_v31 = vpop.f32.mrf.mxu0  ;;  %v1313_v32 = vpop.f32.mrf.mxu1 }
  0xf1   : > { %v1314_v33 = vadd.f32 %v1313_v32, %v1242_v30 }
  0xf2   : > { %v2171_v34 = vpop.f32.mrf.mxu1 }
  0xf3   : > { %v1317_v35 = vmul.f32 0.25, %v1314_v33 }
  0xf5   : > { %v1319_v36 = vsel %vm1318_vm2, %v1317_v35, -1e+30 }
  0xf6   : > { %v1321_v37 = vsel %vm1320_vm3, %v1319_v36, -inf }
  0xf7   : > { %1322 = vmax.xlane.f32.xlu0 %v1321_v37 }
 0x180   : > { %v1323_v44 = vpop.xlane.xlu0 %1322 }
 0x181   : > { %v1327_v45 = vsub.f32 %v1319_v36, %v1323_v44  ;;  %v1324_v55 = vsub.f32 -inf, %v1323_v44 }
 0x183   : > { %v1328_v46 = vmul.f32 1.442695, %v1327_v45  ;;  %v1325_v56 = vmul.f32 1.442695, %v1324_v55 }
 0x185   : > { %2244 = vpow2.f32 %v1328_v46 }
 0x186   : > { %2246 = vpow2.f32 %v1325_v56 }
 0x192   : > { %v2245_v47 = vpop.eup %2244 }
 0x193   : > { %v1331_v48 = vsel %vm1320_vm3, %v2245_v47, 0.0  ;;  %v1336_v49 = vsel %vm1320_vm3, %v2245_v47, 0  ;;  %v2247_v57 = vpop.eup %2246 }
 0x194   : > { %1332 = vadd.xlane.f32.xlu0 %v1331_v48  ;;  %v1404_v50 = vand.u32 4294901760, %v1336_v49  ;;  %v1330_v61 = vmul.f32 0.0, %v2247_v57 }
 0x196   : > { %v1405_v51 = vsub.f32 %v1336_v49, %v1404_v50  ;;  %2180 = vmatmul.mubr.f32.vlgmr.msra.gmra.mxu1 %v1404_v50 }
 0x197   : > { %2188 = vmatpush3.msra.mxu1 %v1369_v39  ;;  %2189 = vmatprep.mubr.msk.f32.mxu1 %vm2291_vm0, %v2290_v0 }
 0x198   : > { %v1406_v52 = vand.u32 4294901760, %v1405_v51  ;;  %2197 = vmatprep.subr.mxu1 %v2290_v0 }
 0x19a   : > { %2190 = vmatmul.mubr.f32.vlgmr.msra.gmra.mxu1 %v1406_v52  ;;  %v1407_v53 = vsub.f32 %v1405_v51, %v1406_v52 }
 0x19b   : > { %2198 = vmatpush3.msra.mxu1 %v1369_v39  ;;  %2199 = vmatprep.mubr.msk.f32.mxu1 %vm2291_vm0, %v2290_v0 }
 0x19c   : > { %v1408_v54 = vand.u32 4294901760, %v1407_v53 }
 0x19e   : > { %2175 = vmatmul.mubr.f32.vlgmr.msra.gmra.mxu0 %v1408_v54  ;;  %2200 = vmatmul.mubr.f32.vlgmr.msra.gmra.mxu1 %v1404_v50 }
 0x19f   : > { %2183 = vmatpush3.msra.mxu0 %v1446_v40  ;;  %2184 = vmatprep.mubr.msk.f32.mxu0 %vm2291_vm0, %v2290_v0 }
 0x1a0   : > { %2192 = vmatprep.subr.mxu0 %v2290_v0 }
 0x1a2   : > { %2185 = vmatmul.mubr.f32.vlgmr.msra.gmra.mxu0 %v1405_v51 }
 0x1a3   : > { %2193 = vmatpush3.msra.mxu0 %v1447_v41  ;;  %2194 = vmatprep.mubr.msk.f32.mxu0 %vm2291_vm0, %v2290_v0 }
 0x1a6   : > { %2195 = vmatmul.mubr.f32.vlgmr.msra.gmra.mxu0 %v1404_v50 }
 0x21d   : > { %v1333_v59 = vpop.xlane.xlu0 %1332 }
 0x21e   : > { %v1334_v63 = vadd.f32 %v1333_v59, %v1330_v61 }
 0x220   : > { %2248 = vrcp.f32 %v1334_v63 }
 0x22d   : > { %v2249_v15 = vpop.eup %2248 }
 0x256   : > { %v1486_v58 = vpop.f32.mrf.mxu1 }
 0x258   : > { %v2181_v60 = vpop.f32.mrf.mxu1 }
 0x25a   : > { %v1634_v62 = vpop.f32.mrf.mxu1 }
 0x25c   : > { %v2191_v1 = vpop.f32.mrf.mxu1 }
 0x25e   : > { %v1410_v2 = vpop.f32.mrf.mxu0  ;;  %v1780_v3 = vpop.f32.mrf.mxu1 }
 0x25f   : > { %v1487_v0 = vadd.f32 %v1486_v58, %v1410_v2 }
 0x260   : > { %v2176_v4 = vpop.f32.mrf.mxu0  ;;  %v2201_v5 = vpop.f32.mrf.mxu1 }
 0x262   : > { %v1560_v6 = vpop.f32.mrf.mxu0 }
 0x263   : > { %v1561_v7 = vadd.f32 %v1560_v6, %v1487_v0 }
 0x264   : > { %v2186_v8 = vpop.f32.mrf.mxu0 }
 0x265   : > { %v1635_v9 = vadd.f32 %v1634_v62, %v1561_v7 }
 0x266   : > { %v1708_v10 = vpop.f32.mrf.mxu0 }
 0x267   : > { %v1709_v11 = vadd.f32 %v1708_v10, %v1635_v9 }
 0x268   : > { %v2196_v12 = vpop.f32.mrf.mxu0 }
 0x269   : > { %v1781_v13 = vadd.f32 %v1780_v3, %v1709_v11 }
 0x26b   : > { %v1784_v14 = vadd.f32 %v1781_v13, %v1330_v61 }
 0x26d   : > { %v1786_v16 = vmul.f32 %v2249_v15, %v1784_v14 }
 0x26f   : > { %v1788_v18 = vmul.f32 0.5, %v1786_v16 }
 0x271   : > { %v1789_v19 = vadd.f32 %v1788_v18, %v1787_v17 }
 0x273   : > { %1790 = vst.msk [vmem:[%s844_s25] sm:$0xff] %vm864_vm1, %v1789_v19 }
 0x274 PF: > { %s14_s19 = sadd.s32 1, %s2288_s19   ;;  %s2442_s15 = smov %s2280_s17 }
 0x275   : > { %p11_p10 = scmp.ge.s32.totalorder %s14_s19, 6   ;;  %s2443_s16 = smov %s2284_s18 }
 0x276   : > { %s2444_s17 = smov %s2447_s20  ;;  %s2445_s18 = smov %s2451_s21 }
 0x277   :  { %13 = sbr.rel (!%p11_p10) target bundleno = 3 (0x3), region = 75 }

// kernel: longnet_layer.5
= control target key start
LH: loop header
LB: loop body
LE: loop exit
PB: predicated region body
PF: predicated region fallthrough
CT: control target
= control target key end

     0   :  { %11 = vsyncpa [#allocation3], 0  ;;  %s1697_s0 = inlined_call_operand.hbm [shape: f32[2,16,32], index: 0, kind: input, shape index: {}]   ;;  %s1698_s1 = inlined_call_operand.hbm [shape: f32[32,96], index: 1, kind: input, shape index: {}]   ;;  %s1699_s2 = inlined_call_operand.vmem [shape: f32[1,96], index: 2, kind: input, shape index: {}]   ;;  %s1700_s3 = inlined_call_operand.vmem [shape: f32[2,2,16,16], index: 3, kind: output, shape index: {0}]   ;;  %s1701_s4 = inlined_call_operand.vmem [shape: f32[2,2,16,16], index: 4, kind: output, shape index: {1}]   ;;  %s1702_s5 = inlined_call_operand.vmem [shape: f32[2,2,16,16], index: 5, kind: output, shape index: {2}]  }
   0x1   :  { %13 = vsyncpa [#allocation3 + $0x1], 0 }
   0x2   :  { %14 = vsyncpa [#allocation5], 0  ;;  %s1490_s18 = smov 0   ;;  %s1492_s19 = smov 0  }
   0x3   :  { %s1494_s20 = smov 0   ;;  %s1496_s21 = smov 0  }
   0x4   :  { %s1498_s22 = smov 0   ;;  %s1500_s23 = smov 0  }
   0x5 LB: > { %s1136_s24 = sadd.s32 4294967295, %s1449_s23   ;;  %p54_p0 = scmp.ne.s32.totalorder %s1433_s19, %s1429_s18  ;;  %s1449_s23 = sphi %s1500_s23, %s20_s23   ;;  %s1445_s22 = sphi %s1498_s22, %s1712_s22   ;;  %s1441_s21 = sphi %s1496_s21, %s1711_s21   ;;  %s1437_s20 = sphi %s1494_s20, %s1710_s20   ;;  %s1433_s19 = sphi %s1492_s19, %s1709_s19   ;;  %s1429_s18 = sphi %s1490_s18, %s1708_s18  }
   0x6   : > { %p1520_p1 = scmp.eq.s32.totalorder %s1136_s24, 0  ;;  %p1138_p2 = scmp.ge.s32.totalorder %s1449_s23, 1 }
   0x7   : > { %p191_p3 = scmp.lt.s32.totalorder %s1449_s23, 3  ;;  %s1451_s28 = smov [#allocation4]  }
   0x8   : > { %p1528_p4 = por %p1520_p1, %p54_p0  ;;  %s203_s29 = sshll.u32 %s1451_s28, 4  ;;  %s204_s29 = int_to_ptr.vmem [resolvable:$true] %s203_s29 }
   0x9   : > { %p1532_p5 = pnand %p1138_p2, %p191_p3  ;;  %s32_s6 = sadd.s32 1, %s1445_s22 }
   0xa   : > { %s1352_s7 = scalar_lea.vmem %s204_s29, 512  ;;  %p1360_p12 = scmp.lt.s32.totalorder %s204_s29, %s204_s29 }
   0xb   : > { %p1274_p6 = pneg %p1532_p5  ;;  %p1353_p9 = scmp.ne.s32.totalorder %s204_s29, %s1352_s7 }
   0xc   : > { %p1361_p13 = scmp.lt.s32.totalorder %s1352_s7, %s1352_s7 }
   0xd   : > { %p1540_p7 = pnand %p1274_p6, %p1520_p1 }
   0xe   : > { %p1362_p0 = por %p1361_p13, %p1360_p12 }
   0xf   : > { %p1343_p8 = pneg %p1540_p7 }
  0x11   : > { %p1355_p10 = pnand %p1353_p9, %p1343_p8 }
  0x13   : > { %p1356_p11 = pneg %p1355_p10 }
  0x15   : > { %p1363_p2 = pnand %p1362_p0, %p1356_p11 }
  0x17   : > { %1366 = shalt.err (!%p1363_p2)
}
  0x18   : > { %s1452_s8 = smov 128   ;;  %s1453_s9 = smov 8  }
  0x19   : > { %1277 = dma.hbm_to_vmem [thread:$0]  (!%p1540_p7), %s1698_s1, 512, %s204_s29, [#allocation5], %s1452_s8, %s1452_s8, %s1453_s9  }
  0x1a   : > { %p34_p3 = scmp.ge.s32.totalorder %s32_s6, 2  ;;  %s41_s12 = sadd.s32 1, %s1437_s20 }
  0x1b   : > { %p48_p6 = scmp.ne.s32.totalorder %s1437_s20, %s1433_s19  ;;  %p49_p8 = scmp.eq.s32.totalorder %s1449_s23, 0 }
  0x1c   : > { %s1714_s6 = smov (%p34_p3, %s32_s6), 0  ;;  %p1283_p10 = scmp.lt.s32.totalorder %s1449_s23, 2 }
  0x1d   : > { %p50_p9 = por %p49_p8, %p48_p6  ;;  %s36_s13 = ssub.s32 %s1445_s22, %s1714_s6 }
  0x1e   : > { %s220_s14 = sand.u32 1, %s1437_s20   ;;  %p39_p11 = scmp.eq.s32.totalorder %s36_s13, 0 }
  0x1f   : > { %s1141_s15 = sshll.u32 %s220_s14, 4  ;;  %s1162_s16 = sshll.u32 %s1445_s22, 8 }
  0x20   : > { %s1567_s17 = scalar_select %p39_p11, %s1437_s20, %s41_s12  }
  0x21   : > { %s232_s28 = scalar_lea.hbm %s1697_s0, %s1162_s16  ;;  %s224_s29 = scalar_lea.vmem [#allocation2], %s1141_s15 }
  0x22   : > { %s233_s30 = sshll.u32 %s224_s29, 4  ;;  %p1572_p7 = pnand %p1283_p10, %p50_p9  ;;  %s234_s30 = int_to_ptr.vmem [resolvable:$true] %s233_s30 }
  0x23   : > { %s221_s10 = scalar_lea.sflag [#allocation3], %s220_s14  ;;  %s1380_s11 = scalar_lea.vmem %s234_s30, 256 }
  0x24   : > { %p1369_p12 = pneg %p1572_p7  ;;  %p1381_p13 = scmp.ne.s32.totalorder %s234_s30, %s1380_s11 }
  0x25   : > { %s1454_s12 = smov [#allocation2]  }
  0x26   : > { %p1383_p0 = pnand %p1381_p13, %p1369_p12  ;;  %s1385_s13 = sshll.u32 %s1454_s12, 4  ;;  %s1386_s13 = int_to_ptr.vmem [resolvable:$false] %s1385_s13 }
  0x27   : > { %s1387_s18 = scalar_lea.vmem %s1386_s13, 512  ;;  %p1388_p3 = scmp.lt.s32.totalorder %s234_s30, %s1386_s13 }
  0x28   : > { %p1384_p2 = pneg %p1383_p0  ;;  %p1389_p6 = scmp.lt.s32.totalorder %s1387_s18, %s1380_s11 }
  0x2a   : > { %p1390_p8 = por %p1389_p6, %p1388_p3 }
  0x2c   : > { %p1391_p9 = pnand %p1390_p8, %p1384_p2 }
  0x2e   : > { %1394 = shalt.err (!%p1391_p9)
}
  0x2f   : > { %1281 = dma.hbm_to_vmem [thread:$0]  (!%p1572_p7), %s232_s28, 256, %s234_s30, %s221_s10, %s1452_s8, %s1452_s8, %s1453_s9  }
  0x30   : > { %245 = sbr.rel (%p1532_p5) target bundleno = 422 (0x1a6), region = 32  ;;  %s247_s14 = sand.u32 (!%p1532_p5), 1, %s1433_s19  }
  0x31   : > { %s1145_s15 = sshll.u32 (!%p1532_p5), %s247_s14, 4  ;;  %s248_s16 = scalar_lea.sflag (!%p1532_p5), [#allocation3], %s247_s14 }
  0x32   : > { %s251_s24 = scalar_lea.vmem (!%p1532_p5), [#allocation2], %s1145_s15 }
  0x35   : > { %1420 = dma.done.wait (%p1528_p4), %s248_s16, 256  }
  0x36   : > { %1422 = vsyncadd (%p1528_p4), %s248_s16, 4294967040 }
  0x37   : > { %1424 = dma.done.wait (%p1520_p1), [#allocation5], 512  }
  0x38   : > { %1426 = vsyncadd (%p1520_p1), [#allocation5], 4294966784  ;;  %vm348_vm0 = vcmask 261120   ;;  %v340_v0 = vld [vmem:[#allocation4 + $0x18] sm:$0xff]  ;;  %v339_v1 = vld [vmem:[#allocation4 + $0x10] sm:$0xff]  ;;  %p306_p1 = scmp.lt.s32.totalorder %s1441_s21, 1 }
  0x39   : > { %v338_v2 = vld [vmem:[#allocation4 + $0x8] sm:$0xff]  ;;  %v1594_v3 = vand.u32 4294901760, %v340_v0  ;;  %v1596_v4 = vand.u32 4294901760, %v339_v1  ;;  %v337_v6 = vld [vmem:[#allocation4] sm:$0xff]  ;;  %vm883_vm1 = vcmask 130048   ;;  %s1455_s29 = smov 96  }
  0x3a   : > { %v1598_v5 = vand.u32 4294901760, %v338_v2  ;;  %v335_v7 = vld [vmem:[%s251_s24] sm:$0xff]  ;;  %v336_v8 = vld [vmem:[%s251_s24 + $0x8] sm:$0xff]  ;;  %v1600_v9 = vand.u32 4294901760, %v337_v6  ;;  %s1716_s21 = smov (!%p306_p1, %s1441_s21), 1  ;;  %s1457_s30 = smov 80  }
  0x3b   : > { %v350_v10 = vsel %vm348_vm0, %v335_v7, 0  ;;  %v353_v11 = vsel %vm348_vm0, %v336_v8, 0  ;;  %1202 = vmatprep.subr.mxu0 %v1594_v3  ;;  %v470_v12 = vsub.f32 %v340_v0, %v1594_v3  ;;  %v477_v15 = vsub.f32 %v339_v1, %v1596_v4  ;;  %v1153_v39 = vld [vmem:[%s1699_s2] ss:$0 sm:$0xff]  ;;  %s1647_s27 = sshll.u32 %s1716_s21, 5  ;;  %s1456_s21 = smov 112  }
  0x3c   : > { %v1604_v13 = vand.u32 4294901760, %v350_v10  ;;  %v1606_v14 = vand.u32 4294901760, %v353_v11  ;;  %1203 = vmatpush3.msra.mxu0 %v1594_v3  ;;  %v484_v16 = vsub.f32 %v338_v2, %v1598_v5  ;;  %v491_v17 = vsub.f32 %v337_v6, %v1600_v9  ;;  %s1653_s28 = scalar_lea.vmem %s1700_s3, %s1647_s27  ;;  %s1458_s7 = smov 64  }
  0x3d   : > { %1204 = vmatprep.subr.mxu0 %v1596_v4  ;;  %v471_v18 = vand.u32 4294901760, %v470_v12  ;;  %v478_v20 = vand.u32 4294901760, %v477_v15  ;;  %s1459_s10 = smov 48   ;;  %s323_s13 = scalar_lea.vmem %s1701_s4, %s1647_s27 }
  0x3e   : > { %v425_v19 = vsub.f32 %v350_v10, %v1604_v13  ;;  %v435_v21 = vsub.f32 %v353_v11, %v1606_v14  ;;  %1221 = vmatprep.mubr.f32.mxu1 %v1604_v13  ;;  %1205 = vmatpush3.msra.mxu0 %v1596_v4  ;;  %v485_v22 = vand.u32 4294901760, %v484_v16  ;;  %v492_v23 = vand.u32 4294901760, %v491_v17  ;;  %s333_s15 = scalar_lea.vmem %s1702_s5, %s1647_s27 }
  0x3f   : > { %1206 = vmatprep.subr.mxu0 %v1598_v5  ;;  %v472_v24 = vsub.f32 %v470_v12, %v471_v18  ;;  %v479_v26 = vsub.f32 %v477_v15, %v478_v20 }
  0x40   : > { %v426_v25 = vand.u32 4294901760, %v425_v19  ;;  %v436_v27 = vand.u32 4294901760, %v435_v21  ;;  %1207 = vmatpush3.msra.mxu0 %v1598_v5  ;;  %v486_v28 = vsub.f32 %v484_v16, %v485_v22  ;;  %v493_v29 = vsub.f32 %v491_v17, %v492_v23 }
  0x41   : > { %1208 = vmatprep.subr.mxu0 %v1600_v9  ;;  %v473_v30 = vand.u32 4294901760, %v472_v24  ;;  %v480_v32 = vand.u32 4294901760, %v479_v26 }
  0x42   : > { %v427_v31 = vsub.f32 %v425_v19, %v426_v25  ;;  %v437_v33 = vsub.f32 %v435_v21, %v436_v27  ;;  %1209 = vmatpush3.msra.mxu0 %v1600_v9  ;;  %v487_v36 = vand.u32 4294901760, %v486_v28  ;;  %v494_v37 = vand.u32 4294901760, %v493_v29 }
  0x43   : > { %1213 = vmatprep.subr.mxu1 %v473_v30  ;;  %1224 = vmatprep.subr.mxu0 %v470_v12 }
  0x44   : > { %v428_v34 = vand.u32 4294901760, %v427_v31  ;;  %v438_v35 = vand.u32 4294901760, %v437_v33  ;;  %1214 = vmatpush3.msra.mxu1 %v473_v30 }
  0x45   : > { %1215 = vmatprep.subr.mxu1 %v480_v32 }
  0x46   : > { %1210 = vmatprep.mubr.f32.mxu0 %v428_v34  ;;  %1216 = vmatpush3.msra.mxu1 %v480_v32 }
  0x47   : > { %1211 = vmatmul.mubr.f32.vlgmr.msra.gmra.mxu0 %v438_v35  ;;  %1217 = vmatprep.subr.mxu1 %v487_v36 }
  0x48   : > { %1225 = vmatpush3.msra.mxu0 %v470_v12  ;;  %1218 = vmatpush3.msra.mxu1 %v487_v36 }
  0x49   : > { %1226 = vmatprep.subr.mxu0 %v477_v15  ;;  %1219 = vmatprep.subr.mxu1 %v494_v37 }
  0x4a   : > { %1227 = vmatpush3.msra.mxu0 %v477_v15  ;;  %1220 = vmatpush3.msra.mxu1 %v494_v37 }
  0x4b   : > { %1228 = vmatprep.subr.mxu0 %v484_v16  ;;  %1222 = vmatmul.mubr.f32.vlgmr.msra.gmra.mxu1 %v1606_v14 }
  0x4c   : > { %1229 = vmatpush3.msra.mxu0 %v484_v16  ;;  %1235 = vmatprep.subr.mxu1 %v1594_v3 }
  0x4d   : > { %1230 = vmatprep.subr.mxu0 %v491_v17  ;;  %1232 = vmatprep.mubr.f32.mxu0 %v425_v19 }
  0x4e   : > { %1231 = vmatpush3.msra.mxu0 %v491_v17  ;;  %1236 = vmatpush3.msra.mxu1 %v1594_v3 }
  0x4f   : > { %1233 = vmatmul.mubr.f32.vlgmr.msra.gmra.mxu0 %v435_v21  ;;  %1237 = vmatprep.subr.mxu1 %v1596_v4 }
  0x50   : > { %1246 = vmatprep.subr.mxu0 %v471_v18  ;;  %1238 = vmatpush3.msra.mxu1 %v1596_v4 }
  0x51   : > { %1247 = vmatpush3.msra.mxu0 %v471_v18  ;;  %1239 = vmatprep.subr.mxu1 %v1598_v5 }
  0x52   : > { %1248 = vmatprep.subr.mxu0 %v478_v20  ;;  %1240 = vmatpush3.msra.mxu1 %v1598_v5 }
  0x53   : > { %1249 = vmatpush3.msra.mxu0 %v478_v20  ;;  %1241 = vmatprep.subr.mxu1 %v1600_v9 }
  0x54   : > { %1250 = vmatprep.subr.mxu0 %v485_v22  ;;  %1242 = vmatpush3.msra.mxu1 %v1600_v9 }
  0x55   : > { %1243 = vmatprep.mubr.f32.mxu1 %v426_v25  ;;  %1251 = vmatpush3.msra.mxu0 %v485_v22 }
  0x56   : > { %1244 = vmatmul.mubr.f32.vlgmr.msra.gmra.mxu1 %v436_v27  ;;  %1252 = vmatprep.subr.mxu0 %v492_v23 }
  0x57   : > { %1257 = vmatprep.subr.mxu1 %v1594_v3  ;;  %1253 = vmatpush3.msra.mxu0 %v492_v23 }
  0x58   : > { %1254 = vmatprep.mubr.f32.mxu0 %v1604_v13  ;;  %1258 = vmatpush3.msra.mxu1 %v1594_v3 }
  0x59   : > { %1255 = vmatmul.mubr.f32.vlgmr.msra.gmra.mxu0 %v1606_v14  ;;  %1259 = vmatprep.subr.mxu1 %v1596_v4 }
  0x5a   : > { %1265 = vmatprep.mubr.f32.mxu1 %v1604_v13  ;;  %1260 = vmatpush3.msra.mxu1 %v1596_v4 }
  0x5b   : > { %1261 = vmatprep.subr.mxu1 %v1598_v5 }
  0x5c   : > { %1262 = vmatpush3.msra.mxu1 %v1598_v5 }
  0x5d   : > { %1263 = vmatprep.subr.mxu1 %v1600_v9 }
  0x5e   : > { %1264 = vmatpush3.msra.mxu1 %v1600_v9 }
  0x5f   : > { %1266 = vmatmul.mubr.f32.vlgmr.msra.gmra.mxu1 %v1606_v14 }
 0x107   : > { %v1212_v38 = vpop.f32.mrf.mxu0 }
 0x108   : > { %v441_v42 = vadd.f32 %v1212_v38, %v1153_v39 }
 0x109   : > { %v430_v40 = vpop.f32.mrf.mxu0 }
 0x10a   : > { %v431_v43 = vadd.f32 %v1153_v39, %v430_v40 }
 0x10b   : > { %v1223_v41 = vpop.f32.mrf.mxu1 }
 0x10c   : > { %v538_v46 = vadd.f32 %v1223_v41, %v441_v42 }
 0x10d   : > { %v531_v44 = vpop.f32.mrf.mxu1 }
 0x10e   : > { %v532_v48 = vadd.f32 %v531_v44, %v431_v43 }
 0x10f   : > { %v1234_v45 = vpop.f32.mrf.mxu0 }
 0x110   : > { %v625_v50 = vadd.f32 %v1234_v45, %v538_v46 }
 0x111   : > { %v617_v49 = vpop.f32.mrf.mxu0 }
 0x112   : > { %v618_v53 = vadd.f32 %v617_v49, %v532_v48 }
 0x116   : > { %v1245_v47 = vpop.f32.mrf.mxu1 }
 0x117   : > { %v710_v54 = vadd.f32 %v1245_v47, %v625_v50 }
 0x118   : > { %v701_v51 = vpop.f32.mrf.mxu1 }
 0x119   : > { %v1256_v52 = vpop.f32.mrf.mxu0  ;;  %v702_v55 = vadd.f32 %v701_v51, %v618_v53 }
 0x11a   : > { %v799_v57 = vadd.f32 %v1256_v52, %v710_v54 }
 0x11b   : > { %v792_v56 = vpop.f32.mrf.mxu0 }
 0x11c   : > { %v793_v59 = vadd.f32 %v792_v56, %v702_v55 }
 0x11f   : > { %v1267_v58 = vpop.f32.mrf.mxu1 }
 0x120   : > { %v880_v60 = vadd.f32 %v1267_v58, %v799_v57 }
 0x121   : > { %v873_v61 = vpop.f32.mrf.mxu1 }
 0x122   : > { %v874_v62 = vadd.f32 %v873_v61, %v793_v59  ;;  %899 = vrot.lane.b32.xlu1 %v880_v60, %s1455_s29  ;;  %890 = vrot.lane.b32.xlu0 %v880_v60, %s1456_s21  ;;  %885 = vst.msk [vmem:[%s1653_s28 + $0x8] sm:$0xff] %vm883_vm1, %v880_v60 }
 0x124   : > { %884 = vst.msk [vmem:[%s1653_s28] sm:$0xff] %vm883_vm1, %v874_v62 }
 0x126   : > { %907 = vrot.lane.b32.xlu1 %v880_v60, %s1457_s30  ;;  %888 = vrot.lane.b32.xlu0 %v874_v62, %s1456_s21 }
 0x12a   : > { %916 = vrot.lane.b32.xlu1 %v880_v60, %s1458_s7  ;;  %905 = vrot.lane.b32.xlu0 %v874_v62, %s1457_s30 }
 0x12e   : > { %897 = vrot.lane.b32.xlu1 %v874_v62, %s1455_s29  ;;  %914 = vrot.lane.b32.xlu0 %v874_v62, %s1458_s7 }
 0x132   : > { %924 = vrot.lane.b32.xlu1 %v880_v60, %s1459_s10  ;;  %922 = vrot.lane.b32.xlu0 %v874_v62, %s1459_s10 }
 0x194   : > { %v900_v63 = vpop.permute.xlu1 %899  ;;  %v891_v0 = vpop.permute.xlu0 %890 }
 0x195   : > { %904 = vst.msk [vmem:[%s323_s13 + $0x8] sm:$0xff] %vm883_vm1, %v900_v63  ;;  %1155 = vst.msk [vmem:[%s1653_s28 + $0x18] sm:$0xff] %vm883_vm1, %v891_v0 }
 0x198   : > { %v908_v1 = vpop.permute.xlu1 %907  ;;  %v889_v2 = vpop.permute.xlu0 %888 }
 0x199   : > { %1157 = vst.msk [vmem:[%s323_s13 + $0x18] sm:$0xff] %vm883_vm1, %v908_v1  ;;  %1154 = vst.msk [vmem:[%s1653_s28 + $0x10] sm:$0xff] %vm883_vm1, %v889_v2 }
 0x19c   : > { %v917_v3 = vpop.permute.xlu1 %916  ;;  %v906_v4 = vpop.permute.xlu0 %905 }
 0x19d   : > { %921 = vst.msk [vmem:[%s333_s15 + $0x8] sm:$0xff] %vm883_vm1, %v917_v3  ;;  %1156 = vst.msk [vmem:[%s323_s13 + $0x10] sm:$0xff] %vm883_vm1, %v906_v4 }
 0x1a0   : > { %v898_v5 = vpop.permute.xlu1 %897  ;;  %v915_v6 = vpop.permute.xlu0 %914 }
 0x1a1   : > { %903 = vst.msk [vmem:[%s323_s13] sm:$0xff] %vm883_vm1, %v898_v5  ;;  %920 = vst.msk [vmem:[%s333_s15] sm:$0xff] %vm883_vm1, %v915_v6 }
 0x1a4   : > { %v925_v7 = vpop.permute.xlu1 %924  ;;  %v923_v8 = vpop.permute.xlu0 %922 }
 0x1a5   : > { %1159 = vst.msk [vmem:[%s333_s15 + $0x18] sm:$0xff] %vm883_vm1, %v925_v7  ;;  %1158 = vst.msk [vmem:[%s333_s15 + $0x10] sm:$0xff] %vm883_vm1, %v923_v8 }
 0x1a6 PF: > { %s20_s23 = sadd.s32 1, %s1449_s23   ;;  %s1708_s18 = smov %s1433_s19 }
 0x1a7   : > { %p17_p4 = scmp.ge.s32.totalorder %s20_s23, 4   ;;  %s1709_s19 = smov %s1437_s20 }
 0x1a8   : > { %s1710_s20 = smov %s1567_s17  ;;  %s1711_s21 = smov %s1445_s22 }
 0x1a9   : > { %s1712_s22 = smov %s1714_s6  ;;  %19 = sbr.rel (!%p17_p4) target bundleno = 5 (0x5), region = 103 }
 0x1ae   :  { %1011 = vsyncpa [#allocation3], 1 }
 0x1af   :  { %1013 = vsyncpa [#allocation3 + $0x1], 1 }
 0x1b0   :  { %1014 = vsyncpa [#allocation5], 1 }

// kernel: longnet_layer.8
= control target key start
LH: loop header
LB: loop body
LE: loop exit
PB: predicated region body
PF: predicated region fallthrough
CT: control target
= control target key end

     0   :  { %s1254_s21 = smov 0   ;;  %s1256_s22 = smov 0   ;;  %s1413_s0 = inlined_call_operand.vmem [shape: f32[2,2,16,16], index: 0, kind: input, shape index: {}]   ;;  %s1414_s1 = inlined_call_operand.vmem [shape: f32[32,32], index: 1, kind: input, shape index: {}]   ;;  %s1415_s2 = inlined_call_operand.vmem [shape: f32[1,32], index: 2, kind: input, shape index: {}]   ;;  %s1416_s3 = inlined_call_operand.vmem [shape: f32[2,16,32], index: 3, kind: input, shape index: {}]   ;;  %s1417_s4 = inlined_call_operand.vmem [shape: f32[1,32], index: 4, kind: input, shape index: {}]   ;;  %s1418_s5 = inlined_call_operand.vmem [shape: f32[1,32], index: 5, kind: input, shape index: {}]   ;;  %s1419_s6 = inlined_call_operand.vmem [shape: f32[2,16,32], index: 6, kind: output, shape index: {}]  }
   0x1   :  { %s1258_s23 = smov 0  }
   0x2 LB: > { %s28_s24 = sadd.s32 1, %s1212_s22  ;;  %p1048_p0 = scmp.ge.s32.totalorder %s1216_s23, 1  ;;  %s1216_s23 = sphi %s1258_s23, %s16_s23   ;;  %s1212_s22 = sphi %s1256_s22, %s1421_s22   ;;  %s1208_s21 = sphi %s1254_s21, %s1420_s21  }
   0x3   : > { %p30_p1 = scmp.ge.s32.totalorder %s28_s24, 2  ;;  %p250_p2 = scmp.lt.s32.totalorder %s1216_s23, 3 }
   0x5   : > { %s1423_s24 = smov (%p30_p1, %s28_s24), 0  ;;  %p251_p3 = pnand %p1048_p0, %p250_p2 }
   0x6   : > { %p298_p4 = scmp.lt.s32.totalorder (!%p251_p3), %s1208_s21, 1  ;;  %s1218_s13 = smov (!%p251_p3), 16  }
   0x7   : > { %254 = sbr.rel (%p251_p3) target bundleno = 679 (0x2a7), region = 44 }
   0xc   : > { %v345_v0 = vld [vmem:[%s1414_s1 + $0x18] sm:$0xff]  ;;  %v344_v1 = vld [vmem:[%s1414_s1 + $0x10] sm:$0xff]  ;;  %v343_v4 = vld [vmem:[%s1414_s1 + $0x8] sm:$0xff]  ;;  %s1425_s21 = smov (!%p298_p4, %s1208_s21), 1  ;;  %vm339_vm0 = vcmask 130048   ;;  %vm353_vm1 = vcmask 261120  }
   0xd   : > { %v1278_v2 = vand.u32 4294901760, %v345_v0  ;;  %v1280_v3 = vand.u32 4294901760, %v344_v1  ;;  %v342_v5 = vld [vmem:[%s1414_s1] sm:$0xff]  ;;  %v1290_v6 = vand.u32 4294901760, %v343_v4  ;;  %s1060_s9 = sshll.u32 %s1425_s21, 5  ;;  %s1061_s16 = sshll.u32 %s1425_s21, 4 }
   0xe   : > { %v1292_v7 = vand.u32 4294901760, %v342_v5  ;;  %s1312_s12 = scalar_lea.vmem %s1413_s0, %s1060_s9  ;;  %v1055_v45 = vld [vmem:[%s1415_s2] ss:$0 sm:$0xff]  ;;  %s315_s19 = scalar_lea.vmem %s1416_s3, %s1061_s16 }
   0xf   : > { %v1295_v8 = vsub.f32 %v345_v0, %v1278_v2  ;;  %v1298_v9 = vsub.f32 %v344_v1, %v1280_v3  ;;  %1099 = vmatprep.subr.mxu0 %v1278_v2  ;;  %v1303_v10 = vsub.f32 %v343_v4, %v1290_v6  ;;  %v329_v14 = vld [vmem:[%s1312_s12 + $0x10] sm:$0xff]  ;;  %v330_v19 = vld [vmem:[%s1312_s12 + $0x18] sm:$0xff]  ;;  %v327_v26 = vld [vmem:[%s1312_s12] sm:$0xff]  ;;  %s325_s30 = scalar_lea.vmem %s1419_s6, %s1061_s16 }
  0x10   : > { %v1306_v11 = vsub.f32 %v342_v5, %v1292_v7  ;;  %1100 = vmatpush3.msra.mxu0 %v1278_v2  ;;  %333 = vrot.lane.b32.xlu0 %v329_v14, %s1218_s13  ;;  %v328_v30 = vld [vmem:[%s1312_s12 + $0x8] sm:$0xff] }
  0x11   : > { %v1315_v12 = vand.u32 4294901760, %v1295_v8  ;;  %v1318_v13 = vand.u32 4294901760, %v1298_v9  ;;  %1101 = vmatprep.subr.mxu0 %v1280_v3  ;;  %v1323_v15 = vand.u32 4294901760, %v1303_v10 }
  0x12   : > { %v1326_v16 = vand.u32 4294901760, %v1306_v11  ;;  %1102 = vmatpush3.msra.mxu0 %v1280_v3 }
  0x13   : > { %v477_v17 = vsub.f32 %v1295_v8, %v1315_v12  ;;  %v484_v18 = vsub.f32 %v1298_v9, %v1318_v13  ;;  %1103 = vmatprep.subr.mxu0 %v1290_v6  ;;  %v491_v20 = vsub.f32 %v1303_v10, %v1323_v15 }
  0x14   : > { %1104 = vmatpush3.msra.mxu0 %v1290_v6  ;;  %v498_v23 = vsub.f32 %v1306_v11, %v1326_v16  ;;  %335 = vrot.lane.b32.xlu0 %v330_v19, %s1218_s13 }
  0x15   : > { %v478_v21 = vand.u32 4294901760, %v477_v17  ;;  %v485_v22 = vand.u32 4294901760, %v484_v18  ;;  %1105 = vmatprep.subr.mxu0 %v1292_v7  ;;  %v492_v24 = vand.u32 4294901760, %v491_v20 }
  0x16   : > { %1106 = vmatpush3.msra.mxu0 %v1292_v7  ;;  %v499_v25 = vand.u32 4294901760, %v498_v23 }
  0x17   : > { %1110 = vmatprep.subr.mxu1 %v478_v21  ;;  %1121 = vmatprep.subr.mxu0 %v1295_v8 }
  0x18   : > { %1111 = vmatpush3.msra.mxu1 %v478_v21 }
  0x19   : > { %1112 = vmatprep.subr.mxu1 %v485_v22 }
  0x1a   : > { %1113 = vmatpush3.msra.mxu1 %v485_v22 }
  0x1b   : > { %1114 = vmatprep.subr.mxu1 %v492_v24 }
  0x1c   : > { %1115 = vmatpush3.msra.mxu1 %v492_v24 }
  0x1d   : > { %1116 = vmatprep.subr.mxu1 %v499_v25 }
  0x1e   : > { %1117 = vmatpush3.msra.mxu1 %v499_v25 }
  0x1f   : > { %1132 = vmatprep.subr.mxu1 %v1278_v2 }
  0x82   : > { %v334_v27 = vpop.permute.xlu0 %333 }
  0x83   : > { %v340_v28 = vsel %vm339_vm0, %v327_v26, %v334_v27 }
  0x84   : > { %v355_v29 = vsel %vm353_vm1, %v340_v28, 0  ;;  %v1056_v28 = vld [vmem:[%s1417_s4] ss:$0 sm:$0xff] }
  0x85   : > { %v429_v31 = vand.u32 4294901760, %v355_v29 }
  0x86   : > { %v336_v32 = vpop.permute.xlu0 %335 }
  0x87   : > { %v430_v33 = vsub.f32 %v355_v29, %v429_v31  ;;  %v341_v34 = vsel %vm339_vm0, %v328_v30, %v336_v32  ;;  %1118 = vmatprep.mubr.f32.mxu1 %v429_v31  ;;  %v1057_v30 = vld [vmem:[%s1418_s5] ss:$0 sm:$0xff] }
  0x88   : > { %v358_v35 = vsel %vm353_vm1, %v341_v34, 0 }
  0x89   : > { %v439_v36 = vand.u32 4294901760, %v358_v35  ;;  %v431_v37 = vand.u32 4294901760, %v430_v33 }
  0x8b   : > { %v440_v38 = vsub.f32 %v358_v35, %v439_v36  ;;  %1119 = vmatmul.mubr.f32.vlgmr.msra.gmra.mxu1 %v439_v36  ;;  %v432_v39 = vsub.f32 %v430_v33, %v431_v37 }
  0x8c   : > { %1133 = vmatpush3.msra.mxu1 %v1278_v2  ;;  %1140 = vmatprep.mubr.f32.mxu1 %v431_v37 }
  0x8d   : > { %1134 = vmatprep.subr.mxu1 %v1280_v3  ;;  %v433_v40 = vand.u32 4294901760, %v432_v39  ;;  %v441_v41 = vand.u32 4294901760, %v440_v38 }
  0x8e   : > { %1135 = vmatpush3.msra.mxu1 %v1280_v3 }
  0x8f   : > { %1136 = vmatprep.subr.mxu1 %v1290_v6  ;;  %1107 = vmatprep.mubr.f32.mxu0 %v433_v40  ;;  %v442_v42 = vsub.f32 %v440_v38, %v441_v41 }
  0x90   : > { %1137 = vmatpush3.msra.mxu1 %v1290_v6 }
  0x91   : > { %1138 = vmatprep.subr.mxu1 %v1292_v7  ;;  %v443_v43 = vand.u32 4294901760, %v442_v42 }
  0x92   : > { %1139 = vmatpush3.msra.mxu1 %v1292_v7 }
  0x93   : > { %1141 = vmatmul.mubr.f32.vlgmr.msra.gmra.mxu1 %v441_v41  ;;  %1154 = vmatprep.subr.mxu1 %v1278_v2 }
  0x94   : > { %1108 = vmatmul.mubr.f32.vlgmr.msra.gmra.mxu0 %v443_v43  ;;  %1155 = vmatpush3.msra.mxu1 %v1278_v2 }
  0x95   : > { %1122 = vmatpush3.msra.mxu0 %v1295_v8  ;;  %1162 = vmatprep.mubr.f32.mxu1 %v429_v31 }
  0x96   : > { %1123 = vmatprep.subr.mxu0 %v1298_v9  ;;  %1129 = vmatprep.mubr.f32.mxu0 %v430_v33 }
  0x97   : > { %1156 = vmatprep.subr.mxu1 %v1280_v3  ;;  %1124 = vmatpush3.msra.mxu0 %v1298_v9 }
  0x98   : > { %1157 = vmatpush3.msra.mxu1 %v1280_v3  ;;  %1125 = vmatprep.subr.mxu0 %v1303_v10  ;;  %v888_v3 = vld [vmem:[%s315_s19] sm:$0xff] }
  0x99   : > { %1158 = vmatprep.subr.mxu1 %v1290_v6  ;;  %1126 = vmatpush3.msra.mxu0 %v1303_v10 }
  0x9a   : > { %1159 = vmatpush3.msra.mxu1 %v1290_v6  ;;  %1127 = vmatprep.subr.mxu0 %v1306_v11  ;;  %v889_v6 = vld [vmem:[%s315_s19 + $0x8] sm:$0xff] }
  0x9b   : > { %1160 = vmatprep.subr.mxu1 %v1292_v7  ;;  %1128 = vmatpush3.msra.mxu0 %v1306_v11 }
  0x9c   : > { %1161 = vmatpush3.msra.mxu1 %v1292_v7  ;;  %1130 = vmatmul.mubr.f32.vlgmr.msra.gmra.mxu0 %v440_v38 }
  0x9d   : > { %1143 = vmatprep.subr.mxu0 %v1315_v12  ;;  %1163 = vmatmul.mubr.f32.vlgmr.msra.gmra.mxu1 %v439_v36 }
  0x9e   : > { %1144 = vmatpush3.msra.mxu0 %v1315_v12  ;;  %1151 = vmatprep.mubr.f32.mxu0 %v429_v31 }
  0x9f   : > { %1145 = vmatprep.subr.mxu0 %v1318_v13 }
  0xa0   : > { %1146 = vmatpush3.msra.mxu0 %v1318_v13 }
  0xa1   : > { %1147 = vmatprep.subr.mxu0 %v1323_v15 }
  0xa2   : > { %1148 = vmatpush3.msra.mxu0 %v1323_v15 }
  0xa3   : > { %1149 = vmatprep.subr.mxu0 %v1326_v16 }
  0xa4   : > { %1150 = vmatpush3.msra.mxu0 %v1326_v16 }
  0xa5   : > { %1152 = vmatmul.mubr.f32.vlgmr.msra.gmra.mxu0 %v439_v36 }
 0x14b   : > { %v1120_v46 = vpop.f32.mrf.mxu1 }
 0x14d   : > { %v536_v51 = vpop.f32.mrf.mxu1 }
 0x153   : > { %v1142_v53 = vpop.f32.mrf.mxu1 }
 0x154   : > { %v1109_v44 = vpop.f32.mrf.mxu0 }
 0x155   : > { %v446_v48 = vadd.f32 %v1109_v44, %v1055_v45  ;;  %v706_v58 = vpop.f32.mrf.mxu1 }
 0x156   : > { %v435_v47 = vpop.f32.mrf.mxu0 }
 0x157   : > { %v436_v49 = vadd.f32 %v1055_v45, %v435_v47  ;;  %v543_v52 = vadd.f32 %v1120_v46, %v446_v48 }
 0x159   : > { %v537_v56 = vadd.f32 %v536_v51, %v436_v49 }
 0x15c   : > { %v1131_v50 = vpop.f32.mrf.mxu0 }
 0x15d   : > { %v630_v55 = vadd.f32 %v1131_v50, %v543_v52  ;;  %v1164_v60 = vpop.f32.mrf.mxu1 }
 0x15e   : > { %v622_v54 = vpop.f32.mrf.mxu0 }
 0x15f   : > { %v623_v57 = vadd.f32 %v622_v54, %v537_v56  ;;  %v715_v59 = vadd.f32 %v1142_v53, %v630_v55  ;;  %v878_v2 = vpop.f32.mrf.mxu1 }
 0x161   : > { %v707_v63 = vadd.f32 %v706_v58, %v623_v57 }
 0x165   : > { %v1153_v61 = vpop.f32.mrf.mxu0 }
 0x166   : > { %v804_v62 = vadd.f32 %v1153_v61, %v715_v59 }
 0x167   : > { %v797_v0 = vpop.f32.mrf.mxu0 }
 0x168   : > { %v798_v1 = vadd.f32 %v797_v0, %v707_v63  ;;  %v885_v4 = vadd.f32 %v1164_v60, %v804_v62 }
 0x16a   : > { %v879_v5 = vadd.f32 %v878_v2, %v798_v1  ;;  %v891_v9 = vadd.f32 %v889_v6, %v885_v4 }
 0x16c   : > { %v890_v7 = vadd.f32 %v888_v3, %v879_v5  ;;  %v895_v10 = vsel %vm353_vm1, %v891_v9, 0.0 }
 0x16e   : > { %v892_v8 = vsel %vm353_vm1, %v890_v7, 0.0 }
 0x16f   : > { %893 = vadd.xlane.f32.xlu1 %v892_v8 }
 0x173   : > { %896 = vadd.xlane.f32.xlu1 %v895_v10 }
 0x1f8   : > { %v894_v11 = vpop.xlane.xlu1 %893 }
 0x1f9   : > { %v899_v12 = vmul.f32 0.03125, %v894_v11 }
 0x1fb   : > { %v901_v13 = vsub.f32 %v890_v7, %v899_v12 }
 0x1fc   : > { %v897_v14 = vpop.xlane.xlu1 %896 }
 0x1fd   : > { %v900_v15 = vmul.f32 0.03125, %v897_v14  ;;  %v903_v16 = vmul.f32 %v901_v13, %v901_v13 }
 0x1ff   : > { %v902_v17 = vsub.f32 %v891_v9, %v900_v15  ;;  %v905_v18 = vsel %vm353_vm1, %v903_v16, 0.0 }
 0x200   : > { %906 = vadd.xlane.f32.xlu0 %v905_v18 }
 0x201   : > { %v904_v19 = vmul.f32 %v902_v17, %v902_v17 }
 0x203   : > { %v908_v20 = vsel %vm353_vm1, %v904_v19, 0.0 }
 0x204   : > { %909 = vadd.xlane.f32.xlu1 %v908_v20 }
 0x289   : > { %v907_v21 = vpop.xlane.xlu0 %906 }
 0x28a   : > { %v911_v22 = vmul.f32 0.03125, %v907_v21 }
 0x28c   : > { %v913_v23 = vadd.f32 1e-05, %v911_v22 }
 0x28d   : > { %v910_v24 = vpop.xlane.xlu1 %909 }
 0x28e   : > { %1190 = vrsqrt.f32 %v913_v23  ;;  %v912_v25 = vmul.f32 0.03125, %v910_v24 }
 0x290   : > { %v914_v26 = vadd.f32 1e-05, %v912_v25 }
 0x292   : > { %1192 = vrsqrt.f32 %v914_v26 }
 0x29b   : > { %v1191_v27 = vpop.eup %1190 }
 0x29c   : > { %v917_v29 = vmul.f32 %v1191_v27, %v901_v13 }
 0x29e   : > { %v926_v31 = vmul.f32 %v1056_v28, %v917_v29 }
 0x29f   : > { %v1193_v32 = vpop.eup %1192 }
 0x2a0   : > { %v935_v33 = vadd.f32 %v1057_v30, %v926_v31  ;;  %v918_v34 = vmul.f32 %v1193_v32, %v902_v17 }
 0x2a2   : > { %937 = vst.msk [vmem:[%s325_s30] sm:$0xff] %vm353_vm1, %v935_v33  ;;  %v927_v35 = vmul.f32 %v1056_v28, %v918_v34 }
 0x2a4   : > { %v936_v36 = vadd.f32 %v1057_v30, %v927_v35 }
 0x2a6   : > { %938 = vst.msk [vmem:[%s325_s30 + $0x8] sm:$0xff] %vm353_vm1, %v936_v36 }
 0x2a7 PF: > { %s16_s23 = sadd.s32 1, %s1216_s23   ;;  %s1420_s21 = smov %s1212_s22 }
 0x2a8   : > { %p13_p5 = scmp.ge.s32.totalorder %s16_s23, 4   ;;  %s1421_s22 = smov %s1423_s24 }
 0x2aa   :  { %15 = sbr.rel (!%p13_p5) target bundleno = 2 (0x2), region = 77 }

// kernel: longnet_layer.6
= control target key start
LH: loop header
LB: loop body
LE: loop exit
PB: predicated region body
PF: predicated region fallthrough
CT: control target
= control target key end

     0   :  { %s1668_s12 = smov 0   ;;  %s1670_s13 = smov 0   ;;  %s1795_s0 = inlined_call_operand.vmem [shape: f32[2,2,4,1,4,16], index: 0, kind: input, shape index: {}]   ;;  %s1796_s1 = inlined_call_operand.vmem [shape: f32[2,2,4,1,4,16], index: 1, kind: input, shape index: {}]   ;;  %s1797_s2 = inlined_call_operand.vmem [shape: f32[2,2,4,1,4,16], index: 2, kind: input, shape index: {}]   ;;  %s1798_s3 = inlined_call_operand.vmem [shape: f32[2,2,4,1,4,16], index: 3, kind: output, shape index: {}]  }
   0x1   :  { %s1672_s14 = smov 0   ;;  %s1674_s15 = smov 0  }
   0x2   :  { %s1676_s16 = smov 0   ;;  %s1678_s17 = smov 0  }
   0x3   :  { %s1680_s18 = smov 0  }
   0x4 LB: > { %s25_s19 = sadd.s32 1, %s1632_s15  ;;  %s28_s20 = sadd.s32 1, %s1636_s16  ;;  %s1644_s18 = sphi %s1680_s18, %s13_s18   ;;  %s1640_s17 = sphi %s1678_s17, %s1804_s17   ;;  %s1636_s16 = sphi %s1676_s16, %s1803_s16   ;;  %s1632_s15 = sphi %s1674_s15, %s1802_s15   ;;  %s1628_s14 = sphi %s1672_s14, %s1801_s14   ;;  %s1624_s13 = sphi %s1670_s13, %s1800_s13   ;;  %s1620_s12 = sphi %s1668_s12, %s1799_s12  }
   0x5   : > { %p26_p0 = scmp.ge.s32.totalorder %s25_s19, 4  ;;  %p1427_p1 = scmp.ge.s32.totalorder %s1644_s18, 1 }
   0x6   : > { %p213_p2 = scmp.lt.s32.totalorder %s1644_s18, 17  ;;  %s32_s21 = sadd.s32 1, %s1640_s17 }
   0x7   : > { %s1806_s19 = smov (%p26_p0, %s25_s19), 0  ;;  %s1808_s20 = smov (!%p26_p0, %s28_s20), %s1636_s16 }
   0x8   : > { %p214_p3 = pnand %p1427_p1, %p213_p2  ;;  %p30_p4 = scmp.ge.s32.totalorder %s1808_s20, 2 }
   0x9   : > { %p275_p6 = scmp.lt.s32.totalorder (!%p214_p3), %s1628_s14, 1  ;;  %p277_p7 = scmp.lt.s32.totalorder (!%p214_p3), %s1624_s13, 1 }
   0xa   : > { %s1810_s20 = smov (%p30_p4, %s1808_s20), 0  ;;  %s1812_s21 = smov (!%p30_p4, %s32_s21), %s1640_s17 }
   0xb   : > { %p34_p5 = scmp.ge.s32.totalorder %s1812_s21, 2  ;;  %217 = sbr.rel (%p214_p3) target bundleno = 623 (0x26f), region = 32 }
   0xc   : > { %p279_p8 = scmp.lt.s32.totalorder (!%p214_p3), %s1620_s12, 3 }
   0xd   : > { %s1814_s21 = smov (%p34_p5, %s1812_s21), 0 }
  0x10   : > { %v1646_v0 = vmov 0.0   ;;  %vm1647_vm0 = vmmov 0   ;;  %s1816_s14 = smov (!%p275_p6, %s1628_s14), 1  ;;  %s1818_s13 = smov (!%p277_p7, %s1624_s13), 1  ;;  %vm330_vm1 = vcmask 130048   ;;  %v326_v21 = vlaneseq }
  0x11   : > { %1466 = vmatprep.subr.mxu0 %v1646_v0  ;;  %1468 = vmatprep.mubr.msk.f32.mxu0 %vm1647_vm0, %v1646_v0  ;;  %s1820_s12 = smov (!%p279_p8, %s1620_s12), 3  ;;  %s1428_s22 = sshll.u32 %s1818_s13, 2  ;;  %vm786_vm3 = vcmask 27648   ;;  %vm805_vm4 = vcmask 1043456   ;;  %vm801_vm5 = vcmask 31744   ;;  %vm1259_vm6 = vcmask 125952  }
  0x12   : > { %1471 = vmatprep.subr.mxu1 %v1646_v0  ;;  %1473 = vmatprep.mubr.msk.f32.mxu1 %vm1647_vm0, %v1646_v0  ;;  %s1429_s23 = sshll.u32 %s1816_s14, 3  ;;  %s282_s24 = sadd.s32 %s1428_s22, %s1820_s12  ;;  %v327_v28 = vshrl.u32 %v326_v21, 7  ;;  %v329_v29 = vand.u32 127, %v326_v21 }
  0x13   : > { %s284_s25 = sadd.s32 %s1429_s23, %s282_s24 }
  0x14   : > { %s1724_s26 = sshll.u32 %s284_s25, 2  ;;  %vm784_vm2 = vcmp.le.s32.totalorder %v329_v29, %v327_v28 }
  0x15   : > { %s298_s29 = scalar_lea.vmem %s1796_s1, %s1724_s26  ;;  %s286_s5 = scalar_lea.vmem %s1795_s0, %s1724_s26 }
  0x16   : > { %v324_v1 = vld [vmem:[%s298_s29] sm:$0xf]  ;;  %s310_s8 = scalar_lea.vmem %s1797_s2, %s1724_s26  ;;  %s322_s11 = scalar_lea.vmem %s1798_s3, %s1724_s26 }
  0x17   : > { %v323_v2 = vld [vmem:[%s286_s5] sm:$0xf]  ;;  %v335_v3 = vsel %vm330_vm1, %v324_v1, 0 }
  0x18   : > { %v332_v4 = vsel %vm330_vm1, %v323_v2, 0  ;;  %v368_v5 = vand.u32 4294901760, %v335_v3  ;;  %v325_v38 = vld [vmem:[%s310_s8] sm:$0xf] }
  0x19   : > { %v403_v6 = vand.u32 4294901760, %v332_v4  ;;  %v807_v39 = vsel %vm805_vm4, %v325_v38, 0 }
  0x1a   : > { %1467 = vmatpush3.xpose.msra.mxu0 %v368_v5  ;;  %v445_v8 = vsub.f32 %v335_v3, %v368_v5  ;;  %v840_v40 = vand.u32 4294901760, %v807_v39 }
  0x1b   : > { %v404_v7 = vsub.f32 %v332_v4, %v403_v6  ;;  %1476 = vmatprep.subr.mxu0 %v1646_v0 }
  0x1c   : > { %v446_v10 = vand.u32 4294901760, %v445_v8  ;;  %v917_v41 = vsub.f32 %v807_v39, %v840_v40 }
  0x1d   : > { %v405_v9 = vand.u32 4294901760, %v404_v7 }
  0x1e   : > { %v447_v12 = vsub.f32 %v445_v8, %v446_v10  ;;  %v918_v42 = vand.u32 4294901760, %v917_v41 }
  0x1f   : > { %v406_v11 = vsub.f32 %v404_v7, %v405_v9 }
  0x20   : > { %v448_v14 = vand.u32 4294901760, %v447_v12  ;;  %v919_v43 = vsub.f32 %v917_v41, %v918_v42 }
  0x21   : > { %v407_v13 = vand.u32 4294901760, %v406_v11 }
  0x22   : > { %1472 = vmatpush3.xpose.msra.mxu1 %v448_v14  ;;  %v920_v44 = vand.u32 4294901760, %v919_v43 }
  0x23   : > { %1469 = vmatmul.mubr.f32.vlgmr.msra.gmra.mxu0 %v407_v13  ;;  %1481 = vmatprep.subr.mxu1 %v1646_v0 }
  0x24   : > { %1477 = vmatpush3.xpose.msra.mxu0 %v445_v8  ;;  %1478 = vmatprep.mubr.msk.f32.mxu0 %vm1647_vm0, %v1646_v0 }
  0x25   : > { %1486 = vmatprep.subr.mxu0 %v1646_v0  ;;  %1474 = vmatmul.mubr.f32.vlgmr.msra.gmra.mxu1 %v403_v6 }
  0x26   : > { %1482 = vmatpush3.xpose.msra.mxu1 %v368_v5  ;;  %1483 = vmatprep.mubr.msk.f32.mxu1 %vm1647_vm0, %v1646_v0 }
  0x27   : > { %1479 = vmatmul.mubr.f32.vlgmr.msra.gmra.mxu0 %v404_v7  ;;  %1491 = vmatprep.subr.mxu1 %v1646_v0 }
  0x28   : > { %1487 = vmatpush3.xpose.msra.mxu0 %v446_v10  ;;  %1488 = vmatprep.mubr.msk.f32.mxu0 %vm1647_vm0, %v1646_v0 }
  0x29   : > { %1484 = vmatmul.mubr.f32.vlgmr.msra.gmra.mxu1 %v405_v9  ;;  %1496 = vmatprep.subr.mxu0 %v1646_v0 }
  0x2a   : > { %1492 = vmatpush3.xpose.msra.mxu1 %v368_v5  ;;  %1493 = vmatprep.mubr.msk.f32.mxu1 %vm1647_vm0, %v1646_v0 }
  0x2b   : > { %1489 = vmatmul.mubr.f32.vlgmr.msra.gmra.mxu0 %v403_v6  ;;  %1501 = vmatprep.subr.mxu1 %v1646_v0 }
  0x2c   : > { %1498 = vmatprep.mubr.msk.f32.mxu0 %vm1647_vm0, %v1646_v0  ;;  %1497 = vmatpush3.msra.mxu0 %v840_v40 }
  0x2d   : > { %1494 = vmatmul.mubr.f32.vlgmr.msra.gmra.mxu1 %v403_v6  ;;  %1506 = vmatprep.subr.mxu0 %v1646_v0 }
  0x2e   : > { %1503 = vmatprep.mubr.msk.f32.mxu1 %vm1647_vm0, %v1646_v0  ;;  %1502 = vmatpush3.msra.mxu1 %v920_v44 }
  0x2f   : > { %1511 = vmatprep.subr.mxu1 %v1646_v0 }
  0xe3   : > { %v409_v15 = vpop.f32.mrf.mxu0 }
  0xe5   : > { %v1470_v16 = vpop.f32.mrf.mxu0  ;;  %v485_v17 = vpop.f32.mrf.mxu1 }
  0xe6   : > { %v486_v18 = vadd.f32 %v485_v17, %v409_v15 }
  0xe7   : > { %v559_v19 = vpop.f32.mrf.mxu0  ;;  %v1475_v20 = vpop.f32.mrf.mxu1 }
  0xe8   : > { %v560_v22 = vadd.f32 %v559_v19, %v486_v18 }
  0xe9   : > { %v1480_v23 = vpop.f32.mrf.mxu0  ;;  %v633_v24 = vpop.f32.mrf.mxu1 }
  0xea   : > { %v634_v25 = vadd.f32 %v633_v24, %v560_v22 }
  0xeb   : > { %v707_v26 = vpop.f32.mrf.mxu0  ;;  %v1485_v27 = vpop.f32.mrf.mxu1 }
  0xec   : > { %v708_v30 = vadd.f32 %v707_v26, %v634_v25 }
  0xed   : > { %v1490_v31 = vpop.f32.mrf.mxu0  ;;  %v779_v32 = vpop.f32.mrf.mxu1 }
  0xee   : > { %v780_v33 = vadd.f32 %v779_v32, %v708_v30 }
  0xef   : > { %v1495_v34 = vpop.f32.mrf.mxu1 }
  0xf0   : > { %v783_v35 = vmul.f32 0.25, %v780_v33 }
  0xf2   : > { %v785_v36 = vsel %vm784_vm2, %v783_v35, -1e+30 }
  0xf3   : > { %v787_v37 = vsel %vm786_vm3, %v785_v36, -inf }
  0xf4   : > { %788 = vmax.xlane.f32.xlu0 %v787_v37 }
 0x17d   : > { %v789_v45 = vpop.xlane.xlu0 %788 }
 0x17e   : > { %v793_v46 = vsub.f32 %v785_v36, %v789_v45  ;;  %v790_v56 = vsub.f32 -inf, %v789_v45 }
 0x180   : > { %v794_v47 = vmul.f32 1.442695, %v793_v46  ;;  %v791_v57 = vmul.f32 1.442695, %v790_v56 }
 0x182   : > { %1584 = vpow2.f32 %v794_v47 }
 0x183   : > { %1586 = vpow2.f32 %v791_v57 }
 0x18f   : > { %v1585_v48 = vpop.eup %1584 }
 0x190   : > { %v797_v49 = vsel %vm786_vm3, %v1585_v48, 0.0  ;;  %v803_v50 = vsel %vm801_vm5, %v1585_v48, 0  ;;  %v1587_v58 = vpop.eup %1586 }
 0x191   : > { %798 = vadd.xlane.f32.xlu0 %v797_v49  ;;  %v875_v51 = vand.u32 4294901760, %v803_v50  ;;  %v796_v62 = vmul.f32 0.0, %v1587_v58 }
 0x193   : > { %v876_v52 = vsub.f32 %v803_v50, %v875_v51  ;;  %1504 = vmatmul.mubr.f32.vlgmr.msra.gmra.mxu1 %v875_v51 }
 0x194   : > { %1512 = vmatpush3.msra.mxu1 %v840_v40  ;;  %1513 = vmatprep.mubr.msk.f32.mxu1 %vm1647_vm0, %v1646_v0 }
 0x195   : > { %v877_v53 = vand.u32 4294901760, %v876_v52  ;;  %1521 = vmatprep.subr.mxu1 %v1646_v0 }
 0x197   : > { %1514 = vmatmul.mubr.f32.vlgmr.msra.gmra.mxu1 %v877_v53  ;;  %v878_v54 = vsub.f32 %v876_v52, %v877_v53 }
 0x198   : > { %1522 = vmatpush3.msra.mxu1 %v840_v40  ;;  %1523 = vmatprep.mubr.msk.f32.mxu1 %vm1647_vm0, %v1646_v0 }
 0x199   : > { %v879_v55 = vand.u32 4294901760, %v878_v54 }
 0x19b   : > { %1499 = vmatmul.mubr.f32.vlgmr.msra.gmra.mxu0 %v879_v55  ;;  %1524 = vmatmul.mubr.f32.vlgmr.msra.gmra.mxu1 %v875_v51 }
 0x19c   : > { %1507 = vmatpush3.msra.mxu0 %v917_v41  ;;  %1508 = vmatprep.mubr.msk.f32.mxu0 %vm1647_vm0, %v1646_v0 }
 0x19d   : > { %1516 = vmatprep.subr.mxu0 %v1646_v0 }
 0x19f   : > { %1509 = vmatmul.mubr.f32.vlgmr.msra.gmra.mxu0 %v876_v52 }
 0x1a0   : > { %1517 = vmatpush3.msra.mxu0 %v918_v42  ;;  %1518 = vmatprep.mubr.msk.f32.mxu0 %vm1647_vm0, %v1646_v0 }
 0x1a3   : > { %1519 = vmatmul.mubr.f32.vlgmr.msra.gmra.mxu0 %v875_v51 }
 0x21a   : > { %v799_v60 = vpop.xlane.xlu0 %798 }
 0x21b   : > { %v800_v1 = vadd.f32 %v799_v60, %v796_v62 }
 0x21d   : > { %1588 = vrcp.f32 %v800_v1 }
 0x22a   : > { %v1589_v16 = vpop.eup %1588 }
 0x253   : > { %v957_v59 = vpop.f32.mrf.mxu1 }
 0x255   : > { %v1505_v61 = vpop.f32.mrf.mxu1 }
 0x257   : > { %v1105_v63 = vpop.f32.mrf.mxu1 }
 0x259   : > { %v1515_v2 = vpop.f32.mrf.mxu1 }
 0x25b   : > { %v881_v3 = vpop.f32.mrf.mxu0  ;;  %v1251_v4 = vpop.f32.mrf.mxu1 }
 0x25c   : > { %v958_v7 = vadd.f32 %v957_v59, %v881_v3 }
 0x25d   : > { %v1500_v5 = vpop.f32.mrf.mxu0  ;;  %v1525_v6 = vpop.f32.mrf.mxu1 }
 0x25f   : > { %v1031_v0 = vpop.f32.mrf.mxu0 }
 0x260   : > { %v1032_v8 = vadd.f32 %v1031_v0, %v958_v7 }
 0x261   : > { %v1510_v9 = vpop.f32.mrf.mxu0 }
 0x262   : > { %v1106_v10 = vadd.f32 %v1105_v63, %v1032_v8 }
 0x263   : > { %v1179_v11 = vpop.f32.mrf.mxu0 }
 0x264   : > { %v1180_v12 = vadd.f32 %v1179_v11, %v1106_v10 }
 0x265   : > { %v1520_v13 = vpop.f32.mrf.mxu0 }
 0x266   : > { %v1252_v14 = vadd.f32 %v1251_v4, %v1180_v12 }
 0x268   : > { %v1255_v15 = vadd.f32 %v1252_v14, %v796_v62 }
 0x26a   : > { %v1257_v17 = vmul.f32 %v1589_v16, %v1255_v15 }
 0x26c   : > { %v1258_v18 = vmul.f32 0.5, %v1257_v17 }
 0x26e   : > { %1260 = vst.msk [vmem:[%s322_s11] sm:$0xf] %vm1259_vm6, %v1258_v18 }
 0x26f PF: > { %s13_s18 = sadd.s32 1, %s1644_s18   ;;  %s1799_s12 = smov %s1632_s15 }
 0x270   : > { %p10_p9 = scmp.ge.s32.totalorder %s13_s18, 18   ;;  %s1800_s13 = smov %s1636_s16 }
 0x271   : > { %s1801_s14 = smov %s1640_s17  ;;  %s1802_s15 = smov %s1806_s19 }
 0x272   : > { %s1803_s16 = smov %s1810_s20  ;;  %s1804_s17 = smov %s1814_s21 }
 0x273   :  { %12 = sbr.rel (!%p10_p9) target bundleno = 4 (0x4), region = 68 }

// kernel: longnet_layer.9
= control target key start
LH: loop header
LB: loop body
LE: loop exit
PB: predicated region body
PF: predicated region fallthrough
CT: control target
= control target key end

     0   :  { %vm31_vm0 = vcmask 261120   ;;  %s2789_s0 = inlined_call_operand.vmem [shape: f32[32,32], index: 0, kind: input, shape index: {}]   ;;  %s2790_s1 = inlined_call_operand.vmem [shape: f32[32,128], index: 1, kind: input, shape index: {}]   ;;  %s2791_s2 = inlined_call_operand.vmem [shape: f32[1,128], index: 2, kind: input, shape index: {}]   ;;  %s2792_s3 = inlined_call_operand.vmem [shape: f32[128,32], index: 3, kind: input, shape index: {}]   ;;  %s2793_s4 = inlined_call_operand.vmem [shape: f32[1,32], index: 4, kind: input, shape index: {}]   ;;  %s2794_s5 = inlined_call_operand.vmem [shape: f32[1,32], index: 5, kind: input, shape index: {}]   ;;  %s2795_s6 = inlined_call_operand.vmem [shape: f32[1,32], index: 6, kind: input, shape index: {}]   ;;  %s2796_s7 = inlined_call_operand.hbm [shape: f32[32,32], index: 7, kind: output, shape index: {}]  }
   0x1   :  { %v43_v0 = vld [vmem:[%s2790_s1 + $0x18] sm:$0xff]  ;;  %v42_v1 = vld [vmem:[%s2790_s1 + $0x10] sm:$0xff]  ;;  %v41_v2 = vld [vmem:[%s2790_s1 + $0x8] sm:$0xff] }
   0x2   :  { %v2196_v3 = vand.u32 4294901760, %v43_v0  ;;  %v2198_v4 = vand.u32 4294901760, %v42_v1  ;;  %v2200_v5 = vand.u32 4294901760, %v41_v2  ;;  %v40_v6 = vld [vmem:[%s2790_s1] sm:$0xff]  ;;  %v37_v8 = vld [vmem:[%s2789_s0 + $0x8] sm:$0xff]  ;;  %v38_v12 = vld [vmem:[%s2789_s0 + $0x10] sm:$0xff] }
   0x3   :  { %v36_v7 = vld [vmem:[%s2789_s0] sm:$0xff]  ;;  %v2211_v9 = vand.u32 4294901760, %v40_v6  ;;  %v56_v11 = vsel %vm31_vm0, %v37_v8, 0  ;;  %v39_v13 = vld [vmem:[%s2789_s0 + $0x18] sm:$0xff] }
   0x4   :  { %v53_v10 = vsel %vm31_vm0, %v36_v7, 0  ;;  %1785 = vmatprep.subr.mxu0 %v2196_v3  ;;  %v199_v14 = vsub.f32 %v43_v0, %v2196_v3  ;;  %v2225_v16 = vand.u32 4294901760, %v56_v11  ;;  %v206_v17 = vsub.f32 %v42_v1, %v2198_v4 }
   0x5   :  { %v2223_v15 = vand.u32 4294901760, %v53_v10 }
   0x6   :  { %12 = vsyncpa [#allocation4], 0  ;;  %1786 = vmatpush3.msra.mxu0 %v2196_v3  ;;  %v213_v18 = vsub.f32 %v41_v2, %v2200_v5  ;;  %v59_v19 = vsel %vm31_vm0, %v38_v12, 0  ;;  %v62_v20 = vsel %vm31_vm0, %v39_v13, 0  ;;  %v220_v21 = vsub.f32 %v40_v6, %v2211_v9  ;;  %v717_v52 = vld [vmem:[%s2792_s3 + $0x78] sm:$0xff]  ;;  %v716_v54 = vld [vmem:[%s2792_s3 + $0x70] sm:$0xff] }
   0x7   :  { %1787 = vmatprep.subr.mxu0 %v2198_v4  ;;  %v2234_v22 = vand.u32 4294901760, %v199_v14  ;;  %v2237_v23 = vsub.f32 %v53_v10, %v2223_v15  ;;  %v2240_v24 = vsub.f32 %v56_v11, %v2225_v16  ;;  %v2242_v25 = vand.u32 4294901760, %v206_v17  ;;  %1807 = vmatprep.mubr.f32.mxu1 %v2223_v15  ;;  %v715_v57 = vld [vmem:[%s2792_s3 + $0x68] sm:$0xff]  ;;  %v714_v61 = vld [vmem:[%s2792_s3 + $0x60] sm:$0xff]  ;;  %v713_v2 = vld [vmem:[%s2792_s3 + $0x58] sm:$0xff] }
   0x8   :  { %1788 = vmatpush3.msra.mxu0 %v2198_v4  ;;  %v2246_v26 = vand.u32 4294901760, %v213_v18  ;;  %v2248_v27 = vand.u32 4294901760, %v59_v19  ;;  %v2250_v28 = vand.u32 4294901760, %v62_v20  ;;  %v2252_v29 = vand.u32 4294901760, %v220_v21  ;;  %v712_v8 = vld [vmem:[%s2792_s3 + $0x50] sm:$0xff] }
   0x9   :  { %1789 = vmatprep.subr.mxu0 %v2200_v5  ;;  %v201_v30 = vsub.f32 %v199_v14, %v2234_v22  ;;  %v135_v31 = vand.u32 4294901760, %v2237_v23  ;;  %v145_v32 = vand.u32 4294901760, %v2240_v24  ;;  %v208_v33 = vsub.f32 %v206_v17, %v2242_v25 }
   0xa   :  { %1790 = vmatpush3.msra.mxu0 %v2200_v5  ;;  %v215_v34 = vsub.f32 %v213_v18, %v2246_v26  ;;  %v2262_v35 = vsub.f32 %v59_v19, %v2248_v27  ;;  %v2265_v36 = vsub.f32 %v62_v20, %v2250_v28  ;;  %v222_v43 = vsub.f32 %v220_v21, %v2252_v29  ;;  %v710_v20 = vld [vmem:[%s2792_s3 + $0x40] sm:$0xff] }
   0xb   :  { %1791 = vmatprep.subr.mxu0 %v2211_v9  ;;  %v202_v37 = vand.u32 4294901760, %v201_v30  ;;  %v136_v38 = vsub.f32 %v2237_v23, %v135_v31  ;;  %v146_v39 = vsub.f32 %v2240_v24, %v145_v32  ;;  %v209_v40 = vand.u32 4294901760, %v208_v33 }
   0xc   :  { %1792 = vmatpush3.msra.mxu0 %v2211_v9  ;;  %v155_v41 = vand.u32 4294901760, %v2262_v35  ;;  %v165_v42 = vand.u32 4294901760, %v2265_v36  ;;  %v216_v46 = vand.u32 4294901760, %v215_v34  ;;  %v223_v51 = vand.u32 4294901760, %v222_v43 }
   0xd   :  { %1799 = vmatprep.subr.mxu1 %v202_v37  ;;  %v137_v44 = vand.u32 4294901760, %v136_v38  ;;  %v147_v45 = vand.u32 4294901760, %v146_v39  ;;  %1813 = vmatprep.subr.mxu0 %v199_v14  ;;  %v2326_v53 = vand.u32 4294901760, %v717_v52  ;;  %v2334_v56 = vand.u32 4294901760, %v716_v54  ;;  %v707_v38 = vld [vmem:[%s2792_s3 + $0x28] sm:$0xff] }
   0xe   :  { %1800 = vmatpush3.msra.mxu1 %v202_v37  ;;  %v156_v47 = vsub.f32 %v2262_v35, %v155_v41  ;;  %v166_v48 = vsub.f32 %v2265_v36, %v165_v42  ;;  %v2347_v60 = vand.u32 4294901760, %v715_v57  ;;  %v2362_v1 = vand.u32 4294901760, %v714_v61 }
   0xf   :  { %1793 = vmatprep.mubr.f32.mxu0 %v137_v44  ;;  %1801 = vmatprep.subr.mxu1 %v209_v40  ;;  %v2332_v55 = vsub.f32 %v717_v52, %v2326_v53  ;;  %v2345_v59 = vsub.f32 %v716_v54, %v2334_v56  ;;  %v2378_v7 = vand.u32 4294901760, %v713_v2  ;;  %v2389_v12 = vand.u32 4294901760, %v712_v8  ;;  %v706_v44 = vld [vmem:[%s2792_s3 + $0x20] sm:$0xff] }
  0x10   :  { %1794 = vmatmul.mubr.f32.vlgmr.msra.gmra.mxu0 %v147_v45  ;;  %1802 = vmatpush3.msra.mxu1 %v209_v40  ;;  %v157_v49 = vand.u32 4294901760, %v156_v47  ;;  %v167_v50 = vand.u32 4294901760, %v166_v48  ;;  %v2360_v0 = vsub.f32 %v715_v57, %v2347_v60  ;;  %v2375_v6 = vsub.f32 %v714_v61, %v2362_v1 }
  0x11   :  { %1814 = vmatpush3.msra.mxu0 %v199_v14  ;;  %1803 = vmatprep.subr.mxu1 %v216_v46  ;;  %v2342_v58 = vand.u32 4294901760, %v2332_v55  ;;  %v2357_v63 = vand.u32 4294901760, %v2345_v59  ;;  %v2392_v13 = vsub.f32 %v713_v2, %v2378_v7  ;;  %v711_v14 = vld [vmem:[%s2792_s3 + $0x48] sm:$0xff]  ;;  %v2478_v48 = vand.u32 4294901760, %v706_v44 }
  0x12   :  { %1815 = vmatprep.subr.mxu0 %v206_v17  ;;  %1796 = vmatprep.mubr.f32.mxu0 %v157_v49  ;;  %v2387_v11 = vand.u32 4294901760, %v2375_v6 }
  0x13   :  { %1804 = vmatpush3.msra.mxu1 %v216_v46  ;;  %1816 = vmatpush3.msra.mxu0 %v206_v17  ;;  %2831 = vst [vmem:[#allocation6_spill] sm:$0xff] %v2342_v58  ;;  %v843_v62 = vsub.f32 %v2332_v55, %v2342_v58  ;;  %2832 = vst [vmem:[#allocation7_spill] sm:$0xff] %v2357_v63  ;;  %v2401_v17 = vsub.f32 %v712_v8, %v2389_v12  ;;  %v2407_v19 = vand.u32 4294901760, %v2392_v13 }
  0x14   :  { %1797 = vmatmul.mubr.f32.gmra.mxu0 %v167_v50  ;;  %1805 = vmatprep.subr.mxu1 %v223_v51  ;;  %2834 = vst [vmem:[#allocation9_spill] sm:$0xff] %v2387_v11  ;;  %v705_v50 = vld [vmem:[%s2792_s3 + $0x18] sm:$0xff]  ;;  %v2492_v54 = vsub.f32 %v706_v44, %v2478_v48 }
  0x15   :  { %1817 = vmatprep.subr.mxu0 %v213_v18  ;;  %1806 = vmatpush3.msra.mxu1 %v223_v51  ;;  %2835 = vst [vmem:[#allocation10_spill] sm:$0xff] %v2407_v19  ;;  %v2494_v57 = vand.u32 4294901760, %v705_v50 }
  0x16   :  { %1818 = vmatpush3.msra.mxu0 %v213_v18  ;;  %1808 = vmatmul.mubr.f32.vlgmr.msra.gmra.mxu1 %v2225_v16  ;;  %v2403_v18 = vand.u32 4294901760, %v711_v14 }
  0x17   :  { %1819 = vmatprep.subr.mxu0 %v220_v21  ;;  %1827 = vmatprep.subr.mxu1 %v2196_v3 }
  0x18   :  { %1820 = vmatpush3.msra.mxu0 %v220_v21  ;;  %1821 = vmatprep.mubr.f32.mxu0 %v2237_v23  ;;  %v2417_v23 = vsub.f32 %v711_v14, %v2403_v18 }
  0x19   :  { %1828 = vmatpush3.msra.mxu1 %v2196_v3  ;;  %1822 = vmatmul.mubr.f32.vlgmr.msra.gmra.mxu0 %v2240_v24  ;;  %v2419_v24 = vand.u32 4294901760, %v710_v20 }
  0x1a   :  { %1829 = vmatprep.subr.mxu1 %v2198_v4  ;;  %1841 = vmatprep.subr.mxu0 %v2234_v22 }
  0x1b   :  { %1810 = vmatprep.mubr.f32.mxu1 %v2248_v27  ;;  %1830 = vmatpush3.msra.mxu1 %v2198_v4 }
  0x1c   :  { %1842 = vmatpush3.msra.mxu0 %v2234_v22  ;;  %1811 = vmatmul.mubr.f32.gmra.mxu1 %v2250_v28  ;;  %v2414_v22 = vand.u32 4294901760, %v2401_v17 }
  0x1d   :  { %1831 = vmatprep.subr.mxu1 %v2200_v5  ;;  %1843 = vmatprep.subr.mxu0 %v2242_v25 }
  0x1e   :  { %1824 = vmatprep.mubr.f32.mxu0 %v2262_v35  ;;  %1832 = vmatpush3.msra.mxu1 %v2200_v5  ;;  %2836 = vst [vmem:[#allocation11_spill] sm:$0xff] %v2414_v22 }
  0x1f   :  { %1844 = vmatpush3.msra.mxu0 %v2242_v25  ;;  %1833 = vmatprep.subr.mxu1 %v2211_v9  ;;  %v871_v25 = vsub.f32 %v2392_v13, %v2407_v19 }
  0x20   :  { %1825 = vmatmul.mubr.f32.gmra.mxu0 %v2265_v36  ;;  %1845 = vmatprep.subr.mxu0 %v2246_v26 }
  0x21   :  { %1834 = vmatpush3.msra.mxu1 %v2211_v9  ;;  %1835 = vmatprep.mubr.f32.mxu1 %v135_v31  ;;  %v872_v31 = vand.u32 4294901760, %v871_v25  ;;  %v702_v25 = vld [vmem:[%s2792_s3] sm:$0xff] }
  0x22   :  { %1846 = vmatpush3.msra.mxu0 %v2246_v26  ;;  %1836 = vmatmul.mubr.f32.vlgmr.msra.gmra.mxu1 %v145_v32  ;;  %v709_v26 = vld [vmem:[%s2792_s3 + $0x38] sm:$0xff]  ;;  %v708_v32 = vld [vmem:[%s2792_s3 + $0x30] sm:$0xff] }
  0x23   :  { %1847 = vmatprep.subr.mxu0 %v2252_v29  ;;  %1855 = vmatprep.subr.mxu1 %v2196_v3  ;;  %v2436_v30 = vand.u32 4294901760, %v709_v26  ;;  %v2452_v37 = vand.u32 4294901760, %v708_v32 }
  0x24   :  { %1848 = vmatpush3.msra.mxu0 %v2252_v29  ;;  %1849 = vmatprep.mubr.f32.mxu0 %v2223_v15  ;;  %v2434_v29 = vsub.f32 %v710_v20, %v2419_v24 }
  0x25   :  { %1856 = vmatpush3.msra.mxu1 %v2196_v3  ;;  %1850 = vmatmul.mubr.f32.vlgmr.msra.gmra.mxu0 %v2225_v16  ;;  %v844_v3 = vand.u32 4294901760, %v843_v62  ;;  %v2449_v36 = vsub.f32 %v709_v26, %v2436_v30  ;;  %v2467_v43 = vsub.f32 %v708_v32, %v2452_v37  ;;  %v704_v62 = vld [vmem:[%s2792_s3 + $0x10] sm:$0xff]  ;;  %v2538_v32 = vand.u32 4294901760, %v702_v25 }
  0x26   :  { %1857 = vmatprep.subr.mxu1 %v2198_v4  ;;  %1838 = vmatprep.mubr.f32.mxu1 %v155_v41  ;;  %v2446_v35 = vand.u32 4294901760, %v2434_v29  ;;  %v2511_v8 = vand.u32 4294901760, %v704_v62 }
  0x27   :  { %1858 = vmatpush3.msra.mxu1 %v2198_v4  ;;  %1852 = vmatprep.mubr.f32.mxu0 %v2248_v27  ;;  %v850_v4 = vsub.f32 %v2345_v59, %v2357_v63  ;;  %v2461_v41 = vand.u32 4294901760, %v2449_v36  ;;  %v2482_v49 = vand.u32 4294901760, %v2467_v43 }
  0x28   :  { %1839 = vmatmul.mubr.f32.gmra.mxu1 %v165_v42  ;;  %1859 = vmatprep.subr.mxu1 %v2200_v5  ;;  %2838 = vst [vmem:[#allocation13_spill] sm:$0xff] %v2446_v35  ;;  %v892_v40 = vsub.f32 %v2434_v29, %v2446_v35  ;;  %v2463_v42 = vand.u32 4294901760, %v707_v38  ;;  %v2524_v20 = vsub.f32 %v704_v62, %v2511_v8 }
  0x29   :  { %1860 = vmatpush3.msra.mxu1 %v2200_v5  ;;  %1853 = vmatmul.mubr.f32.gmra.mxu0 %v2250_v28  ;;  %v2372_v5 = vand.u32 4294901760, %v2360_v0  ;;  %2839 = vst [vmem:[#allocation14_spill] sm:$0xff] %v2461_v41  ;;  %v899_v46 = vsub.f32 %v2449_v36, %v2461_v41  ;;  %2840 = vst [vmem:[#allocation15_spill] sm:$0xff] %v2482_v49  ;;  %v906_v61 = vsub.f32 %v2467_v43, %v2482_v49 }
  0x2a   :  { %1861 = vmatprep.subr.mxu1 %v2211_v9  ;;  %1863 = vmatprep.mubr.f32.mxu1 %v2223_v15  ;;  %v893_v45 = vand.u32 4294901760, %v892_v40  ;;  %v2476_v47 = vsub.f32 %v707_v38, %v2463_v42 }
  0x2b   :  { %1862 = vmatpush3.msra.mxu1 %v2211_v9  ;;  %1869 = vmatprep.subr.mxu0 %v2326_v53  ;;  %2833 = vst [vmem:[#allocation8_spill] sm:$0xff] %v2372_v5  ;;  %v851_v9 = vand.u32 4294901760, %v850_v4  ;;  %v857_v10 = vsub.f32 %v2360_v0, %v2372_v5  ;;  %v900_v51 = vand.u32 4294901760, %v899_v46  ;;  %v2509_v4 = vsub.f32 %v705_v50, %v2494_v57 }
  0x2c   :  { %1864 = vmatmul.mubr.f32.vlgmr.msra.gmra.mxu1 %v2225_v16  ;;  %1870 = vmatpush3.msra.mxu0 %v2326_v53  ;;  %v864_v16 = vsub.f32 %v2375_v6, %v2387_v11  ;;  %v2489_v52 = vand.u32 4294901760, %v2476_v47 }
  0x2d   :  { %1866 = vmatprep.mubr.f32.mxu1 %v2248_v27  ;;  %1871 = vmatprep.subr.mxu0 %v2334_v56  ;;  %v858_v15 = vand.u32 4294901760, %v857_v10  ;;  %v878_v27 = vsub.f32 %v2401_v17, %v2414_v22  ;;  %v703_v10 = vld [vmem:[%s2792_s3 + $0x8] sm:$0xff] }
  0x2e   :  { %1872 = vmatpush3.msra.mxu0 %v2334_v56  ;;  %1907 = vmatprep.subr.mxu1 %v844_v3  ;;  %v865_v21 = vand.u32 4294901760, %v864_v16  ;;  %2841 = vst [vmem:[#allocation16_spill] sm:$0xff] %v2489_v52  ;;  %v913_v2 = vsub.f32 %v2476_v47, %v2489_v52  ;;  %v2521_v16 = vand.u32 4294901760, %v2509_v4 }
  0x2f   :  { %1873 = vmatprep.subr.mxu0 %v2347_v60  ;;  %1908 = vmatpush3.msra.mxu1 %v844_v3  ;;  %v879_v33 = vand.u32 4294901760, %v878_v27  ;;  %v2506_v3 = vand.u32 4294901760, %v2492_v54 }
  0x30   :  { %1867 = vmatmul.mubr.f32.gmra.mxu1 %v2250_v28  ;;  %1874 = vmatpush3.msra.mxu0 %v2347_v60  ;;  %v2431_v28 = vand.u32 4294901760, %v2417_v23  ;;  %v914_v14 = vand.u32 4294901760, %v913_v2  ;;  %2843 = vst [vmem:[#allocation18_spill] sm:$0xff] %v2521_v16  ;;  %v927_v27 = vsub.f32 %v2509_v4, %v2521_v16 }
  0x31   :  { %1875 = vmatprep.subr.mxu0 %v2362_v1  ;;  %1909 = vmatprep.subr.mxu1 %v851_v9  ;;  %2842 = vst [vmem:[#allocation17_spill] sm:$0xff] %v2506_v3 }
  0x32   :  { %1876 = vmatpush3.msra.mxu0 %v2362_v1  ;;  %1910 = vmatpush3.msra.mxu1 %v851_v9  ;;  %2837 = vst [vmem:[#allocation12_spill] sm:$0xff] %v2431_v28  ;;  %v885_v34 = vsub.f32 %v2417_v23, %v2431_v28  ;;  %v907_v9 = vand.u32 4294901760, %v906_v61 }
  0x33   :  { %1877 = vmatprep.subr.mxu0 %v2378_v7  ;;  %1911 = vmatprep.subr.mxu1 %v858_v15 }
  0x34   :  { %1878 = vmatpush3.msra.mxu0 %v2378_v7  ;;  %1912 = vmatpush3.msra.mxu1 %v858_v15  ;;  %v886_v39 = vand.u32 4294901760, %v885_v34  ;;  %v920_v15 = vsub.f32 %v2492_v54, %v2506_v3  ;;  %v928_v34 = vand.u32 4294901760, %v927_v27 }
  0x35   :  { %1879 = vmatprep.subr.mxu0 %v2389_v12  ;;  %1913 = vmatprep.subr.mxu1 %v865_v21 }
  0x36   :  { %1880 = vmatpush3.msra.mxu0 %v2389_v12  ;;  %1914 = vmatpush3.msra.mxu1 %v865_v21  ;;  %v2527_v21 = vand.u32 4294901760, %v703_v10  ;;  %v921_v26 = vand.u32 4294901760, %v920_v15 }
  0x37   :  { %1881 = vmatprep.subr.mxu0 %v2403_v18  ;;  %1915 = vmatprep.subr.mxu1 %v872_v31 }
  0x38   :  { %1882 = vmatpush3.msra.mxu0 %v2403_v18  ;;  %1916 = vmatpush3.msra.mxu1 %v872_v31  ;;  %v2536_v31 = vand.u32 4294901760, %v2524_v20 }
  0x39   :  { %1883 = vmatprep.subr.mxu0 %v2419_v24  ;;  %1917 = vmatprep.subr.mxu1 %v879_v33 }
  0x3a   :  { %1884 = vmatpush3.msra.mxu0 %v2419_v24  ;;  %1918 = vmatpush3.msra.mxu1 %v879_v33  ;;  %2844 = vst [vmem:[#allocation19_spill] sm:$0xff] %v2536_v31  ;;  %v2542_v33 = vsub.f32 %v703_v10, %v2527_v21  ;;  %v934_v38 = vsub.f32 %v2524_v20, %v2536_v31 }
  0x3b   :  { %1885 = vmatprep.subr.mxu0 %v2436_v30  ;;  %1919 = vmatprep.subr.mxu1 %v886_v39 }
  0x3c   :  { %1886 = vmatpush3.msra.mxu0 %v2436_v30  ;;  %1920 = vmatpush3.msra.mxu1 %v886_v39  ;;  %v2548_v39 = vsub.f32 %v702_v25, %v2538_v32  ;;  %v2552_v40 = vand.u32 4294901760, %v2542_v33  ;;  %v935_v44 = vand.u32 4294901760, %v934_v38 }
  0x3d   :  { %1887 = vmatprep.subr.mxu0 %v2452_v37  ;;  %1921 = vmatprep.subr.mxu1 %v893_v45 }
  0x3e   :  { %1888 = vmatpush3.msra.mxu0 %v2452_v37  ;;  %1922 = vmatpush3.msra.mxu1 %v893_v45  ;;  %2845 = vst [vmem:[#allocation20_spill] sm:$0xff] %v2548_v39  ;;  %2846 = vst [vmem:[#allocation21_spill] sm:$0xff] %v2552_v40  ;;  %v2556_v45 = vand.u32 4294901760, %v2548_v39  ;;  %v941_v46 = vsub.f32 %v2542_v33, %v2552_v40 }
  0x3f   :  { %1889 = vmatprep.subr.mxu0 %v2463_v42  ;;  %1923 = vmatprep.subr.mxu1 %v900_v51 }
  0x40   :  { %1890 = vmatpush3.msra.mxu0 %v2463_v42  ;;  %1924 = vmatpush3.msra.mxu1 %v900_v51  ;;  %2847 = vst [vmem:[#allocation22_spill] sm:$0xff] %v2556_v45  ;;  %v948_v50 = vsub.f32 %v2548_v39, %v2556_v45  ;;  %v942_v51 = vand.u32 4294901760, %v941_v46 }
  0x41   :  { %1891 = vmatprep.subr.mxu0 %v2478_v48  ;;  %1925 = vmatprep.subr.mxu1 %v907_v9 }
  0x42   :  { %1892 = vmatpush3.msra.mxu0 %v2478_v48  ;;  %1926 = vmatpush3.msra.mxu1 %v907_v9  ;;  %v949_v61 = vand.u32 4294901760, %v948_v50 }
  0x43   :  { %1893 = vmatprep.subr.mxu0 %v2494_v57  ;;  %1927 = vmatprep.subr.mxu1 %v914_v14 }
  0x44   :  { %1894 = vmatpush3.msra.mxu0 %v2494_v57  ;;  %1928 = vmatpush3.msra.mxu1 %v914_v14 }
  0x45   :  { %1895 = vmatprep.subr.mxu0 %v2511_v8  ;;  %1929 = vmatprep.subr.mxu1 %v921_v26 }
  0x46   :  { %1896 = vmatpush3.msra.mxu0 %v2511_v8  ;;  %1930 = vmatpush3.msra.mxu1 %v921_v26  ;;  %v1613_v26 = vld [vmem:[%s2791_s2] ss:$0 sm:$0xff] }
  0x47   :  { %1897 = vmatprep.subr.mxu0 %v2527_v21  ;;  %1931 = vmatprep.subr.mxu1 %v928_v34 }
  0x48   :  { %1898 = vmatpush3.msra.mxu0 %v2527_v21  ;;  %1932 = vmatpush3.msra.mxu1 %v928_v34 }
  0x49   :  { %1899 = vmatprep.subr.mxu0 %v2538_v32  ;;  %1933 = vmatprep.subr.mxu1 %v935_v44 }
  0x4a   :  { %1900 = vmatpush3.msra.mxu0 %v2538_v32  ;;  %1934 = vmatpush3.msra.mxu1 %v935_v44 }
  0x4b   :  { %1945 = vmatprep.subr.mxu0 %v2332_v55  ;;  %1935 = vmatprep.subr.mxu1 %v942_v51 }
  0x4c   :  { %1936 = vmatpush3.msra.mxu1 %v942_v51 }
  0x4d   :  { %1937 = vmatprep.subr.mxu1 %v949_v61 }
  0x4e   :  { %1938 = vmatpush3.msra.mxu1 %v949_v61 }
  0x4f   :  { %1983 = vmatprep.subr.mxu1 %v2326_v53 }
  0xd0   :  { %v1795_v62 = vpop.f32.mrf.mxu0 }
  0xd1   :  { %v150_v38 = vadd.f32 %v1795_v62, %v1613_v26 }
  0xd2   :  { %v139_v2 = vpop.f32.mrf.mxu0 }
  0xd3   :  { %v140_v50 = vadd.f32 %v1613_v26, %v139_v2 }
  0xd4   :  { %v1798_v9 = vpop.f32.mrf.mxu0 }
  0xd5   :  { %v170_v51 = vadd.f32 %v1798_v9, %v1613_v26 }
  0xd6   :  { %v159_v10 = vpop.f32.mrf.mxu0  ;;  %v1809_v14 = vpop.f32.mrf.mxu1 }
  0xd7   :  { %v267_v61 = vadd.f32 %v1809_v14, %v150_v38  ;;  %v160_v3 = vadd.f32 %v1613_v26, %v159_v10 }
  0xd8   :  { %v260_v15 = vpop.f32.mrf.mxu1 }
  0xd9   :  { %v1823_v25 = vpop.f32.mrf.mxu0  ;;  %v261_v31 = vadd.f32 %v260_v15, %v140_v50 }
  0xda   :  { %v366_v52 = vadd.f32 %v1823_v25, %v267_v61 }
  0xdb   :  { %v358_v34 = vpop.f32.mrf.mxu0 }
  0xdc   :  { %v1812_v27 = vpop.f32.mrf.mxu1  ;;  %v359_v35 = vadd.f32 %v358_v34, %v261_v31 }
  0xdd   :  { %v279_v49 = vadd.f32 %v1812_v27, %v170_v51 }
  0xde   :  { %v272_v44 = vpop.f32.mrf.mxu1 }
  0xdf   :  { %v273_v28 = vadd.f32 %v272_v44, %v160_v3 }
  0xe0   :  { %v1826_v46 = vpop.f32.mrf.mxu0 }
  0xe1   :  { %v380_v5 = vadd.f32 %v1826_v46, %v279_v49 }
  0xe2   :  { %v372_v45 = vpop.f32.mrf.mxu0  ;;  %v1837_v40 = vpop.f32.mrf.mxu1 }
  0xe3   :  { %v465_v22 = vadd.f32 %v1837_v40, %v366_v52  ;;  %v373_v2 = vadd.f32 %v372_v45, %v273_v28 }
  0xe4   :  { %v456_v16 = vpop.f32.mrf.mxu1 }
  0xe5   :  { %v1851_v41 = vpop.f32.mrf.mxu0  ;;  %v457_v62 = vadd.f32 %v456_v16, %v359_v35 }
  0xe6   :  { %v570_v9 = vadd.f32 %v1851_v41, %v465_v22 }
  0xe7   :  { %v563_v19 = vpop.f32.mrf.mxu0 }
  0xe8   :  { %v1840_v11 = vpop.f32.mrf.mxu1  ;;  %v564_v39 = vadd.f32 %v563_v19, %v457_v62 }
  0xe9   :  { %v1854_v58 = vpop.f32.mrf.mxu0  ;;  %v481_v14 = vadd.f32 %v1840_v11, %v380_v5 }
  0xea   :  { %v472_v63 = vpop.f32.mrf.mxu1 }
  0xeb   :  { %v473_v15 = vadd.f32 %v472_v63, %v373_v2  ;;  %v575_v10 = vpop.f32.mrf.mxu0  ;;  %v582_v26 = vadd.f32 %v1854_v58, %v481_v14 }
  0xec   :  { %v1865_v38 = vpop.f32.mrf.mxu1 }
  0xed   :  { %v663_v50 = vadd.f32 %v1865_v38, %v570_v9  ;;  %v576_v52 = vadd.f32 %v575_v10, %v473_v15 }
  0xee   :  { %v656_v25 = vpop.f32.mrf.mxu1 }
  0xef   :  { %v683_v27 = vmul.f32 0.70710677, %v663_v50  ;;  %v657_v31 = vadd.f32 %v656_v25, %v564_v39  ;;  %v679_v63 = vmul.f32 0.5, %v663_v50 }
  0xf0   :  { %v1868_v3 = vpop.f32.mrf.mxu1 }
  0xf1   :  { %2101 = verf.f32 %v683_v27  ;;  %v682_v40 = vmul.f32 0.70710677, %v657_v31  ;;  %v675_v49 = vadd.f32 %v1868_v3, %v582_v26  ;;  %v678_v58 = vmul.f32 0.5, %v657_v31 }
  0xf2   :  { %v668_v35 = vpop.f32.mrf.mxu1 }
  0xf3   :  { %2103 = verf.f32 %v682_v40  ;;  %v685_v16 = vmul.f32 0.70710677, %v675_v49  ;;  %v669_v28 = vadd.f32 %v668_v35, %v576_v52  ;;  %v681_v46 = vmul.f32 0.5, %v675_v49 }
  0xf5   :  { %2105 = verf.f32 %v685_v16  ;;  %v684_v5 = vmul.f32 0.70710677, %v669_v28  ;;  %v680_v62 = vmul.f32 0.5, %v669_v28 }
  0xf7   :  { %2107 = verf.f32 %v684_v5 }
  0xfe   :  { %v2102_v11 = vpop.eup %2101 }
  0xff   :  { %v691_v19 = vadd.f32 1.0, %v2102_v11 }
 0x100   :  { %v2104_v22 = vpop.eup %2103 }
 0x101   :  { %v695_v41 = vmul.f32 %v691_v19, %v679_v63  ;;  %v690_v45 = vadd.f32 1.0, %v2104_v22 }
 0x102   :  { %v2106_v39 = vpop.eup %2105 }
 0x103   :  { %v2568_v34 = vand.u32 4294901760, %v695_v41  ;;  %v694_v44 = vmul.f32 %v690_v45, %v678_v58  ;;  %v693_v51 = vadd.f32 1.0, %v2106_v39 }
 0x104   :  { %v2108_v61 = vpop.eup %2107 }
 0x105   :  { %v2571_v2 = vsub.f32 %v695_v41, %v2568_v34  ;;  %v2573_v9 = vand.u32 4294901760, %v694_v44  ;;  %v697_v14 = vmul.f32 %v693_v51, %v681_v46  ;;  %v692_v38 = vadd.f32 1.0, %v2108_v61 }
 0x107   :  { %v811_v15 = vand.u32 4294901760, %v2571_v2  ;;  %v800_v50 = vsub.f32 %v694_v44, %v2573_v9  ;;  %v2577_v10 = vand.u32 4294901760, %v697_v14  ;;  %v696_v25 = vmul.f32 %v692_v38, %v680_v62  ;;  %1939 = vmatprep.mubr.f32.mxu1 %v2573_v9 }
 0x108   :  { %1940 = vmatmul.mubr.f32.vlgmr.msra.gmra.mxu1 %v2568_v34 }
 0x109   :  { %v2582_v26 = vsub.f32 %v697_v14, %v2577_v10  ;;  %v2584_v27 = vand.u32 4294901760, %v696_v25  ;;  %1984 = vmatpush3.msra.mxu1 %v2326_v53  ;;  %v801_v31 = vand.u32 4294901760, %v800_v50  ;;  %v812_v3 = vsub.f32 %v2571_v2, %v811_v15 }
 0x10a   :  { %1985 = vmatprep.subr.mxu1 %v2334_v56 }
 0x10b   :  { %v2592_v52 = vsub.f32 %v696_v25, %v2584_v27  ;;  %1986 = vmatpush3.msra.mxu1 %v2334_v56  ;;  %1942 = vmatprep.mubr.f32.mxu1 %v2584_v27  ;;  %v802_v40 = vsub.f32 %v800_v50, %v801_v31  ;;  %v831_v49 = vand.u32 4294901760, %v2582_v26  ;;  %v813_v28 = vand.u32 4294901760, %v812_v3 }
 0x10c   :  { %1987 = vmatprep.subr.mxu1 %v2347_v60  ;;  %1943 = vmatmul.mubr.f32.gmra.mxu1 %v2577_v10 }
 0x10d   :  { %1988 = vmatpush3.msra.mxu1 %v2347_v60  ;;  %2015 = vmatprep.mubr.f32.mxu1 %v801_v31  ;;  %v803_v35 = vand.u32 4294901760, %v802_v40  ;;  %v821_v16 = vand.u32 4294901760, %v2592_v52  ;;  %v832_v11 = vsub.f32 %v2582_v26, %v831_v49 }
 0x10e   :  { %1989 = vmatprep.subr.mxu1 %v2362_v1 }
 0x10f   :  { %1990 = vmatpush3.msra.mxu1 %v2362_v1  ;;  %1901 = vmatprep.mubr.f32.mxu0 %v803_v35  ;;  %v822_v5 = vsub.f32 %v2592_v52, %v821_v16  ;;  %v833_v19 = vand.u32 4294901760, %v832_v11 }
 0x110   :  { %1991 = vmatprep.subr.mxu1 %v2378_v7  ;;  %1902 = vmatmul.mubr.f32.vlgmr.msra.gmra.mxu0 %v813_v28 }
 0x111   :  { %1946 = vmatpush3.msra.mxu0 %v2332_v55  ;;  %1992 = vmatpush3.msra.mxu1 %v2378_v7  ;;  %v823_v63 = vand.u32 4294901760, %v822_v5  ;;  %v2849_v55 = vld [vmem:[#allocation6_spill] sm:$0xff] }
 0x112   :  { %1947 = vmatprep.subr.mxu0 %v2345_v59  ;;  %1993 = vmatprep.subr.mxu1 %v2389_v12 }
 0x113   :  { %1948 = vmatpush3.msra.mxu0 %v2345_v59  ;;  %1994 = vmatpush3.msra.mxu1 %v2389_v12  ;;  %v2851_v59 = vld [vmem:[#allocation8_spill] sm:$0xff] }
 0x114   :  { %1904 = vmatprep.mubr.f32.mxu0 %v823_v63  ;;  %1949 = vmatprep.subr.mxu0 %v2360_v0 }
 0x115   :  { %1995 = vmatprep.subr.mxu1 %v2403_v18  ;;  %1905 = vmatmul.mubr.f32.gmra.mxu0 %v833_v19 }
 0x116   :  { %1950 = vmatpush3.msra.mxu0 %v2360_v0  ;;  %1996 = vmatpush3.msra.mxu1 %v2403_v18  ;;  %v2853_v0 = vld [vmem:[#allocation10_spill] sm:$0xff] }
 0x117   :  { %1951 = vmatprep.subr.mxu0 %v2375_v6  ;;  %1977 = vmatprep.mubr.f32.mxu0 %v800_v50 }
 0x118   :  { %1997 = vmatprep.subr.mxu1 %v2419_v24  ;;  %1952 = vmatpush3.msra.mxu0 %v2375_v6  ;;  %v2855_v6 = vld [vmem:[#allocation12_spill] sm:$0xff] }
 0x119   :  { %1998 = vmatpush3.msra.mxu1 %v2419_v24  ;;  %1953 = vmatprep.subr.mxu0 %v2392_v13 }
 0x11a   :  { %1999 = vmatprep.subr.mxu1 %v2436_v30  ;;  %1954 = vmatpush3.msra.mxu0 %v2392_v13  ;;  %v2858_v13 = vld [vmem:[#allocation15_spill] sm:$0xff] }
 0x11b   :  { %2000 = vmatpush3.msra.mxu1 %v2436_v30  ;;  %1955 = vmatprep.subr.mxu0 %v2401_v17 }
 0x11c   :  { %2001 = vmatprep.subr.mxu1 %v2452_v37  ;;  %1956 = vmatpush3.msra.mxu0 %v2401_v17  ;;  %v2859_v17 = vld [vmem:[#allocation16_spill] sm:$0xff] }
 0x11d   :  { %2002 = vmatpush3.msra.mxu1 %v2452_v37  ;;  %1957 = vmatprep.subr.mxu0 %v2417_v23 }
 0x11e   :  { %2003 = vmatprep.subr.mxu1 %v2463_v42  ;;  %1958 = vmatpush3.msra.mxu0 %v2417_v23  ;;  %v2861_v23 = vld [vmem:[#allocation18_spill] sm:$0xff] }
 0x11f   :  { %2004 = vmatpush3.msra.mxu1 %v2463_v42  ;;  %1959 = vmatprep.subr.mxu0 %v2434_v29 }
 0x120   :  { %2005 = vmatprep.subr.mxu1 %v2478_v48  ;;  %1960 = vmatpush3.msra.mxu0 %v2434_v29  ;;  %v2863_v29 = vld [vmem:[#allocation21_spill] sm:$0xff] }
 0x121   :  { %2006 = vmatpush3.msra.mxu1 %v2478_v48  ;;  %1961 = vmatprep.subr.mxu0 %v2449_v36 }
 0x122   :  { %2007 = vmatprep.subr.mxu1 %v2494_v57  ;;  %1962 = vmatpush3.msra.mxu0 %v2449_v36  ;;  %v2143_v36 = vmov 0.0  }
 0x123   :  { %2008 = vmatpush3.msra.mxu1 %v2494_v57  ;;  %1963 = vmatprep.subr.mxu0 %v2467_v43  ;;  %33 = vst.msk [vmem:[#allocation2 + $0x8] sm:$0xff] %vm31_vm0, %v2143_v36  ;;  %32 = vst.msk [vmem:[#allocation2] sm:$0xff] %vm31_vm0, %v2143_v36 }
 0x124   :  { %2009 = vmatprep.subr.mxu1 %v2511_v8  ;;  %1964 = vmatpush3.msra.mxu0 %v2467_v43  ;;  %34 = vst.msk [vmem:[#allocation2 + $0x10] sm:$0xff] %vm31_vm0, %v2143_v36  ;;  %35 = vst.msk [vmem:[#allocation2 + $0x18] sm:$0xff] %vm31_vm0, %v2143_v36  ;;  %v2119_v36 = vld [vmem:[%s2789_s0 + $0x10] sm:$0xff] }
 0x125   :  { %2010 = vmatpush3.msra.mxu1 %v2511_v8  ;;  %1965 = vmatprep.subr.mxu0 %v2476_v47 }
 0x126   :  { %2011 = vmatprep.subr.mxu1 %v2527_v21  ;;  %1966 = vmatpush3.msra.mxu0 %v2476_v47 }
 0x127   :  { %2012 = vmatpush3.msra.mxu1 %v2527_v21  ;;  %1967 = vmatprep.subr.mxu0 %v2492_v54 }
 0x128   :  { %2013 = vmatprep.subr.mxu1 %v2538_v32  ;;  %1968 = vmatpush3.msra.mxu0 %v2492_v54 }
 0x129   :  { %2014 = vmatpush3.msra.mxu1 %v2538_v32  ;;  %1969 = vmatprep.subr.mxu0 %v2509_v4 }
 0x12a   :  { %2016 = vmatmul.mubr.f32.vlgmr.msra.gmra.mxu1 %v811_v15  ;;  %2059 = vmatprep.subr.mxu1 %v2326_v53 }
 0x12b   :  { %1970 = vmatpush3.msra.mxu0 %v2509_v4  ;;  %2018 = vmatprep.mubr.f32.mxu1 %v821_v16  ;;  %v701_v5 = vld [vmem:[#allocation2 + $0x18] sm:$0xff] }
 0x12c   :  { %2060 = vmatpush3.msra.mxu1 %v2326_v53  ;;  %1971 = vmatprep.subr.mxu0 %v2524_v20  ;;  %v2848_v53 = vld [vmem:[#allocation20_spill] sm:$0xff] }
 0x12d   :  { %2061 = vmatprep.subr.mxu1 %v2334_v56  ;;  %1972 = vmatpush3.msra.mxu0 %v2524_v20 }
 0x12e   :  { %2062 = vmatpush3.msra.mxu1 %v2334_v56  ;;  %1973 = vmatprep.subr.mxu0 %v2542_v33  ;;  %v2850_v56 = vld [vmem:[#allocation7_spill] sm:$0xff] }
 0x12f   :  { %2019 = vmatmul.mubr.f32.gmra.mxu1 %v831_v49  ;;  %2063 = vmatprep.subr.mxu1 %v2347_v60 }
 0x130   :  { %1974 = vmatpush3.msra.mxu0 %v2542_v33  ;;  %2064 = vmatpush3.msra.mxu1 %v2347_v60  ;;  %v2852_v60 = vld [vmem:[#allocation9_spill] sm:$0xff] }
 0x131   :  { %2091 = vmatprep.mubr.f32.mxu1 %v2573_v9  ;;  %1975 = vmatprep.subr.mxu0 %v2848_v53 }
 0x132   :  { %2065 = vmatprep.subr.mxu1 %v2362_v1  ;;  %1976 = vmatpush3.msra.mxu0 %v2848_v53 }
 0x133   :  { %2066 = vmatpush3.msra.mxu1 %v2362_v1  ;;  %1978 = vmatmul.mubr.f32.vlgmr.msra.gmra.mxu0 %v2571_v2  ;;  %v2854_v1 = vld [vmem:[#allocation11_spill] sm:$0xff] }
 0x134   :  { %2021 = vmatprep.subr.mxu0 %v2849_v55  ;;  %2067 = vmatprep.subr.mxu1 %v2378_v7 }
 0x135   :  { %1980 = vmatprep.mubr.f32.mxu0 %v2592_v52  ;;  %2022 = vmatpush3.msra.mxu0 %v2849_v55  ;;  %v698_v52 = vld [vmem:[#allocation2] sm:$0xff] }
 0x136   :  { %2068 = vmatpush3.msra.mxu1 %v2378_v7  ;;  %2023 = vmatprep.subr.mxu0 %v2850_v56  ;;  %v2856_v7 = vld [vmem:[#allocation13_spill] sm:$0xff] }
 0x137   :  { %2069 = vmatprep.subr.mxu1 %v2389_v12  ;;  %2024 = vmatpush3.msra.mxu0 %v2850_v56  ;;  %v700_v56 = vld [vmem:[#allocation2 + $0x10] sm:$0xff] }
 0x138   :  { %2070 = vmatpush3.msra.mxu1 %v2389_v12  ;;  %1981 = vmatmul.mubr.f32.gmra.mxu0 %v2582_v26  ;;  %v2857_v12 = vld [vmem:[#allocation14_spill] sm:$0xff] }
 0x139   :  { %2025 = vmatprep.subr.mxu0 %v2851_v59  ;;  %2071 = vmatprep.subr.mxu1 %v2403_v18 }
 0x13a   :  { %2026 = vmatpush3.msra.mxu0 %v2851_v59  ;;  %2053 = vmatprep.mubr.f32.mxu0 %v2573_v9 }
 0x13b   :  { %2072 = vmatpush3.msra.mxu1 %v2403_v18  ;;  %2027 = vmatprep.subr.mxu0 %v2852_v60  ;;  %v2860_v18 = vld [vmem:[#allocation17_spill] sm:$0xff] }
 0x13c   :  { %2073 = vmatprep.subr.mxu1 %v2419_v24  ;;  %2028 = vmatpush3.msra.mxu0 %v2852_v60 }
 0x13d   :  { %2074 = vmatpush3.msra.mxu1 %v2419_v24  ;;  %2029 = vmatprep.subr.mxu0 %v2853_v0  ;;  %v2862_v24 = vld [vmem:[#allocation19_spill] sm:$0xff] }
 0x13e   :  { %2075 = vmatprep.subr.mxu1 %v2436_v30  ;;  %2030 = vmatpush3.msra.mxu0 %v2853_v0 }
 0x13f   :  { %2076 = vmatpush3.msra.mxu1 %v2436_v30  ;;  %2031 = vmatprep.subr.mxu0 %v2854_v1  ;;  %v2864_v30 = vld [vmem:[#allocation22_spill] sm:$0xff] }
 0x140   :  { %2077 = vmatprep.subr.mxu1 %v2452_v37  ;;  %2032 = vmatpush3.msra.mxu0 %v2854_v1 }
 0x141   :  { %2078 = vmatpush3.msra.mxu1 %v2452_v37  ;;  %2033 = vmatprep.subr.mxu0 %v2855_v6 }
 0x142   :  { %2079 = vmatprep.subr.mxu1 %v2463_v42  ;;  %2034 = vmatpush3.msra.mxu0 %v2855_v6 }
 0x143   :  { %2080 = vmatpush3.msra.mxu1 %v2463_v42  ;;  %2035 = vmatprep.subr.mxu0 %v2856_v7 }
 0x144   :  { %2081 = vmatprep.subr.mxu1 %v2478_v48  ;;  %2036 = vmatpush3.msra.mxu0 %v2856_v7  ;;  %v2117_v7 = vld [vmem:[%s2789_s0] sm:$0xff] }
 0x145   :  { %2082 = vmatpush3.msra.mxu1 %v2478_v48  ;;  %2037 = vmatprep.subr.mxu0 %v2857_v12 }
 0x146   :  { %2083 = vmatprep.subr.mxu1 %v2494_v57  ;;  %2038 = vmatpush3.msra.mxu0 %v2857_v12 }
 0x147   :  { %2084 = vmatpush3.msra.mxu1 %v2494_v57  ;;  %2039 = vmatprep.subr.mxu0 %v2858_v13 }
 0x148   :  { %2085 = vmatprep.subr.mxu1 %v2511_v8  ;;  %2040 = vmatpush3.msra.mxu0 %v2858_v13  ;;  %v2118_v13 = vld [vmem:[%s2789_s0 + $0x8] sm:$0xff] }
 0x149   :  { %2086 = vmatpush3.msra.mxu1 %v2511_v8  ;;  %2041 = vmatprep.subr.mxu0 %v2859_v17 }
 0x14a   :  { %2087 = vmatprep.subr.mxu1 %v2527_v21  ;;  %2042 = vmatpush3.msra.mxu0 %v2859_v17 }
 0x14b   :  { %2088 = vmatpush3.msra.mxu1 %v2527_v21  ;;  %2043 = vmatprep.subr.mxu0 %v2860_v18 }
 0x14c   :  { %2089 = vmatprep.subr.mxu1 %v2538_v32  ;;  %2044 = vmatpush3.msra.mxu0 %v2860_v18  ;;  %v1614_v18 = vld [vmem:[%s2793_s4] ss:$0 sm:$0xff] }
 0x14d   :  { %2090 = vmatpush3.msra.mxu1 %v2538_v32  ;;  %2045 = vmatprep.subr.mxu0 %v2861_v23 }
 0x14e   :  { %2092 = vmatmul.mubr.f32.vlgmr.msra.gmra.mxu1 %v2568_v34  ;;  %2046 = vmatpush3.msra.mxu0 %v2861_v23 }
 0x14f   :  { %2094 = vmatprep.mubr.f32.mxu1 %v2584_v27  ;;  %2047 = vmatprep.subr.mxu0 %v2862_v24 }
 0x150   :  { %2048 = vmatpush3.msra.mxu0 %v2862_v24 }
 0x151   :  { %2049 = vmatprep.subr.mxu0 %v2863_v29 }
 0x152   :  { %2095 = vmatmul.mubr.f32.gmra.mxu1 %v2577_v10  ;;  %2050 = vmatpush3.msra.mxu0 %v2863_v29 }
 0x153   :  { %2051 = vmatprep.subr.mxu0 %v2864_v30 }
 0x154   :  { %2052 = vmatpush3.msra.mxu0 %v2864_v30 }
 0x155   :  { %2054 = vmatmul.mubr.f32.vlgmr.msra.gmra.mxu0 %v2568_v34 }
 0x156   :  { %2056 = vmatprep.mubr.f32.mxu0 %v2584_v27 }
 0x159   :  { %2057 = vmatmul.mubr.f32.gmra.mxu0 %v2577_v10  ;;  %v699_v10 = vld [vmem:[#allocation2 + $0x8] sm:$0xff] }
 0x1c8   :  { %v1941_v37 = vpop.f32.mrf.mxu1 }
 0x1ca   :  { %v986_v42 = vpop.f32.mrf.mxu1 }
 0x1cc   :  { %v1944_v47 = vpop.f32.mrf.mxu1 }
 0x1ce   :  { %v998_v54 = vpop.f32.mrf.mxu1 }
 0x1d0   :  { %v1903_v43 = vpop.f32.mrf.mxu0 }
 0x1d1   :  { %v993_v22 = vadd.f32 %v1941_v37, %v1903_v43  ;;  %v2120_v43 = vld [vmem:[%s2789_s0 + $0x18] sm:$0xff] }
 0x1d2   :  { %v805_v48 = vpop.f32.mrf.mxu0 }
 0x1d3   :  { %v987_v45 = vadd.f32 %v986_v42, %v805_v48 }
 0x1d5   :  { %v1906_v57 = vpop.f32.mrf.mxu0 }
 0x1d6   :  { %v1005_v44 = vadd.f32 %v1944_v47, %v1906_v57 }
 0x1d7   :  { %v825_v8 = vpop.f32.mrf.mxu0 }
 0x1d8   :  { %v999_v61 = vadd.f32 %v998_v54, %v825_v8 }
 0x1ea   :  { %v2017_v4 = vpop.f32.mrf.mxu1 }
 0x1ec   :  { %v1218_v20 = vpop.f32.mrf.mxu1 }
 0x1ef   :  { %v2020_v32 = vpop.f32.mrf.mxu1 }
 0x1f1   :  { %v1234_v41 = vpop.f32.mrf.mxu1 }
 0x1f3   :  { %v1979_v21 = vpop.f32.mrf.mxu0 }
 0x1f4   :  { %v1116_v39 = vadd.f32 %v1979_v21, %v993_v22 }
 0x1f5   :  { %v1108_v33 = vpop.f32.mrf.mxu0 }
 0x1f6   :  { %v1109_v46 = vadd.f32 %v1108_v33, %v987_v45  ;;  %v1227_v2 = vadd.f32 %v2017_v4, %v1116_v39 }
 0x1f8   :  { %v1982_v58 = vpop.f32.mrf.mxu0  ;;  %v1219_v50 = vadd.f32 %v1218_v20, %v1109_v46 }
 0x1f9   :  { %v1130_v62 = vadd.f32 %v1982_v58, %v1005_v44 }
 0x1fa   :  { %v1122_v51 = vpop.f32.mrf.mxu0 }
 0x1fb   :  { %v1123_v38 = vadd.f32 %v1122_v51, %v999_v61  ;;  %v1243_v31 = vadd.f32 %v2020_v32, %v1130_v62 }
 0x1fd   :  { %v1235_v28 = vadd.f32 %v1234_v41, %v1123_v38 }
 0x20e   :  { %v2093_v34 = vpop.f32.mrf.mxu1 }
 0x210   :  { %v1466_v9 = vpop.f32.mrf.mxu1 }
 0x212   :  { %v2096_v3 = vpop.f32.mrf.mxu1 }
 0x214   :  { %v1478_v55 = vpop.f32.mrf.mxu1 }
 0x215   :  { %v2055_v14 = vpop.f32.mrf.mxu0 }
 0x216   :  { %v1368_v15 = vadd.f32 %v2055_v14, %v1227_v2 }
 0x217   :  { %v1361_v25 = vpop.f32.mrf.mxu0 }
 0x218   :  { %v1473_v26 = vadd.f32 %v2093_v34, %v1368_v15  ;;  %v1362_v27 = vadd.f32 %v1361_v25, %v1219_v50 }
 0x219   :  { %v2058_v40 = vpop.f32.mrf.mxu0 }
 0x21a   :  { %v1489_v49 = vadd.f32 %v1473_v26, %v699_v10  ;;  %v1467_v35 = vadd.f32 %v1466_v9, %v1362_v27  ;;  %v1380_v16 = vadd.f32 %v2058_v40, %v1243_v31 }
 0x21b   :  { %v1373_v11 = vpop.f32.mrf.mxu0 }
 0x21c   :  { %1493 = vst.msk [vmem:[#allocation2 + $0x8] sm:$0xff] %vm31_vm0, %v1489_v49  ;;  %v1488_v63 = vadd.f32 %v1467_v35, %v698_v52  ;;  %v1485_v19 = vadd.f32 %v2096_v3, %v1380_v16  ;;  %v1374_v53 = vadd.f32 %v1373_v11, %v1235_v28 }
 0x21e   :  { %1492 = vst.msk [vmem:[#allocation2] sm:$0xff] %vm31_vm0, %v1488_v63  ;;  %v1491_v59 = vadd.f32 %v1485_v19, %v701_v5  ;;  %v1479_v60 = vadd.f32 %v1478_v55, %v1374_v53  ;;  %v1615_v5 = vld [vmem:[%s2794_s5] ss:$0 sm:$0xff]  ;;  %s2144_s5 = smov [#allocation3]  }
 0x21f   :  { %v1616_v63 = vld [vmem:[%s2795_s6] ss:$0 sm:$0xff]  ;;  %s1602_s13 = sshll.u32 %s2144_s5, 4  ;;  %s1603_s13 = int_to_ptr.vmem [resolvable:$true] %s1602_s13 }
 0x220   :  { %1495 = vst.msk [vmem:[#allocation2 + $0x18] sm:$0xff] %vm31_vm0, %v1491_v59  ;;  %v1490_v0 = vadd.f32 %v1479_v60, %v700_v56  ;;  %s2121_s6 = scalar_lea.vmem %s1603_s13, 512  ;;  %p2126_p1 = scmp.lt.s32.totalorder %s1603_s13, %s1603_s13 }
 0x221   :  { %p2122_p0 = scmp.ne.s32.totalorder %s1603_s13, %s2121_s6  ;;  %p2127_p2 = scmp.lt.s32.totalorder %s2121_s6, %s2121_s6 }
 0x222   :  { %1494 = vst.msk [vmem:[#allocation2 + $0x10] sm:$0xff] %vm31_vm0, %v1490_v0 }
 0x223   :  { %v1500_v1 = vld [vmem:[#allocation2 + $0x8] sm:$0xff]  ;;  %p2128_p3 = por %p2127_p2, %p2126_p1 }
 0x224   :  { %v1504_v17 = vadd.f32 %v2118_v13, %v1500_v1 }
 0x225   :  { %v1499_v6 = vld [vmem:[#allocation2] sm:$0xff]  ;;  %p2129_p4 = pnand %p2128_p3, %p2122_p0 }
 0x226   :  { %v1503_v12 = vadd.f32 %v2117_v7, %v1499_v6  ;;  %v1515_v42 = vadd.f32 %v1614_v18, %v1504_v17 }
 0x227   :  { %v1502_v23 = vld [vmem:[#allocation2 + $0x18] sm:$0xff] }
 0x228   :  { %v1514_v24 = vadd.f32 %v1614_v18, %v1503_v12  ;;  %v1506_v47 = vadd.f32 %v2120_v43, %v1502_v23  ;;  %v1521_v57 = vsel %vm31_vm0, %v1515_v42, 0.0 }
 0x229   :  { %v1501_v29 = vld [vmem:[#allocation2 + $0x10] sm:$0xff] }
 0x22a   :  { %v1518_v30 = vsel %vm31_vm0, %v1514_v24, 0.0  ;;  %v1505_v37 = vadd.f32 %v2119_v36, %v1501_v29  ;;  %v1517_v4 = vadd.f32 %v1614_v18, %v1506_v47 }
 0x22b   :  { %1519 = vadd.xlane.f32.xlu0 %v1518_v30 }
 0x22c   :  { %v1516_v48 = vadd.f32 %v1614_v18, %v1505_v37  ;;  %v1527_v8 = vsel %vm31_vm0, %v1517_v4, 0.0 }
 0x22e   :  { %v1524_v54 = vsel %vm31_vm0, %v1516_v48, 0.0 }
 0x22f   :  { %1525 = vadd.xlane.f32.xlu1 %v1524_v54  ;;  %1522 = vadd.xlane.f32.xlu0 %v1521_v57 }
 0x233   :  { %1528 = vadd.xlane.f32.xlu1 %v1527_v8 }
 0x2b4   :  { %v1520_v20 = vpop.xlane.xlu0 %1519 }
 0x2b5   :  { %v1531_v21 = vmul.f32 0.03125, %v1520_v20 }
 0x2b7   :  { %v1535_v32 = vsub.f32 %v1514_v24, %v1531_v21 }
 0x2b8   :  { %v1526_v33 = vpop.xlane.xlu1 %1525  ;;  %v1523_v22 = vpop.xlane.xlu0 %1522 }
 0x2b9   :  { %v1533_v41 = vmul.f32 0.03125, %v1526_v33  ;;  %v1532_v58 = vmul.f32 0.03125, %v1523_v22  ;;  %v1539_v45 = vmul.f32 %v1535_v32, %v1535_v32 }
 0x2bb   :  { %v1537_v39 = vsub.f32 %v1516_v48, %v1533_v41  ;;  %v1536_v34 = vsub.f32 %v1515_v42, %v1532_v58  ;;  %v1543_v44 = vsel %vm31_vm0, %v1539_v45, 0.0 }
 0x2bc   :  { %v1529_v46 = vpop.xlane.xlu1 %1528  ;;  %1544 = vadd.xlane.f32.xlu0 %v1543_v44 }
 0x2bd   :  { %v1534_v51 = vmul.f32 0.03125, %v1529_v46  ;;  %v1541_v61 = vmul.f32 %v1537_v39, %v1537_v39  ;;  %v1540_v62 = vmul.f32 %v1536_v34, %v1536_v34 }
 0x2bf   :  { %v1538_v2 = vsub.f32 %v1517_v4, %v1534_v51  ;;  %v1549_v9 = vsel %vm31_vm0, %v1541_v61, 0.0  ;;  %v1546_v14 = vsel %vm31_vm0, %v1540_v62, 0.0 }
 0x2c0   :  { %1550 = vadd.xlane.f32.xlu0 %v1549_v9  ;;  %1547 = vadd.xlane.f32.xlu1 %v1546_v14 }
 0x2c1   :  { %v1542_v38 = vmul.f32 %v1538_v2, %v1538_v2 }
 0x2c3   :  { %v1552_v15 = vsel %vm31_vm0, %v1542_v38, 0.0 }
 0x2c4   :  { %1553 = vadd.xlane.f32.xlu1 %v1552_v15 }
 0x345   :  { %v1545_v50 = vpop.xlane.xlu0 %1544 }
 0x346   :  { %v1555_v10 = vmul.f32 0.03125, %v1545_v50 }
 0x348   :  { %v1559_v25 = vadd.f32 1e-05, %v1555_v10 }
 0x349   :  { %v1548_v26 = vpop.xlane.xlu1 %1547  ;;  %v1551_v27 = vpop.xlane.xlu0 %1550 }
 0x34a   :  { %2109 = vrsqrt.f32 %v1559_v25  ;;  %v1556_v31 = vmul.f32 0.03125, %v1548_v26  ;;  %v1557_v3 = vmul.f32 0.03125, %v1551_v27 }
 0x34c   :  { %v1560_v52 = vadd.f32 1e-05, %v1556_v31  ;;  %v1561_v40 = vadd.f32 1e-05, %v1557_v3 }
 0x34d   :  { %v1554_v49 = vpop.xlane.xlu1 %1553 }
 0x34e   :  { %2111 = vrsqrt.f32 %v1560_v52  ;;  %v1558_v35 = vmul.f32 0.03125, %v1554_v49 }
 0x34f   :  { %2113 = vrsqrt.f32 %v1561_v40 }
 0x350   :  { %v1562_v16 = vadd.f32 1e-05, %v1558_v35 }
 0x352   :  { %2115 = vrsqrt.f32 %v1562_v16 }
 0x357   :  { %v2110_v28 = vpop.eup %2109 }
 0x358   :  { %v1567_v11 = vmul.f32 %v2110_v28, %v1535_v32 }
 0x35a   :  { %v1578_v19 = vmul.f32 %v1615_v5, %v1567_v11 }
 0x35b   :  { %v2112_v53 = vpop.eup %2111 }
 0x35c   :  { %v2114_v55 = vpop.eup %2113  ;;  %v1568_v56 = vmul.f32 %v2112_v53, %v1536_v34  ;;  %v1589_v59 = vadd.f32 %v1616_v63, %v1578_v19 }
 0x35d   :  { %v1569_v60 = vmul.f32 %v2114_v55, %v1537_v39 }
 0x35e   :  { %v1579_v0 = vmul.f32 %v1615_v5, %v1568_v56  ;;  %1593 = vst.msk [vmem:[#allocation3] sm:$0xff] %vm31_vm0, %v1589_v59 }
 0x35f   :  { %v2116_v1 = vpop.eup %2115  ;;  %v1580_v6 = vmul.f32 %v1615_v5, %v1569_v60 }
 0x360   :  { %v1570_v7 = vmul.f32 %v2116_v1, %v1538_v2  ;;  %v1590_v12 = vadd.f32 %v1616_v63, %v1579_v0 }
 0x361   :  { %v1591_v13 = vadd.f32 %v1616_v63, %v1580_v6 }
 0x362   :  { %v1581_v17 = vmul.f32 %v1615_v5, %v1570_v7  ;;  %1594 = vst.msk [vmem:[#allocation3 + $0x8] sm:$0xff] %vm31_vm0, %v1590_v12 }
 0x363   :  { %1595 = vst.msk [vmem:[#allocation3 + $0x10] sm:$0xff] %vm31_vm0, %v1591_v13 }
 0x364   :  { %v1592_v18 = vadd.f32 %v1616_v63, %v1581_v17 }
 0x366   :  { %1596 = vst.msk [vmem:[#allocation3 + $0x18] sm:$0xff] %vm31_vm0, %v1592_v18 }
 0x367   :  { %2132 = shalt.err (!%p2129_p4)
}
 0x368   :  { %s2145_s14 = smov 128   ;;  %s2146_s15 = smov 8  }
 0x369   :  { %1608 = dma.vmem_to_hbm [thread:$0]  %s1603_s13, 512, %s2796_s7, [#allocation4], %s2145_s14, %s2145_s14, %s2146_s15  }
 0x36a   :  { %2141 = dma.done.wait [#allocation4], 512  }
 0x36b   :  { %2142 = vsyncadd [#allocation4], 4294966784 }
 0x36c   :  { %1612 = vsyncpa [#allocation4], 1 }

</bundles_post_ra>
